<compile_context>
chip_gen: v7x
topology: tpu7x:2x2x1
jax: 0.10.0
libtpu: 0.0.40
codegen_flags: <defaults>
</compile_context>

<pallas_src>
import math

import jax
import jax.numpy as jnp
from jax import lax
from jax.experimental import pallas as pl
from jax.experimental.pallas import tpu as pltpu


_LN3 = math.log(3.0)
_INV_SQRT_2PI = 1.0 / math.sqrt(2.0 * math.pi)


# ----------------------------------------------------------------------------
# Fused whole-encoder Pallas kernel
# ----------------------------------------------------------------------------

def _layernorm(z, w, b):
    mu = jnp.mean(z, axis=-1, keepdims=True)
    var = jnp.mean((z - mu) ** 2, axis=-1, keepdims=True)
    return (z - mu) * lax.rsqrt(var + 1e-5) * w + b


def _make_fused_kernel(Bt, L, D, H):
    Dh = D // H
    M = Bt * L

    def kernel(xu_ref, add_ref, tokw_ref, nhd2_ref,
               wqkvs_ref, bqkvs_ref, wo_ref, bo_ref,
               ln1w_ref, ln1b_ref, w1_ref, b1_ref, w2_ref, b2_ref,
               ln2w_ref, ln2b_ref, nfw_ref, nfb_ref, projw_ref, projb_ref,
               out_ref, ser_ref, pri_ref, sig_ref,
               enc_ref):
        layer = pl.program_id(1)

        # ---- layer 0: token embedding (circular conv-as-matmul) + pos/time embeddings
        @pl.when(layer == 0)
        def _():
            xu = xu_ref[...].reshape(M, xu_ref.shape[-1])           # bf16 (M, 3*Cin)
            emb = jnp.dot(xu, tokw_ref[...], preferred_element_type=jnp.float32)
            enc_ref[...] = emb + add_ref[...].reshape(M, D)

        x = enc_ref[...]                                            # (M, D) f32

        # ---- fused q/k/v/sigma projection: one (M,D)@(D,QKVS_pad) MXU op, kept in registers
        qkvs = jnp.dot(x.astype(jnp.bfloat16), wqkvs_ref[0],
                       preferred_element_type=jnp.float32) + bqkvs_ref[0]

        # sigma transform on the small (M, H) slice BEFORE any broadcast
        sig_t = jnp.exp((jax.nn.sigmoid(qkvs[:, 3 * D:3 * D + H] * 5.0) + 1e-5)
                        * _LN3) - 1.0                               # pow(3, s) - 1
        sig3 = sig_t.reshape(Bt, L, H)
        sig_ref[...] = sig3

        q = qkvs[:, 0 * D:1 * D].astype(jnp.bfloat16).reshape(Bt, L, D)
        k = qkvs[:, 1 * D:2 * D].astype(jnp.bfloat16).reshape(Bt, L, D)
        v = qkvs[:, 2 * D:3 * D].astype(jnp.bfloat16).reshape(Bt, L, D)
        nhd2 = nhd2_ref[...]                                        # (L, L) = -0.5 * dist^2

        ser_heads, pri_heads, out_heads = [], [], []
        for h in range(H):
            q_h = q[:, :, h * Dh:(h + 1) * Dh]
            k_h = k[:, :, h * Dh:(h + 1) * Dh]
            v_h = v[:, :, h * Dh:(h + 1) * Dh]

            # sample-batched scores; 1/sqrt(Dh) scale folded into wq/bq at prep time
            s = jnp.einsum('bld,bmd->blm', q_h, k_h,
                           preferred_element_type=jnp.float32)      # (Bt, L, L)
            m = jnp.max(s, axis=-1, keepdims=True)
            e = jnp.exp(s - m)
            series_h = e * pl.reciprocal(jnp.sum(e, axis=-1, keepdims=True),
                                         approx=True)
            ser_heads.append(series_h)

            inv_sig = 1.0 / sig3[:, :, h:h + 1]                     # exact (feeds squared exp)
            pri_heads.append(_INV_SQRT_2PI * inv_sig
                             * jnp.exp(nhd2[None] * (inv_sig * inv_sig)))

            out_heads.append(jnp.einsum('blm,bmd->bld',
                                        series_h.astype(jnp.bfloat16), v_h,
                                        preferred_element_type=jnp.float32))

        # single wide stores (no per-head narrow-lane stores)
        ser_ref[...] = jnp.stack(ser_heads, axis=1)                 # (Bt, H, L, L)
        pri_ref[...] = jnp.stack(pri_heads, axis=1)
        newx = jnp.concatenate(out_heads, axis=-1).reshape(M, D)

        # ---- attention output projection + EncoderLayer FFN (dropout=0 -> identity)
        attn = jnp.dot(newx.astype(jnp.bfloat16), wo_ref[0],
                       preferred_element_type=jnp.float32) + bo_ref[0]
        x2 = x + attn
        y = _layernorm(x2, ln1w_ref[0], ln1b_ref[0])
        # TODO(synk): PyTorch F.gelu default is erf-exact; tanh approximation used for TPU lowering.
        h1 = jax.nn.gelu(
            jnp.dot(y.astype(jnp.bfloat16), w1_ref[0],
                    preferred_element_type=jnp.float32) + b1_ref[0],
            approximate=True)
        y2 = jnp.dot(h1.astype(jnp.bfloat16), w2_ref[0],
                     preferred_element_type=jnp.float32) + b2_ref[0]
        enc_new = _layernorm(x2 + y2, ln2w_ref[0], ln2b_ref[0])
        enc_ref[...] = enc_new

        # ---- last layer: final encoder LayerNorm fused with the output projection
        @pl.when(layer == pl.num_programs(1) - 1)
        def _():
            yf = _layernorm(enc_new, nfw_ref[...], nfb_ref[...])
            proj = jnp.dot(yf.astype(jnp.bfloat16), projw_ref[...],
                           preferred_element_type=jnp.float32) + projb_ref[...]
            out_ref[...] = proj.reshape(out_ref.shape)

    return kernel


def _pick_batch_tile(B, L):
    """Largest divisor of B with Bt*L <= ~256 rows.  Folds the whole batch at small B;
    keeps multiple batch blocks at large B so the v7x megacore 'parallel' axis has work."""
    target = max(1, 256 // max(L, 1))
    bt = min(B, target)
    while bt > 1 and B % bt:
        bt -= 1
    return max(bt, 1)


def fused_encoder(xu, add_emb, sp, B, L, D, H, Dff, Cout):
    E = sp['wqkvs'].shape[0]
    Cin3 = xu.shape[-1]
    QKVSp = sp['wqkvs'].shape[-1]
    Bt = _pick_batch_tile(B, L)
    nb = B // Bt

    b_row = lambda bb, l: (bb, 0, 0)
    l_w3 = lambda bb, l: (l, 0, 0)
    const2 = lambda bb, l: (0, 0)
    bl_row3 = lambda bb, l: (l * nb + bb, 0, 0)
    bl_row4 = lambda bb, l: (l * nb + bb, 0, 0, 0)

    in_specs = [
        pl.BlockSpec((Bt, L, Cin3), b_row),           # xu (bf16, circular-conv unfold)
        pl.BlockSpec((Bt, L, D), b_row),              # pos + time embedding
        pl.BlockSpec((Cin3, D), const2),              # token conv weight
        pl.BlockSpec((L, L), const2),                 # -0.5 * dist^2
        pl.BlockSpec((1, D, QKVSp), l_w3),            # wqkvs (lane-padded)
        pl.BlockSpec((1, 1, QKVSp), l_w3),            # bqkvs
        pl.BlockSpec((1, D, D), l_w3),                # wo
        pl.BlockSpec((1, 1, D), l_w3),                # bo
        pl.BlockSpec((1, 1, D), l_w3),                # ln1_w
        pl.BlockSpec((1, 1, D), l_w3),                # ln1_b
        pl.BlockSpec((1, D, Dff), l_w3),              # w1
        pl.BlockSpec((1, 1, Dff), l_w3),              # b1
        pl.BlockSpec((1, Dff, D), l_w3),              # w2
        pl.BlockSpec((1, 1, D), l_w3),                # b2
        pl.BlockSpec((1, 1, D), l_w3),                # ln2_w
        pl.BlockSpec((1, 1, D), l_w3),                # ln2_b
        pl.BlockSpec((1, D), const2),                 # final norm w
        pl.BlockSpec((1, D), const2),                 # final norm b
        pl.BlockSpec((D, Cout), const2),              # proj w
        pl.BlockSpec((1, Cout), const2),              # proj b
    ]
    out_specs = [
        pl.BlockSpec((Bt, L, Cout), b_row),
        pl.BlockSpec((Bt, H, L, L), bl_row4),
        pl.BlockSpec((Bt, H, L, L), bl_row4),
        pl.BlockSpec((Bt, L, H), bl_row3),
    ]
    out_shape = [
        jax.ShapeDtypeStruct((B, L, Cout), jnp.float32),
        jax.ShapeDtypeStruct((E * B, H, L, L), jnp.float32),
        jax.ShapeDtypeStruct((E * B, H, L, L), jnp.float32),
        jax.ShapeDtypeStruct((E * B, L, H), jnp.float32),
    ]
    out, ser, pri, sig = pl.pallas_call(
        _make_fused_kernel(Bt, L, D, H),
        grid=(nb, E),
        in_specs=in_specs,
        out_specs=out_specs,
        out_shape=out_shape,
        scratch_shapes=[
            pltpu.VMEM((Bt * L, D), jnp.float32),     # encoder state, resident across layers
        ],
        compiler_params=pltpu.CompilerParams(
            dimension_semantics=("parallel", "arbitrary"),
            vmem_limit_bytes=32 * 1024 * 1024),
    )(xu, add_emb, sp['tok_w'], sp['neg_half_dist2'],
      sp['wqkvs'], sp['bqkvs'], sp['wo'], sp['bo'],
      sp['ln1_w'], sp['ln1_b'], sp['w1'], sp['b1'], sp['w2'], sp['b2'],
      sp['ln2_w'], sp['ln2_b'], sp['norm_w'], sp['norm_b'],
      sp['proj_w'], sp['proj_b'])
    return (out,
            ser.reshape(E, B, H, L, L),
            pri.reshape(E, B, H, L, L),
            sig.reshape(E, B, L, H))


# ----------------------------------------------------------------------------
# Plain-JAX glue (embeddings, parameter stacking, reshapes)
# ----------------------------------------------------------------------------

def positional_embedding(L, d_model):
    pos = jnp.arange(L, dtype=jnp.float32)[:, None]
    i = jnp.arange(0, d_model, 2, dtype=jnp.float32)
    div = jnp.exp(i * (-math.log(10000.0) / d_model))
    pe = jnp.zeros((L, d_model), jnp.float32)
    pe = pe.at[:, 0::2].set(jnp.sin(pos * div))
    pe = pe.at[:, 1::2].set(jnp.cos(pos * div))
    return pe


def timestep_embedding(t, dim):
    half = dim // 2
    emb = math.log(10000.0) / (half - 1)
    emb = jnp.exp(jnp.arange(half, dtype=jnp.float32) * -emb)
    emb = t.astype(jnp.float32)[:, None] * emb[None, :]
    return jnp.concatenate([jnp.sin(emb), jnp.cos(emb)], axis=-1)   # (B, dim)


def prep_params(params):
    """Stack per-layer weights on a leading e_layers axis, fuse q/k/v/sigma projections
    (1/sqrt(Dh) score scale folded into wq/bq), lane-pad the fused width to a multiple of
    128, and cast MXU weights to bf16 (accumulation stays f32)."""
    D = params['d_model']
    layers = params['layers']
    H = layers[0]['n_heads']
    scale = jnp.float32(1.0 / math.sqrt(D // H))
    qkvs = 3 * D + H
    qkvs_pad = -(-qkvs // 128) * 128

    def fuse_w(lp):
        w = jnp.concatenate([lp['wq'] * scale, lp['wk'], lp['wv'], lp['ws']], axis=1)
        return jnp.pad(w, ((0, 0), (0, qkvs_pad - qkvs)))

    def fuse_b(lp):
        b = jnp.concatenate([lp['bq'] * scale, lp['bk'], lp['bv'], lp['bs']], axis=0)
        return jnp.pad(b, (0, qkvs_pad - qkvs))

    wqkvs = jnp.stack([fuse_w(lp) for lp in layers])
    bqkvs = jnp.stack([fuse_b(lp) for lp in layers])[:, None, :]

    stack_mat = lambda name: jnp.stack([lp[name] for lp in layers]).astype(jnp.bfloat16)
    stack_vec = lambda name: jnp.stack([lp[name] for lp in layers])[:, None, :]

    Cin = params['token_w'].shape[1]
    tok_w = jnp.transpose(params['token_w'], (2, 1, 0)).reshape(3 * Cin, D)

    return dict(
        tok_w=tok_w.astype(jnp.bfloat16),
        neg_half_dist2=(-0.5 * params['dist'] ** 2).astype(jnp.float32),
        wqkvs=wqkvs.astype(jnp.bfloat16),
        bqkvs=bqkvs.astype(jnp.float32),
        wo=stack_mat('wo'), bo=stack_vec('bo'),
        ln1_w=stack_vec('ln1_w'), ln1_b=stack_vec('ln1_b'),
        w1=stack_mat('w1'), b1=stack_vec('b1'),
        w2=stack_mat('w2'), b2=stack_vec('b2'),
        ln2_w=stack_vec('ln2_w'), ln2_b=stack_vec('ln2_b'),
        norm_w=params['norm_w'].reshape(1, D),
        norm_b=params['norm_b'].reshape(1, D),
        proj_w=params['proj_w'].astype(jnp.bfloat16),
        proj_b=params['proj_b'].reshape(1, -1),
    )


def diffusion_transformer_forward(params, x, sqrt_alphas_cumprod, t):
    # TODO(synk): DiffusionAnomalyAttention's exact use of sqrt_alphas_cumprod is not in the
    # provided source; it is accepted by the interface but unused in the attention math.
    B, L, Cin = x.shape
    D = params['d_model']
    layers = params['layers']
    E = len(layers)
    H = layers[0]['n_heads']
    Dff = layers[0]['w1'].shape[1]
    Cout = params['proj_w'].shape[1]

    sp = prep_params(params)

    # Conv1d(enc_in -> d_model, k=3, circular, no bias): circular-pad unfold; the matmul runs
    # inside the kernel at layer 0.  Shipped in bf16 (it is only ever an MXU operand).
    x_pad = jnp.concatenate([x[:, -1:, :], x, x[:, :1, :]], axis=1)
    xu = jnp.concatenate([x_pad[:, k:k + L, :] for k in range(3)], axis=-1)  # (B, L, 3*Cin)

    add_emb = params['pos_emb'][None] + timestep_embedding(t, D)[:, None, :]  # (B, L, D)

    out, series_all, prior_all, sig_all = fused_encoder(
        xu.astype(jnp.bfloat16), add_emb.astype(jnp.float32), sp,
        B, L, D, H, Dff, Cout)

    series_list = [series_all[l] for l in range(E)]
    prior_list = [prior_all[l] for l in range(E)]
    # sigma is a pure row-broadcast over the key axis; materialize it outside the kernel.
    sigma_list = [jnp.broadcast_to(
        jnp.transpose(sig_all[l], (0, 2, 1))[..., None], (B, H, L, L))
        for l in range(E)]
    return out, series_list, prior_list, sigma_list   # output_attention=True


def init_params(key, win_size, enc_in, c_out, d_model, n_heads, e_layers, d_ff):
    n_dense = 2 + 7 * e_layers
    keys = iter(jax.random.split(key, n_dense))

    def dense(shape, scale=0.05):
        return (scale * jax.random.normal(next(keys), shape)).astype(jnp.float32)

    idx = jnp.arange(win_size, dtype=jnp.float32)
    params = dict(
        d_model=d_model,
        token_w=dense((d_model, enc_in, 3)),
        pos_emb=positional_embedding(win_size, d_model),
        dist=jnp.abs(idx[:, None] - idx[None, :]),
        norm_w=jnp.ones((d_model,), jnp.float32),
        norm_b=jnp.zeros((d_model,), jnp.float32),
        proj_w=dense((d_model, c_out)),
        proj_b=jnp.zeros((c_out,), jnp.float32),
        layers=[],
    )
    for _ in range(e_layers):
        lp = dict(
            n_heads=n_heads,
            wq=dense((d_model, d_model)), bq=jnp.zeros((d_model,), jnp.float32),
            wk=dense((d_model, d_model)), bk=jnp.zeros((d_model,), jnp.float32),
            wv=dense((d_model, d_model)), bv=jnp.zeros((d_model,), jnp.float32),
            ws=dense((d_model, n_heads)), bs=jnp.zeros((n_heads,), jnp.float32),
            wo=dense((d_model, d_model)), bo=jnp.zeros((d_model,), jnp.float32),
            ln1_w=jnp.ones((d_model,), jnp.float32), ln1_b=jnp.zeros((d_model,), jnp.float32),
            w1=dense((d_model, d_ff)), b1=jnp.zeros((d_ff,), jnp.float32),
            w2=dense((d_ff, d_model)), b2=jnp.zeros((d_model,), jnp.float32),
            ln2_w=jnp.ones((d_model,), jnp.float32), ln2_b=jnp.zeros((d_model,), jnp.float32),
        )
        params['layers'].append(lp)
    return params


if __name__ == "__main__":
    key = jax.random.PRNGKey(0)
    kp, kx = jax.random.split(key, 2)

    # small shapes: win_size=16, enc_in=4, c_out=4, d_model=32, n_heads=4, e_layers=2, d_ff=32
    B, L, Cin, Cout = 2, 16, 4, 4
    D, H, E_LAYERS, Dff = 32, 4, 2, 32

    params = init_params(kp, L, Cin, Cout, D, H, E_LAYERS, Dff)
    x = jax.random.normal(kx, (B, L, Cin), jnp.float32)
    t = jnp.array([3, 7], dtype=jnp.int32)
    sqrt_alphas_cumprod = jnp.linspace(1.0, 0.1, 100).astype(jnp.float32)

    out, series, prior, sigmas = diffusion_transformer_forward(
        params, x, sqrt_alphas_cumprod, t)

    jax.block_until_ready(out)
    jax.block_until_ready(series[-1])
    jax.block_until_ready(prior[-1])
    jax.block_until_ready(sigmas[-1])

    assert out.shape == (B, L, Cout)
    assert series[0].shape == (B, H, L, L)
    assert prior[0].shape == (B, H, L, L)
    assert sigmas[0].shape == (B, H, L, L)
    print("KERNEL_OK")
</pallas_src>

<mosaic_0001>
module attributes {stable_mosaic.version = 11 : i64} {
  func.func @kernel(%arg0: i32, %arg1: i32, %arg2: memref<2x16x12xbf16, #tpu.memory_space<vmem>>, %arg3: memref<2x16x32xf32, #tpu.memory_space<vmem>>, %arg4: memref<12x32xbf16, #tpu.memory_space<vmem>>, %arg5: memref<16x16xf32, #tpu.memory_space<vmem>>, %arg6: memref<1x32x128xbf16, #tpu.memory_space<vmem>>, %arg7: memref<1x1x128xf32, #tpu.memory_space<vmem>>, %arg8: memref<1x32x32xbf16, #tpu.memory_space<vmem>>, %arg9: memref<1x1x32xf32, #tpu.memory_space<vmem>>, %arg10: memref<1x1x32xf32, #tpu.memory_space<vmem>>, %arg11: memref<1x1x32xf32, #tpu.memory_space<vmem>>, %arg12: memref<1x32x32xbf16, #tpu.memory_space<vmem>>, %arg13: memref<1x1x32xf32, #tpu.memory_space<vmem>>, %arg14: memref<1x32x32xbf16, #tpu.memory_space<vmem>>, %arg15: memref<1x1x32xf32, #tpu.memory_space<vmem>>, %arg16: memref<1x1x32xf32, #tpu.memory_space<vmem>>, %arg17: memref<1x1x32xf32, #tpu.memory_space<vmem>>, %arg18: memref<1x32xf32, #tpu.memory_space<vmem>>, %arg19: memref<1x32xf32, #tpu.memory_space<vmem>>, %arg20: memref<32x4xbf16, #tpu.memory_space<vmem>>, %arg21: memref<1x4xf32, #tpu.memory_space<vmem>>, %arg22: memref<2x16x4xf32, #tpu.memory_space<vmem>>, %arg23: memref<2x4x16x16xf32, #tpu.memory_space<vmem>>, %arg24: memref<2x4x16x16xf32, #tpu.memory_space<vmem>>, %arg25: memref<2x16x4xf32, #tpu.memory_space<vmem>>, %arg26: memref<32x32xf32, #tpu.memory_space<vmem>>) attributes {dimension_semantics = [#tpu.dimension_semantics<parallel>, #tpu.dimension_semantics<arbitrary>], iteration_bounds = array<i64: 1, 2>, scalar_prefetch = 0 : i64, scratch_operands = 1 : i64, tpu.core_type = #tpu.core_type<tc>, window_params = [{transform_indices = @transform_0, window_bounds = array<i64: 2, 16, 12>}, {transform_indices = @transform_1, window_bounds = array<i64: 2, 16, 32>}, {pipeline_mode = #tpu.pipeline_mode<synchronous>, transform_indices = @transform_2, window_bounds = array<i64: 12, 32>}, {pipeline_mode = #tpu.pipeline_mode<synchronous>, transform_indices = @transform_3, window_bounds = array<i64: 16, 16>}, {transform_indices = @transform_4, window_bounds = array<i64: 1, 32, 128>}, {transform_indices = @transform_5, window_bounds = array<i64: 1, 1, 128>}, {transform_indices = @transform_6, window_bounds = array<i64: 1, 32, 32>}, {transform_indices = @transform_7, window_bounds = array<i64: 1, 1, 32>}, {transform_indices = @transform_8, window_bounds = array<i64: 1, 1, 32>}, {transform_indices = @transform_9, window_bounds = array<i64: 1, 1, 32>}, {transform_indices = @transform_10, window_bounds = array<i64: 1, 32, 32>}, {transform_indices = @transform_11, window_bounds = array<i64: 1, 1, 32>}, {transform_indices = @transform_12, window_bounds = array<i64: 1, 32, 32>}, {transform_indices = @transform_13, window_bounds = array<i64: 1, 1, 32>}, {transform_indices = @transform_14, window_bounds = array<i64: 1, 1, 32>}, {transform_indices = @transform_15, window_bounds = array<i64: 1, 1, 32>}, {pipeline_mode = #tpu.pipeline_mode<synchronous>, transform_indices = @transform_16, window_bounds = array<i64: 1, 32>}, {pipeline_mode = #tpu.pipeline_mode<synchronous>, transform_indices = @transform_17, window_bounds = array<i64: 1, 32>}, {pipeline_mode = #tpu.pipeline_mode<synchronous>, transform_indices = @transform_18, window_bounds = array<i64: 32, 4>}, {pipeline_mode = #tpu.pipeline_mode<synchronous>, transform_indices = @transform_19, window_bounds = array<i64: 1, 4>}, {transform_indices = @transform_20, window_bounds = array<i64: 2, 16, 4>}, {transform_indices = @transform_21, window_bounds = array<i64: 2, 4, 16, 16>}, {transform_indices = @transform_22, window_bounds = array<i64: 2, 4, 16, 16>}, {transform_indices = @transform_23, window_bounds = array<i64: 2, 16, 4>}]} {
    %c0_i32 = arith.constant 0 : i32
    %0 = arith.cmpi eq, %arg1, %c0_i32 : i32
    %1 = arith.extui %0 : i1 to i32
    %c0_i32_0 = arith.constant 0 : i32
    %2 = arith.cmpi ne, %1, %c0_i32_0 : i32
    scf.if %2 {
      %c0_100 = arith.constant 0 : index
      %c0_101 = arith.constant 0 : index
      %c0_102 = arith.constant 0 : index
      %264 = vector.load %arg2[%c0_100, %c0_101, %c0_102] : memref<2x16x12xbf16, #tpu.memory_space<vmem>>, vector<2x16x12xbf16>
      %265 = vector.shape_cast %264 : vector<2x16x12xbf16> to vector<32x12xbf16>
      %c0_103 = arith.constant 0 : index
      %c0_104 = arith.constant 0 : index
      %266 = vector.load %arg4[%c0_103, %c0_104] : memref<12x32xbf16, #tpu.memory_space<vmem>>, vector<12x32xbf16>
      %cst_105 = arith.constant dense<0.000000e+00> : vector<32x32xf32>
      %267 = tpu.matmul %265, %266, %cst_105 {dimension_numbers = #tpu.dot_dimension_numbers<[1], [0], [0], [1], [0, 0, 1, 1], [], []>} : vector<32x12xbf16>, vector<12x32xbf16>, vector<32x32xf32> -> vector<32x32xf32>
      %c0_106 = arith.constant 0 : index
      %c0_107 = arith.constant 0 : index
      %c0_108 = arith.constant 0 : index
      %268 = vector.load %arg3[%c0_106, %c0_107, %c0_108] : memref<2x16x32xf32, #tpu.memory_space<vmem>>, vector<2x16x32xf32>
      %269 = vector.shape_cast %268 : vector<2x16x32xf32> to vector<32x32xf32>
      %270 = arith.addf %267, %269 : vector<32x32xf32>
      %c0_109 = arith.constant 0 : index
      %c0_110 = arith.constant 0 : index
      %271 = vector.load %arg26[%c0_109, %c0_110] : memref<32x32xf32, #tpu.memory_space<vmem>>, vector<32x32xf32>
      tpu.vector_store %arg26[%c0_109, %c0_110], %270 {strides = array<i32>} : memref<32x32xf32, #tpu.memory_space<vmem>>, vector<32x32xf32>,
    } else {
    }
    %c0 = arith.constant 0 : index
    %c0_1 = arith.constant 0 : index
    %3 = vector.load %arg26[%c0, %c0_1] : memref<32x32xf32, #tpu.memory_space<vmem>>, vector<32x32xf32>
    %4 = arith.truncf %3 : vector<32x32xf32> to vector<32x32xbf16>
    %c0_2 = arith.constant 0 : index
    %c0_3 = arith.constant 0 : index
    %c0_4 = arith.constant 0 : index
    %5 = vector.load %arg6[%c0_2, %c0_3, %c0_4] : memref<1x32x128xbf16, #tpu.memory_space<vmem>>, vector<1x32x128xbf16>
    %6 = vector.shape_cast %5 : vector<1x32x128xbf16> to vector<32x128xbf16>
    %cst = arith.constant dense<0.000000e+00> : vector<32x128xf32>
    %7 = tpu.matmul %4, %6, %cst {dimension_numbers = #tpu.dot_dimension_numbers<[1], [0], [0], [1], [0, 0, 1, 1], [], []>} : vector<32x32xbf16>, vector<32x128xbf16>, vector<32x128xf32> -> vector<32x128xf32>
    %c0_5 = arith.constant 0 : index
    %c0_6 = arith.constant 0 : index
    %c0_7 = arith.constant 0 : index
    %8 = vector.load %arg7[%c0_5, %c0_6, %c0_7] : memref<1x1x128xf32, #tpu.memory_space<vmem>>, vector<1x1x128xf32>
    %9 = vector.shape_cast %8 : vector<1x1x128xf32> to vector<1x128xf32>
    %10 = vector.broadcast %9 : vector<1x128xf32> to vector<32x128xf32>
    %11 = arith.addf %7, %10 : vector<32x128xf32>
    %12 = vector.extract_strided_slice %11 {offsets = [0, 96], sizes = [32, 4], strides = [1, 1]} : vector<32x128xf32> to vector<32x4xf32>
    %cst_8 = arith.constant 5.000000e+00 : f32
    %13 = vector.broadcast %cst_8 : f32 to vector<32x4xf32>
    %14 = arith.mulf %12, %13 : vector<32x4xf32>
    %15 = arith.negf %14 : vector<32x4xf32>
    %16 = math.exp %15 : vector<32x4xf32>
    %cst_9 = arith.constant 1.000000e+00 : f32
    %17 = vector.broadcast %cst_9 : f32 to vector<32x4xf32>
    %18 = arith.addf %17, %16 : vector<32x4xf32>
    %19 = arith.divf %17, %18 : vector<32x4xf32>
    %cst_10 = arith.constant 9.99999974E-6 : f32
    %20 = vector.broadcast %cst_10 : f32 to vector<32x4xf32>
    %21 = arith.addf %19, %20 : vector<32x4xf32>
    %cst_11 = arith.constant 1.09861231 : f32
    %22 = vector.broadcast %cst_11 : f32 to vector<32x4xf32>
    %23 = arith.mulf %21, %22 : vector<32x4xf32>
    %24 = math.exp %23 : vector<32x4xf32>
    %cst_12 = arith.constant 1.000000e+00 : f32
    %25 = vector.broadcast %cst_12 : f32 to vector<32x4xf32>
    %26 = arith.subf %24, %25 : vector<32x4xf32>
    %27 = vector.shape_cast %26 : vector<32x4xf32> to vector<2x16x4xf32>
    %c0_13 = arith.constant 0 : index
    %c0_14 = arith.constant 0 : index
    %c0_15 = arith.constant 0 : index
    %28 = vector.load %arg25[%c0_13, %c0_14, %c0_15] : memref<2x16x4xf32, #tpu.memory_space<vmem>>, vector<2x16x4xf32>
    tpu.vector_store %arg25[%c0_13, %c0_14, %c0_15], %27 {strides = array<i32>} : memref<2x16x4xf32, #tpu.memory_space<vmem>>, vector<2x16x4xf32>,
    %29 = vector.extract_strided_slice %11 {offsets = [0, 0], sizes = [32, 32], strides = [1, 1]} : vector<32x128xf32> to vector<32x32xf32>
    %30 = arith.truncf %29 : vector<32x32xf32> to vector<32x32xbf16>
    %31 = vector.shape_cast %30 : vector<32x32xbf16> to vector<2x16x32xbf16>
    %32 = vector.extract_strided_slice %11 {offsets = [0, 32], sizes = [32, 32], strides = [1, 1]} : vector<32x128xf32> to vector<32x32xf32>
    %33 = arith.truncf %32 : vector<32x32xf32> to vector<32x32xbf16>
    %34 = vector.shape_cast %33 : vector<32x32xbf16> to vector<2x16x32xbf16>
    %35 = vector.extract_strided_slice %11 {offsets = [0, 64], sizes = [32, 32], strides = [1, 1]} : vector<32x128xf32> to vector<32x32xf32>
    %36 = arith.truncf %35 : vector<32x32xf32> to vector<32x32xbf16>
    %37 = vector.shape_cast %36 : vector<32x32xbf16> to vector<2x16x32xbf16>
    %c0_16 = arith.constant 0 : index
    %c0_17 = arith.constant 0 : index
    %38 = vector.load %arg5[%c0_16, %c0_17] : memref<16x16xf32, #tpu.memory_space<vmem>>, vector<16x16xf32>
    %39 = vector.extract_strided_slice %31 {offsets = [0, 0, 0], sizes = [2, 16, 8], strides = [1, 1, 1]} : vector<2x16x32xbf16> to vector<2x16x8xbf16>
    %40 = vector.extract_strided_slice %34 {offsets = [0, 0, 0], sizes = [2, 16, 8], strides = [1, 1, 1]} : vector<2x16x32xbf16> to vector<2x16x8xbf16>
    %41 = vector.extract_strided_slice %37 {offsets = [0, 0, 0], sizes = [2, 16, 8], strides = [1, 1, 1]} : vector<2x16x32xbf16> to vector<2x16x8xbf16>
    "tpu.trace_start"() <{level = 10 : i32, message = "bld,bmd->blm"}> : () -> ()
    %cst_18 = arith.constant dense<0.000000e+00> : vector<2x16x16xf32>
    %42 = tpu.matmul %39, %40, %cst_18 {dimension_numbers = #tpu.dot_dimension_numbers<[2], [2], [1], [1], [0, 0, 0, 1, 1, 1], [0], [0]>} : vector<2x16x8xbf16>, vector<2x16x8xbf16>, vector<2x16x16xf32> -> vector<2x16x16xf32>
    "tpu.trace_stop"() : () -> ()
    %cst_19 = arith.constant dense<0xFF800000> : vector<2x16xf32>
    %43 = vector.multi_reduction <maximumf>, %42, %cst_19 [2] : vector<2x16x16xf32> to vector<2x16xf32>
    %44 = vector.shape_cast %43 : vector<2x16xf32> to vector<2x16x1xf32>
    %45 = vector.broadcast %44 : vector<2x16x1xf32> to vector<2x16x16xf32>
    %46 = arith.subf %42, %45 : vector<2x16x16xf32>
    %47 = math.exp %46 : vector<2x16x16xf32>
    %cst_20 = arith.constant dense<0.000000e+00> : vector<2x16xf32>
    %48 = vector.multi_reduction <add>, %47, %cst_20 [2] : vector<2x16x16xf32> to vector<2x16xf32>
    %49 = vector.shape_cast %48 : vector<2x16xf32> to vector<2x16x1xf32>
    %50 = tpu.reciprocal %49 {approx = true} : vector<2x16x1xf32> -> vector<2x16x1xf32>
    %51 = vector.broadcast %50 : vector<2x16x1xf32> to vector<2x16x16xf32>
    %52 = arith.mulf %47, %51 : vector<2x16x16xf32>
    %53 = vector.extract_strided_slice %27 {offsets = [0, 0, 0], sizes = [2, 16, 1], strides = [1, 1, 1]} : vector<2x16x4xf32> to vector<2x16x1xf32>
    %cst_21 = arith.constant 1.000000e+00 : f32
    %54 = vector.broadcast %cst_21 : f32 to vector<2x16x1xf32>
    %55 = arith.divf %54, %53 : vector<2x16x1xf32>
    %cst_22 = arith.constant 0.398942292 : f32
    %56 = vector.broadcast %cst_22 : f32 to vector<2x16x1xf32>
    %57 = arith.mulf %56, %55 : vector<2x16x1xf32>
    %58 = vector.shape_cast %38 : vector<16x16xf32> to vector<1x16x16xf32>
    %59 = arith.mulf %55, %55 : vector<2x16x1xf32>
    %60 = vector.broadcast %58 : vector<1x16x16xf32> to vector<2x16x16xf32>
    %61 = vector.broadcast %59 : vector<2x16x1xf32> to vector<2x16x16xf32>
    %62 = arith.mulf %60, %61 : vector<2x16x16xf32>
    %63 = math.exp %62 : vector<2x16x16xf32>
    %64 = vector.broadcast %57 : vector<2x16x1xf32> to vector<2x16x16xf32>
    %65 = arith.mulf %64, %63 : vector<2x16x16xf32>
    %66 = arith.truncf %52 : vector<2x16x16xf32> to vector<2x16x16xbf16>
    "tpu.trace_start"() <{level = 10 : i32, message = "blm,bmd->bld"}> : () -> ()
    %cst_23 = arith.constant dense<0.000000e+00> : vector<2x16x8xf32>
    %67 = tpu.matmul %66, %41, %cst_23 {dimension_numbers = #tpu.dot_dimension_numbers<[2], [1], [1], [2], [0, 0, 0, 1, 1, 2], [0], [0]>} : vector<2x16x16xbf16>, vector<2x16x8xbf16>, vector<2x16x8xf32> -> vector<2x16x8xf32>
    "tpu.trace_stop"() : () -> ()
    %68 = vector.extract_strided_slice %31 {offsets = [0, 0, 8], sizes = [2, 16, 8], strides = [1, 1, 1]} : vector<2x16x32xbf16> to vector<2x16x8xbf16>
    %69 = vector.extract_strided_slice %34 {offsets = [0, 0, 8], sizes = [2, 16, 8], strides = [1, 1, 1]} : vector<2x16x32xbf16> to vector<2x16x8xbf16>
    %70 = vector.extract_strided_slice %37 {offsets = [0, 0, 8], sizes = [2, 16, 8], strides = [1, 1, 1]} : vector<2x16x32xbf16> to vector<2x16x8xbf16>
    "tpu.trace_start"() <{level = 10 : i32, message = "bld,bmd->blm"}> : () -> ()
    %cst_24 = arith.constant dense<0.000000e+00> : vector<2x16x16xf32>
    %71 = tpu.matmul %68, %69, %cst_24 {dimension_numbers = #tpu.dot_dimension_numbers<[2], [2], [1], [1], [0, 0, 0, 1, 1, 1], [0], [0]>} : vector<2x16x8xbf16>, vector<2x16x8xbf16>, vector<2x16x16xf32> -> vector<2x16x16xf32>
    "tpu.trace_stop"() : () -> ()
    %cst_25 = arith.constant dense<0xFF800000> : vector<2x16xf32>
    %72 = vector.multi_reduction <maximumf>, %71, %cst_25 [2] : vector<2x16x16xf32> to vector<2x16xf32>
    %73 = vector.shape_cast %72 : vector<2x16xf32> to vector<2x16x1xf32>
    %74 = vector.broadcast %73 : vector<2x16x1xf32> to vector<2x16x16xf32>
    %75 = arith.subf %71, %74 : vector<2x16x16xf32>
    %76 = math.exp %75 : vector<2x16x16xf32>
    %cst_26 = arith.constant dense<0.000000e+00> : vector<2x16xf32>
    %77 = vector.multi_reduction <add>, %76, %cst_26 [2] : vector<2x16x16xf32> to vector<2x16xf32>
    %78 = vector.shape_cast %77 : vector<2x16xf32> to vector<2x16x1xf32>
    %79 = tpu.reciprocal %78 {approx = true} : vector<2x16x1xf32> -> vector<2x16x1xf32>
    %80 = vector.broadcast %79 : vector<2x16x1xf32> to vector<2x16x16xf32>
    %81 = arith.mulf %76, %80 : vector<2x16x16xf32>
    %82 = vector.extract_strided_slice %27 {offsets = [0, 0, 1], sizes = [2, 16, 1], strides = [1, 1, 1]} : vector<2x16x4xf32> to vector<2x16x1xf32>
    %cst_27 = arith.constant 1.000000e+00 : f32
    %83 = vector.broadcast %cst_27 : f32 to vector<2x16x1xf32>
    %84 = arith.divf %83, %82 : vector<2x16x1xf32>
    %cst_28 = arith.constant 0.398942292 : f32
    %85 = vector.broadcast %cst_28 : f32 to vector<2x16x1xf32>
    %86 = arith.mulf %85, %84 : vector<2x16x1xf32>
    %87 = vector.shape_cast %38 : vector<16x16xf32> to vector<1x16x16xf32>
    %88 = arith.mulf %84, %84 : vector<2x16x1xf32>
    %89 = vector.broadcast %87 : vector<1x16x16xf32> to vector<2x16x16xf32>
    %90 = vector.broadcast %88 : vector<2x16x1xf32> to vector<2x16x16xf32>
    %91 = arith.mulf %89, %90 : vector<2x16x16xf32>
    %92 = math.exp %91 : vector<2x16x16xf32>
    %93 = vector.broadcast %86 : vector<2x16x1xf32> to vector<2x16x16xf32>
    %94 = arith.mulf %93, %92 : vector<2x16x16xf32>
    %95 = arith.truncf %81 : vector<2x16x16xf32> to vector<2x16x16xbf16>
    "tpu.trace_start"() <{level = 10 : i32, message = "blm,bmd->bld"}> : () -> ()
    %cst_29 = arith.constant dense<0.000000e+00> : vector<2x16x8xf32>
    %96 = tpu.matmul %95, %70, %cst_29 {dimension_numbers = #tpu.dot_dimension_numbers<[2], [1], [1], [2], [0, 0, 0, 1, 1, 2], [0], [0]>} : vector<2x16x16xbf16>, vector<2x16x8xbf16>, vector<2x16x8xf32> -> vector<2x16x8xf32>
    "tpu.trace_stop"() : () -> ()
    %97 = vector.extract_strided_slice %31 {offsets = [0, 0, 16], sizes = [2, 16, 8], strides = [1, 1, 1]} : vector<2x16x32xbf16> to vector<2x16x8xbf16>
    %98 = vector.extract_strided_slice %34 {offsets = [0, 0, 16], sizes = [2, 16, 8], strides = [1, 1, 1]} : vector<2x16x32xbf16> to vector<2x16x8xbf16>
    %99 = vector.extract_strided_slice %37 {offsets = [0, 0, 16], sizes = [2, 16, 8], strides = [1, 1, 1]} : vector<2x16x32xbf16> to vector<2x16x8xbf16>
    "tpu.trace_start"() <{level = 10 : i32, message = "bld,bmd->blm"}> : () -> ()
    %cst_30 = arith.constant dense<0.000000e+00> : vector<2x16x16xf32>
    %100 = tpu.matmul %97, %98, %cst_30 {dimension_numbers = #tpu.dot_dimension_numbers<[2], [2], [1], [1], [0, 0, 0, 1, 1, 1], [0], [0]>} : vector<2x16x8xbf16>, vector<2x16x8xbf16>, vector<2x16x16xf32> -> vector<2x16x16xf32>
    "tpu.trace_stop"() : () -> ()
    %cst_31 = arith.constant dense<0xFF800000> : vector<2x16xf32>
    %101 = vector.multi_reduction <maximumf>, %100, %cst_31 [2] : vector<2x16x16xf32> to vector<2x16xf32>
    %102 = vector.shape_cast %101 : vector<2x16xf32> to vector<2x16x1xf32>
    %103 = vector.broadcast %102 : vector<2x16x1xf32> to vector<2x16x16xf32>
    %104 = arith.subf %100, %103 : vector<2x16x16xf32>
    %105 = math.exp %104 : vector<2x16x16xf32>
    %cst_32 = arith.constant dense<0.000000e+00> : vector<2x16xf32>
    %106 = vector.multi_reduction <add>, %105, %cst_32 [2] : vector<2x16x16xf32> to vector<2x16xf32>
    %107 = vector.shape_cast %106 : vector<2x16xf32> to vector<2x16x1xf32>
    %108 = tpu.reciprocal %107 {approx = true} : vector<2x16x1xf32> -> vector<2x16x1xf32>
    %109 = vector.broadcast %108 : vector<2x16x1xf32> to vector<2x16x16xf32>
    %110 = arith.mulf %105, %109 : vector<2x16x16xf32>
    %111 = vector.extract_strided_slice %27 {offsets = [0, 0, 2], sizes = [2, 16, 1], strides = [1, 1, 1]} : vector<2x16x4xf32> to vector<2x16x1xf32>
    %cst_33 = arith.constant 1.000000e+00 : f32
    %112 = vector.broadcast %cst_33 : f32 to vector<2x16x1xf32>
    %113 = arith.divf %112, %111 : vector<2x16x1xf32>
    %cst_34 = arith.constant 0.398942292 : f32
    %114 = vector.broadcast %cst_34 : f32 to vector<2x16x1xf32>
    %115 = arith.mulf %114, %113 : vector<2x16x1xf32>
    %116 = vector.shape_cast %38 : vector<16x16xf32> to vector<1x16x16xf32>
    %117 = arith.mulf %113, %113 : vector<2x16x1xf32>
    %118 = vector.broadcast %116 : vector<1x16x16xf32> to vector<2x16x16xf32>
    %119 = vector.broadcast %117 : vector<2x16x1xf32> to vector<2x16x16xf32>
    %120 = arith.mulf %118, %119 : vector<2x16x16xf32>
    %121 = math.exp %120 : vector<2x16x16xf32>
    %122 = vector.broadcast %115 : vector<2x16x1xf32> to vector<2x16x16xf32>
    %123 = arith.mulf %122, %121 : vector<2x16x16xf32>
    %124 = arith.truncf %110 : vector<2x16x16xf32> to vector<2x16x16xbf16>
    "tpu.trace_start"() <{level = 10 : i32, message = "blm,bmd->bld"}> : () -> ()
    %cst_35 = arith.constant dense<0.000000e+00> : vector<2x16x8xf32>
    %125 = tpu.matmul %124, %99, %cst_35 {dimension_numbers = #tpu.dot_dimension_numbers<[2], [1], [1], [2], [0, 0, 0, 1, 1, 2], [0], [0]>} : vector<2x16x16xbf16>, vector<2x16x8xbf16>, vector<2x16x8xf32> -> vector<2x16x8xf32>
    "tpu.trace_stop"() : () -> ()
    %126 = vector.extract_strided_slice %31 {offsets = [0, 0, 24], sizes = [2, 16, 8], strides = [1, 1, 1]} : vector<2x16x32xbf16> to vector<2x16x8xbf16>
    %127 = vector.extract_strided_slice %34 {offsets = [0, 0, 24], sizes = [2, 16, 8], strides = [1, 1, 1]} : vector<2x16x32xbf16> to vector<2x16x8xbf16>
    %128 = vector.extract_strided_slice %37 {offsets = [0, 0, 24], sizes = [2, 16, 8], strides = [1, 1, 1]} : vector<2x16x32xbf16> to vector<2x16x8xbf16>
    "tpu.trace_start"() <{level = 10 : i32, message = "bld,bmd->blm"}> : () -> ()
    %cst_36 = arith.constant dense<0.000000e+00> : vector<2x16x16xf32>
    %129 = tpu.matmul %126, %127, %cst_36 {dimension_numbers = #tpu.dot_dimension_numbers<[2], [2], [1], [1], [0, 0, 0, 1, 1, 1], [0], [0]>} : vector<2x16x8xbf16>, vector<2x16x8xbf16>, vector<2x16x16xf32> -> vector<2x16x16xf32>
    "tpu.trace_stop"() : () -> ()
    %cst_37 = arith.constant dense<0xFF800000> : vector<2x16xf32>
    %130 = vector.multi_reduction <maximumf>, %129, %cst_37 [2] : vector<2x16x16xf32> to vector<2x16xf32>
    %131 = vector.shape_cast %130 : vector<2x16xf32> to vector<2x16x1xf32>
    %132 = vector.broadcast %131 : vector<2x16x1xf32> to vector<2x16x16xf32>
    %133 = arith.subf %129, %132 : vector<2x16x16xf32>
    %134 = math.exp %133 : vector<2x16x16xf32>
    %cst_38 = arith.constant dense<0.000000e+00> : vector<2x16xf32>
    %135 = vector.multi_reduction <add>, %134, %cst_38 [2] : vector<2x16x16xf32> to vector<2x16xf32>
    %136 = vector.shape_cast %135 : vector<2x16xf32> to vector<2x16x1xf32>
    %137 = tpu.reciprocal %136 {approx = true} : vector<2x16x1xf32> -> vector<2x16x1xf32>
    %138 = vector.broadcast %137 : vector<2x16x1xf32> to vector<2x16x16xf32>
    %139 = arith.mulf %134, %138 : vector<2x16x16xf32>
    %140 = vector.extract_strided_slice %27 {offsets = [0, 0, 3], sizes = [2, 16, 1], strides = [1, 1, 1]} : vector<2x16x4xf32> to vector<2x16x1xf32>
    %cst_39 = arith.constant 1.000000e+00 : f32
    %141 = vector.broadcast %cst_39 : f32 to vector<2x16x1xf32>
    %142 = arith.divf %141, %140 : vector<2x16x1xf32>
    %cst_40 = arith.constant 0.398942292 : f32
    %143 = vector.broadcast %cst_40 : f32 to vector<2x16x1xf32>
    %144 = arith.mulf %143, %142 : vector<2x16x1xf32>
    %145 = vector.shape_cast %38 : vector<16x16xf32> to vector<1x16x16xf32>
    %146 = arith.mulf %142, %142 : vector<2x16x1xf32>
    %147 = vector.broadcast %145 : vector<1x16x16xf32> to vector<2x16x16xf32>
    %148 = vector.broadcast %146 : vector<2x16x1xf32> to vector<2x16x16xf32>
    %149 = arith.mulf %147, %148 : vector<2x16x16xf32>
    %150 = math.exp %149 : vector<2x16x16xf32>
    %151 = vector.broadcast %144 : vector<2x16x1xf32> to vector<2x16x16xf32>
    %152 = arith.mulf %151, %150 : vector<2x16x16xf32>
    %153 = arith.truncf %139 : vector<2x16x16xf32> to vector<2x16x16xbf16>
    "tpu.trace_start"() <{level = 10 : i32, message = "blm,bmd->bld"}> : () -> ()
    %cst_41 = arith.constant dense<0.000000e+00> : vector<2x16x8xf32>
    %154 = tpu.matmul %153, %128, %cst_41 {dimension_numbers = #tpu.dot_dimension_numbers<[2], [1], [1], [2], [0, 0, 0, 1, 1, 2], [0], [0]>} : vector<2x16x16xbf16>, vector<2x16x8xbf16>, vector<2x16x8xf32> -> vector<2x16x8xf32>
    "tpu.trace_stop"() : () -> ()
    %155 = vector.shape_cast %52 : vector<2x16x16xf32> to vector<2x1x16x16xf32>
    %156 = vector.shape_cast %81 : vector<2x16x16xf32> to vector<2x1x16x16xf32>
    %157 = vector.shape_cast %110 : vector<2x16x16xf32> to vector<2x1x16x16xf32>
    %158 = vector.shape_cast %139 : vector<2x16x16xf32> to vector<2x1x16x16xf32>
    %159 = tpu.concatenate %155, %156, %157, %158 in 1 : vector<2x1x16x16xf32>, vector<2x1x16x16xf32>, vector<2x1x16x16xf32>, vector<2x1x16x16xf32> -> vector<2x4x16x16xf32>
    %c0_42 = arith.constant 0 : index
    %c0_43 = arith.constant 0 : index
    %c0_44 = arith.constant 0 : index
    %c0_45 = arith.constant 0 : index
    %160 = vector.load %arg23[%c0_42, %c0_43, %c0_44, %c0_45] : memref<2x4x16x16xf32, #tpu.memory_space<vmem>>, vector<2x4x16x16xf32>
    tpu.vector_store %arg23[%c0_42, %c0_43, %c0_44, %c0_45], %159 {strides = array<i32>} : memref<2x4x16x16xf32, #tpu.memory_space<vmem>>, vector<2x4x16x16xf32>,
    %161 = vector.shape_cast %65 : vector<2x16x16xf32> to vector<2x1x16x16xf32>
    %162 = vector.shape_cast %94 : vector<2x16x16xf32> to vector<2x1x16x16xf32>
    %163 = vector.shape_cast %123 : vector<2x16x16xf32> to vector<2x1x16x16xf32>
    %164 = vector.shape_cast %152 : vector<2x16x16xf32> to vector<2x1x16x16xf32>
    %165 = tpu.concatenate %161, %162, %163, %164 in 1 : vector<2x1x16x16xf32>, vector<2x1x16x16xf32>, vector<2x1x16x16xf32>, vector<2x1x16x16xf32> -> vector<2x4x16x16xf32>
    %c0_46 = arith.constant 0 : index
    %c0_47 = arith.constant 0 : index
    %c0_48 = arith.constant 0 : index
    %c0_49 = arith.constant 0 : index
    %166 = vector.load %arg24[%c0_46, %c0_47, %c0_48, %c0_49] : memref<2x4x16x16xf32, #tpu.memory_space<vmem>>, vector<2x4x16x16xf32>
    tpu.vector_store %arg24[%c0_46, %c0_47, %c0_48, %c0_49], %165 {strides = array<i32>} : memref<2x4x16x16xf32, #tpu.memory_space<vmem>>, vector<2x4x16x16xf32>,
    %167 = tpu.concatenate %67, %96, %125, %154 in 2 : vector<2x16x8xf32>, vector<2x16x8xf32>, vector<2x16x8xf32>, vector<2x16x8xf32> -> vector<2x16x32xf32>
    %168 = vector.shape_cast %167 : vector<2x16x32xf32> to vector<32x32xf32>
    %169 = arith.truncf %168 : vector<32x32xf32> to vector<32x32xbf16>
    %c0_50 = arith.constant 0 : index
    %c0_51 = arith.constant 0 : index
    %c0_52 = arith.constant 0 : index
    %170 = vector.load %arg8[%c0_50, %c0_51, %c0_52] : memref<1x32x32xbf16, #tpu.memory_space<vmem>>, vector<1x32x32xbf16>
    %171 = vector.shape_cast %170 : vector<1x32x32xbf16> to vector<32x32xbf16>
    %cst_53 = arith.constant dense<0.000000e+00> : vector<32x32xf32>
    %172 = tpu.matmul %169, %171, %cst_53 {dimension_numbers = #tpu.dot_dimension_numbers<[1], [0], [0], [1], [0, 0, 1, 1], [], []>} : vector<32x32xbf16>, vector<32x32xbf16>, vector<32x32xf32> -> vector<32x32xf32>
    %c0_54 = arith.constant 0 : index
    %c0_55 = arith.constant 0 : index
    %c0_56 = arith.constant 0 : index
    %173 = vector.load %arg9[%c0_54, %c0_55, %c0_56] : memref<1x1x32xf32, #tpu.memory_space<vmem>>, vector<1x1x32xf32>
    %174 = vector.shape_cast %173 : vector<1x1x32xf32> to vector<1x32xf32>
    %175 = vector.broadcast %174 : vector<1x32xf32> to vector<32x32xf32>
    %176 = arith.addf %172, %175 : vector<32x32xf32>
    %177 = arith.addf %3, %176 : vector<32x32xf32>
    %c0_57 = arith.constant 0 : index
    %c0_58 = arith.constant 0 : index
    %c0_59 = arith.constant 0 : index
    %178 = vector.load %arg10[%c0_57, %c0_58, %c0_59] : memref<1x1x32xf32, #tpu.memory_space<vmem>>, vector<1x1x32xf32>
    %179 = vector.shape_cast %178 : vector<1x1x32xf32> to vector<1x32xf32>
    %c0_60 = arith.constant 0 : index
    %c0_61 = arith.constant 0 : index
    %c0_62 = arith.constant 0 : index
    %180 = vector.load %arg11[%c0_60, %c0_61, %c0_62] : memref<1x1x32xf32, #tpu.memory_space<vmem>>, vector<1x1x32xf32>
    %181 = vector.shape_cast %180 : vector<1x1x32xf32> to vector<1x32xf32>
    %cst_63 = arith.constant dense<0.000000e+00> : vector<32xf32>
    %182 = vector.multi_reduction <add>, %177, %cst_63 [1] : vector<32x32xf32> to vector<32xf32>
    %183 = vector.shape_cast %182 : vector<32xf32> to vector<32x1xf32>
    %cst_64 = arith.constant 3.200000e+01 : f32
    %184 = vector.broadcast %cst_64 : f32 to vector<32x1xf32>
    %185 = arith.divf %183, %184 : vector<32x1xf32>
    %186 = vector.broadcast %185 : vector<32x1xf32> to vector<32x32xf32>
    %187 = arith.subf %177, %186 : vector<32x32xf32>
    %188 = arith.mulf %187, %187 : vector<32x32xf32>
    %cst_65 = arith.constant dense<0.000000e+00> : vector<32xf32>
    %189 = vector.multi_reduction <add>, %188, %cst_65 [1] : vector<32x32xf32> to vector<32xf32>
    %190 = vector.shape_cast %189 : vector<32xf32> to vector<32x1xf32>
    %cst_66 = arith.constant 3.200000e+01 : f32
    %191 = vector.broadcast %cst_66 : f32 to vector<32x1xf32>
    %192 = arith.divf %190, %191 : vector<32x1xf32>
    %193 = vector.broadcast %185 : vector<32x1xf32> to vector<32x32xf32>
    %194 = arith.subf %177, %193 : vector<32x32xf32>
    %cst_67 = arith.constant 9.99999974E-6 : f32
    %195 = vector.broadcast %cst_67 : f32 to vector<32x1xf32>
    %196 = arith.addf %192, %195 : vector<32x1xf32>
    %197 = math.rsqrt %196 : vector<32x1xf32>
    %198 = vector.broadcast %197 : vector<32x1xf32> to vector<32x32xf32>
    %199 = arith.mulf %194, %198 : vector<32x32xf32>
    %200 = vector.broadcast %179 : vector<1x32xf32> to vector<32x32xf32>
    %201 = arith.mulf %199, %200 : vector<32x32xf32>
    %202 = vector.broadcast %181 : vector<1x32xf32> to vector<32x32xf32>
    %203 = arith.addf %201, %202 : vector<32x32xf32>
    %204 = arith.truncf %203 : vector<32x32xf32> to vector<32x32xbf16>
    %c0_68 = arith.constant 0 : index
    %c0_69 = arith.constant 0 : index
    %c0_70 = arith.constant 0 : index
    %205 = vector.load %arg12[%c0_68, %c0_69, %c0_70] : memref<1x32x32xbf16, #tpu.memory_space<vmem>>, vector<1x32x32xbf16>
    %206 = vector.shape_cast %205 : vector<1x32x32xbf16> to vector<32x32xbf16>
    %cst_71 = arith.constant dense<0.000000e+00> : vector<32x32xf32>
    %207 = tpu.matmul %204, %206, %cst_71 {dimension_numbers = #tpu.dot_dimension_numbers<[1], [0], [0], [1], [0, 0, 1, 1], [], []>} : vector<32x32xbf16>, vector<32x32xbf16>, vector<32x32xf32> -> vector<32x32xf32>
    %c0_72 = arith.constant 0 : index
    %c0_73 = arith.constant 0 : index
    %c0_74 = arith.constant 0 : index
    %208 = vector.load %arg13[%c0_72, %c0_73, %c0_74] : memref<1x1x32xf32, #tpu.memory_space<vmem>>, vector<1x1x32xf32>
    %209 = vector.shape_cast %208 : vector<1x1x32xf32> to vector<1x32xf32>
    %210 = vector.broadcast %209 : vector<1x32xf32> to vector<32x32xf32>
    %211 = arith.addf %207, %210 : vector<32x32xf32>
    %212 = arith.mulf %211, %211 : vector<32x32xf32>
    %213 = arith.mulf %211, %212 : vector<32x32xf32>
    %cst_75 = arith.constant 4.471500e-02 : f32
    %214 = vector.broadcast %cst_75 : f32 to vector<32x32xf32>
    %215 = arith.mulf %214, %213 : vector<32x32xf32>
    %216 = arith.addf %211, %215 : vector<32x32xf32>
    %cst_76 = arith.constant 0.797884583 : f32
    %217 = vector.broadcast %cst_76 : f32 to vector<32x32xf32>
    %218 = arith.mulf %217, %216 : vector<32x32xf32>
    %219 = math.tanh %218 : vector<32x32xf32>
    %cst_77 = arith.constant 1.000000e+00 : f32
    %220 = vector.broadcast %cst_77 : f32 to vector<32x32xf32>
    %221 = arith.addf %220, %219 : vector<32x32xf32>
    %cst_78 = arith.constant 5.000000e-01 : f32
    %222 = vector.broadcast %cst_78 : f32 to vector<32x32xf32>
    %223 = arith.mulf %222, %221 : vector<32x32xf32>
    %224 = arith.mulf %211, %223 : vector<32x32xf32>
    %225 = arith.truncf %224 : vector<32x32xf32> to vector<32x32xbf16>
    %c0_79 = arith.constant 0 : index
    %c0_80 = arith.constant 0 : index
    %c0_81 = arith.constant 0 : index
    %226 = vector.load %arg14[%c0_79, %c0_80, %c0_81] : memref<1x32x32xbf16, #tpu.memory_space<vmem>>, vector<1x32x32xbf16>
    %227 = vector.shape_cast %226 : vector<1x32x32xbf16> to vector<32x32xbf16>
    %cst_82 = arith.constant dense<0.000000e+00> : vector<32x32xf32>
    %228 = tpu.matmul %225, %227, %cst_82 {dimension_numbers = #tpu.dot_dimension_numbers<[1], [0], [0], [1], [0, 0, 1, 1], [], []>} : vector<32x32xbf16>, vector<32x32xbf16>, vector<32x32xf32> -> vector<32x32xf32>
    %c0_83 = arith.constant 0 : index
    %c0_84 = arith.constant 0 : index
    %c0_85 = arith.constant 0 : index
    %229 = vector.load %arg15[%c0_83, %c0_84, %c0_85] : memref<1x1x32xf32, #tpu.memory_space<vmem>>, vector<1x1x32xf32>
    %230 = vector.shape_cast %229 : vector<1x1x32xf32> to vector<1x32xf32>
    %231 = vector.broadcast %230 : vector<1x32xf32> to vector<32x32xf32>
    %232 = arith.addf %228, %231 : vector<32x32xf32>
    %233 = arith.addf %177, %232 : vector<32x32xf32>
    %c0_86 = arith.constant 0 : index
    %c0_87 = arith.constant 0 : index
    %c0_88 = arith.constant 0 : index
    %234 = vector.load %arg16[%c0_86, %c0_87, %c0_88] : memref<1x1x32xf32, #tpu.memory_space<vmem>>, vector<1x1x32xf32>
    %235 = vector.shape_cast %234 : vector<1x1x32xf32> to vector<1x32xf32>
    %c0_89 = arith.constant 0 : index
    %c0_90 = arith.constant 0 : index
    %c0_91 = arith.constant 0 : index
    %236 = vector.load %arg17[%c0_89, %c0_90, %c0_91] : memref<1x1x32xf32, #tpu.memory_space<vmem>>, vector<1x1x32xf32>
    %237 = vector.shape_cast %236 : vector<1x1x32xf32> to vector<1x32xf32>
    %cst_92 = arith.constant dense<0.000000e+00> : vector<32xf32>
    %238 = vector.multi_reduction <add>, %233, %cst_92 [1] : vector<32x32xf32> to vector<32xf32>
    %239 = vector.shape_cast %238 : vector<32xf32> to vector<32x1xf32>
    %cst_93 = arith.constant 3.200000e+01 : f32
    %240 = vector.broadcast %cst_93 : f32 to vector<32x1xf32>
    %241 = arith.divf %239, %240 : vector<32x1xf32>
    %242 = vector.broadcast %241 : vector<32x1xf32> to vector<32x32xf32>
    %243 = arith.subf %233, %242 : vector<32x32xf32>
    %244 = arith.mulf %243, %243 : vector<32x32xf32>
    %cst_94 = arith.constant dense<0.000000e+00> : vector<32xf32>
    %245 = vector.multi_reduction <add>, %244, %cst_94 [1] : vector<32x32xf32> to vector<32xf32>
    %246 = vector.shape_cast %245 : vector<32xf32> to vector<32x1xf32>
    %cst_95 = arith.constant 3.200000e+01 : f32
    %247 = vector.broadcast %cst_95 : f32 to vector<32x1xf32>
    %248 = arith.divf %246, %247 : vector<32x1xf32>
    %249 = vector.broadcast %241 : vector<32x1xf32> to vector<32x32xf32>
    %250 = arith.subf %233, %249 : vector<32x32xf32>
    %cst_96 = arith.constant 9.99999974E-6 : f32
    %251 = vector.broadcast %cst_96 : f32 to vector<32x1xf32>
    %252 = arith.addf %248, %251 : vector<32x1xf32>
    %253 = math.rsqrt %252 : vector<32x1xf32>
    %254 = vector.broadcast %253 : vector<32x1xf32> to vector<32x32xf32>
    %255 = arith.mulf %250, %254 : vector<32x32xf32>
    %256 = vector.broadcast %235 : vector<1x32xf32> to vector<32x32xf32>
    %257 = arith.mulf %255, %256 : vector<32x32xf32>
    %258 = vector.broadcast %237 : vector<1x32xf32> to vector<32x32xf32>
    %259 = arith.addf %257, %258 : vector<32x32xf32>
    %c0_97 = arith.constant 0 : index
    %c0_98 = arith.constant 0 : index
    %260 = vector.load %arg26[%c0_97, %c0_98] : memref<32x32xf32, #tpu.memory_space<vmem>>, vector<32x32xf32>
    tpu.vector_store %arg26[%c0_97, %c0_98], %259 {strides = array<i32>} : memref<32x32xf32, #tpu.memory_space<vmem>>, vector<32x32xf32>,
    %c1_i32 = arith.constant 1 : i32
    %261 = arith.cmpi eq, %arg1, %c1_i32 : i32
    %262 = arith.extui %261 : i1 to i32
    %c0_i32_99 = arith.constant 0 : i32
    %263 = arith.cmpi ne, %262, %c0_i32_99 : i32
    scf.if %263 {
      %c0_100 = arith.constant 0 : index
      %c0_101 = arith.constant 0 : index
      %264 = vector.load %arg18[%c0_100, %c0_101] : memref<1x32xf32, #tpu.memory_space<vmem>>, vector<1x32xf32>
      %c0_102 = arith.constant 0 : index
      %c0_103 = arith.constant 0 : index
      %265 = vector.load %arg19[%c0_102, %c0_103] : memref<1x32xf32, #tpu.memory_space<vmem>>, vector<1x32xf32>
      %cst_104 = arith.constant dense<0.000000e+00> : vector<32xf32>
      %266 = vector.multi_reduction <add>, %259, %cst_104 [1] : vector<32x32xf32> to vector<32xf32>
      %267 = vector.shape_cast %266 : vector<32xf32> to vector<32x1xf32>
      %cst_105 = arith.constant 3.200000e+01 : f32
      %268 = vector.broadcast %cst_105 : f32 to vector<32x1xf32>
      %269 = arith.divf %267, %268 : vector<32x1xf32>
      %270 = vector.broadcast %269 : vector<32x1xf32> to vector<32x32xf32>
      %271 = arith.subf %259, %270 : vector<32x32xf32>
      %272 = arith.mulf %271, %271 : vector<32x32xf32>
      %cst_106 = arith.constant dense<0.000000e+00> : vector<32xf32>
      %273 = vector.multi_reduction <add>, %272, %cst_106 [1] : vector<32x32xf32> to vector<32xf32>
      %274 = vector.shape_cast %273 : vector<32xf32> to vector<32x1xf32>
      %cst_107 = arith.constant 3.200000e+01 : f32
      %275 = vector.broadcast %cst_107 : f32 to vector<32x1xf32>
      %276 = arith.divf %274, %275 : vector<32x1xf32>
      %277 = vector.broadcast %269 : vector<32x1xf32> to vector<32x32xf32>
      %278 = arith.subf %259, %277 : vector<32x32xf32>
      %cst_108 = arith.constant 9.99999974E-6 : f32
      %279 = vector.broadcast %cst_108 : f32 to vector<32x1xf32>
      %280 = arith.addf %276, %279 : vector<32x1xf32>
      %281 = math.rsqrt %280 : vector<32x1xf32>
      %282 = vector.broadcast %281 : vector<32x1xf32> to vector<32x32xf32>
      %283 = arith.mulf %278, %282 : vector<32x32xf32>
      %284 = vector.broadcast %264 : vector<1x32xf32> to vector<32x32xf32>
      %285 = arith.mulf %283, %284 : vector<32x32xf32>
      %286 = vector.broadcast %265 : vector<1x32xf32> to vector<32x32xf32>
      %287 = arith.addf %285, %286 : vector<32x32xf32>
      %288 = arith.truncf %287 : vector<32x32xf32> to vector<32x32xbf16>
      %c0_109 = arith.constant 0 : index
      %c0_110 = arith.constant 0 : index
      %289 = vector.load %arg20[%c0_109, %c0_110] : memref<32x4xbf16, #tpu.memory_space<vmem>>, vector<32x4xbf16>
      %cst_111 = arith.constant dense<0.000000e+00> : vector<32x4xf32>
      %290 = tpu.matmul %288, %289, %cst_111 {dimension_numbers = #tpu.dot_dimension_numbers<[1], [0], [0], [1], [0, 0, 1, 1], [], []>} : vector<32x32xbf16>, vector<32x4xbf16>, vector<32x4xf32> -> vector<32x4xf32>
      %c0_112 = arith.constant 0 : index
      %c0_113 = arith.constant 0 : index
      %291 = vector.load %arg21[%c0_112, %c0_113] : memref<1x4xf32, #tpu.memory_space<vmem>>, vector<1x4xf32>
      %292 = vector.broadcast %291 : vector<1x4xf32> to vector<32x4xf32>
      %293 = arith.addf %290, %292 : vector<32x4xf32>
      %294 = vector.shape_cast %293 : vector<32x4xf32> to vector<2x16x4xf32>
      %c0_114 = arith.constant 0 : index
      %c0_115 = arith.constant 0 : index
      %c0_116 = arith.constant 0 : index
      %295 = vector.load %arg22[%c0_114, %c0_115, %c0_116] : memref<2x16x4xf32, #tpu.memory_space<vmem>>, vector<2x16x4xf32>
      tpu.vector_store %arg22[%c0_114, %c0_115, %c0_116], %294 {strides = array<i32>} : memref<2x16x4xf32, #tpu.memory_space<vmem>>, vector<2x16x4xf32>,
    } else {
    }
    return
  }
  func.func @transform_0(%arg0: i32, %arg1: i32) -> (i32, i32, i32) {
    %c0_i32 = arith.constant 0 : i32
    %c0_i32_0 = arith.constant 0 : i32
    %c0_i32_1 = arith.constant 0 : i32
    return %arg0, %c0_i32, %c0_i32_0 : i32, i32, i32
  }
  func.func @transform_1(%arg0: i32, %arg1: i32) -> (i32, i32, i32) {
    %c0_i32 = arith.constant 0 : i32
    %c0_i32_0 = arith.constant 0 : i32
    %c0_i32_1 = arith.constant 0 : i32
    return %arg0, %c0_i32, %c0_i32_0 : i32, i32, i32
  }
  func.func @transform_2(%arg0: i32, %arg1: i32) -> (i32, i32) {
    %c0_i32 = arith.constant 0 : i32
    %c0_i32_0 = arith.constant 0 : i32
    %c0_i32_1 = arith.constant 0 : i32
    return %c0_i32, %c0_i32_0 : i32, i32
  }
  func.func @transform_3(%arg0: i32, %arg1: i32) -> (i32, i32) {
    %c0_i32 = arith.constant 0 : i32
    %c0_i32_0 = arith.constant 0 : i32
    %c0_i32_1 = arith.constant 0 : i32
    return %c0_i32, %c0_i32_0 : i32, i32
  }
  func.func @transform_4(%arg0: i32, %arg1: i32) -> (i32, i32, i32) {
    %c0_i32 = arith.constant 0 : i32
    %c0_i32_0 = arith.constant 0 : i32
    %c0_i32_1 = arith.constant 0 : i32
    return %arg1, %c0_i32, %c0_i32_0 : i32, i32, i32
  }
  func.func @transform_5(%arg0: i32, %arg1: i32) -> (i32, i32, i32) {
    %c0_i32 = arith.constant 0 : i32
    %c0_i32_0 = arith.constant 0 : i32
    %c0_i32_1 = arith.constant 0 : i32
    return %arg1, %c0_i32, %c0_i32_0 : i32, i32, i32
  }
  func.func @transform_6(%arg0: i32, %arg1: i32) -> (i32, i32, i32) {
    %c0_i32 = arith.constant 0 : i32
    %c0_i32_0 = arith.constant 0 : i32
    %c0_i32_1 = arith.constant 0 : i32
    return %arg1, %c0_i32, %c0_i32_0 : i32, i32, i32
  }
  func.func @transform_7(%arg0: i32, %arg1: i32) -> (i32, i32, i32) {
    %c0_i32 = arith.constant 0 : i32
    %c0_i32_0 = arith.constant 0 : i32
    %c0_i32_1 = arith.constant 0 : i32
    return %arg1, %c0_i32, %c0_i32_0 : i32, i32, i32
  }
  func.func @transform_8(%arg0: i32, %arg1: i32) -> (i32, i32, i32) {
    %c0_i32 = arith.constant 0 : i32
    %c0_i32_0 = arith.constant 0 : i32
    %c0_i32_1 = arith.constant 0 : i32
    return %arg1, %c0_i32, %c0_i32_0 : i32, i32, i32
  }
  func.func @transform_9(%arg0: i32, %arg1: i32) -> (i32, i32, i32) {
    %c0_i32 = arith.constant 0 : i32
    %c0_i32_0 = arith.constant 0 : i32
    %c0_i32_1 = arith.constant 0 : i32
    return %arg1, %c0_i32, %c0_i32_0 : i32, i32, i32
  }
  func.func @transform_10(%arg0: i32, %arg1: i32) -> (i32, i32, i32) {
    %c0_i32 = arith.constant 0 : i32
    %c0_i32_0 = arith.constant 0 : i32
    %c0_i32_1 = arith.constant 0 : i32
    return %arg1, %c0_i32, %c0_i32_0 : i32, i32, i32
  }
  func.func @transform_11(%arg0: i32, %arg1: i32) -> (i32, i32, i32) {
    %c0_i32 = arith.constant 0 : i32
    %c0_i32_0 = arith.constant 0 : i32
    %c0_i32_1 = arith.constant 0 : i32
    return %arg1, %c0_i32, %c0_i32_0 : i32, i32, i32
  }
  func.func @transform_12(%arg0: i32, %arg1: i32) -> (i32, i32, i32) {
    %c0_i32 = arith.constant 0 : i32
    %c0_i32_0 = arith.constant 0 : i32
    %c0_i32_1 = arith.constant 0 : i32
    return %arg1, %c0_i32, %c0_i32_0 : i32, i32, i32
  }
  func.func @transform_13(%arg0: i32, %arg1: i32) -> (i32, i32, i32) {
    %c0_i32 = arith.constant 0 : i32
    %c0_i32_0 = arith.constant 0 : i32
    %c0_i32_1 = arith.constant 0 : i32
    return %arg1, %c0_i32, %c0_i32_0 : i32, i32, i32
  }
  func.func @transform_14(%arg0: i32, %arg1: i32) -> (i32, i32, i32) {
    %c0_i32 = arith.constant 0 : i32
    %c0_i32_0 = arith.constant 0 : i32
    %c0_i32_1 = arith.constant 0 : i32
    return %arg1, %c0_i32, %c0_i32_0 : i32, i32, i32
  }
  func.func @transform_15(%arg0: i32, %arg1: i32) -> (i32, i32, i32) {
    %c0_i32 = arith.constant 0 : i32
    %c0_i32_0 = arith.constant 0 : i32
    %c0_i32_1 = arith.constant 0 : i32
    return %arg1, %c0_i32, %c0_i32_0 : i32, i32, i32
  }
  func.func @transform_16(%arg0: i32, %arg1: i32) -> (i32, i32) {
    %c0_i32 = arith.constant 0 : i32
    %c0_i32_0 = arith.constant 0 : i32
    %c0_i32_1 = arith.constant 0 : i32
    return %c0_i32, %c0_i32_0 : i32, i32
  }
  func.func @transform_17(%arg0: i32, %arg1: i32) -> (i32, i32) {
    %c0_i32 = arith.constant 0 : i32
    %c0_i32_0 = arith.constant 0 : i32
    %c0_i32_1 = arith.constant 0 : i32
    return %c0_i32, %c0_i32_0 : i32, i32
  }
  func.func @transform_18(%arg0: i32, %arg1: i32) -> (i32, i32) {
    %c0_i32 = arith.constant 0 : i32
    %c0_i32_0 = arith.constant 0 : i32
    %c0_i32_1 = arith.constant 0 : i32
    return %c0_i32, %c0_i32_0 : i32, i32
  }
  func.func @transform_19(%arg0: i32, %arg1: i32) -> (i32, i32) {
    %c0_i32 = arith.constant 0 : i32
    %c0_i32_0 = arith.constant 0 : i32
    %c0_i32_1 = arith.constant 0 : i32
    return %c0_i32, %c0_i32_0 : i32, i32
  }
  func.func @transform_20(%arg0: i32, %arg1: i32) -> (i32, i32, i32) {
    %c0_i32 = arith.constant 0 : i32
    %c0_i32_0 = arith.constant 0 : i32
    %c0_i32_1 = arith.constant 0 : i32
    return %arg0, %c0_i32, %c0_i32_0 : i32, i32, i32
  }
  func.func @transform_21(%arg0: i32, %arg1: i32) -> (i32, i32, i32, i32) {
    %c1_i32 = arith.constant 1 : i32
    %0 = arith.muli %arg1, %c1_i32 : i32
    %1 = arith.addi %0, %arg0 : i32
    %c0_i32 = arith.constant 0 : i32
    %c0_i32_0 = arith.constant 0 : i32
    %c0_i32_1 = arith.constant 0 : i32
    %c0_i32_2 = arith.constant 0 : i32
    return %1, %c0_i32, %c0_i32_0, %c0_i32_1 : i32, i32, i32, i32
  }
  func.func @transform_22(%arg0: i32, %arg1: i32) -> (i32, i32, i32, i32) {
    %c1_i32 = arith.constant 1 : i32
    %0 = arith.muli %arg1, %c1_i32 : i32
    %1 = arith.addi %0, %arg0 : i32
    %c0_i32 = arith.constant 0 : i32
    %c0_i32_0 = arith.constant 0 : i32
    %c0_i32_1 = arith.constant 0 : i32
    %c0_i32_2 = arith.constant 0 : i32
    return %1, %c0_i32, %c0_i32_0, %c0_i32_1 : i32, i32, i32, i32
  }
  func.func @transform_23(%arg0: i32, %arg1: i32) -> (i32, i32, i32) {
    %c1_i32 = arith.constant 1 : i32
    %0 = arith.muli %arg1, %c1_i32 : i32
    %1 = arith.addi %0, %arg0 : i32
    %c0_i32 = arith.constant 0 : i32
    %c0_i32_0 = arith.constant 0 : i32
    %c0_i32_1 = arith.constant 0 : i32
    return %1, %c0_i32, %c0_i32_0 : i32, i32, i32
  }
}

</mosaic_0001>

<bundles_post_ra>
// kernel: tpu_custom_call.1
= control target key start
LH: loop header
LB: loop body
LE: loop exit
PB: predicated region body
PF: predicated region fallthrough
CT: control target
= control target key end

     0   :  { %s5759_s0 = inlined_call_operand.vmem [shape: bf16[2,16,12], index: 0, kind: input, shape index: {}]   ;;  %s5760_s1 = inlined_call_operand.vmem [shape: f32[2,16,32], index: 1, kind: input, shape index: {}]   ;;  %s5761_s2 = inlined_call_operand.hbm [shape: bf16[12,32], index: 2, kind: input, shape index: {}]   ;;  %s5762_s3 = inlined_call_operand.hbm [shape: f32[16,16], index: 3, kind: input, shape index: {}]   ;;  %s5763_s4 = inlined_call_operand.hbm [shape: bf16[2,32,128], index: 4, kind: input, shape index: {}]   ;;  %s5764_s5 = inlined_call_operand.hbm [shape: f32[2,1,128], index: 5, kind: input, shape index: {}]   ;;  %s5765_s6 = inlined_call_operand.vmem [shape: bf16[2,32,32], index: 6, kind: input, shape index: {}]   ;;  %s5766_s7 = inlined_call_operand.vmem [shape: f32[2,1,32], index: 7, kind: input, shape index: {}]   ;;  %s5767_s8 = inlined_call_operand.vmem [shape: f32[2,1,32], index: 8, kind: input, shape index: {}]   ;;  %s5768_s9 = inlined_call_operand.vmem [shape: f32[2,1,32], index: 9, kind: input, shape index: {}]   ;;  %s5769_s10 = inlined_call_operand.hbm [shape: bf16[2,32,32], index: 10, kind: input, shape index: {}]   ;;  %s5770_s11 = inlined_call_operand.vmem [shape: f32[2,1,32], index: 11, kind: input, shape index: {}]   ;;  %s5771_s12 = inlined_call_operand.hbm [shape: bf16[2,32,32], index: 12, kind: input, shape index: {}]   ;;  %s5772_s13 = inlined_call_operand.vmem [shape: f32[2,1,32], index: 13, kind: input, shape index: {}]   ;;  %s5773_s14 = inlined_call_operand.vmem [shape: f32[2,1,32], index: 14, kind: input, shape index: {}]   ;;  %s5774_s15 = inlined_call_operand.vmem [shape: f32[2,1,32], index: 15, kind: input, shape index: {}]   ;;  %s5775_s16 = inlined_call_operand.vmem [shape: f32[1,32], index: 16, kind: input, shape index: {}]   ;;  %s5776_s17 = inlined_call_operand.vmem [shape: f32[1,32], index: 17, kind: input, shape index: {}]   ;;  %s5777_s18 = inlined_call_operand.vmem [shape: bf16[32,4], index: 18, kind: input, shape index: {}]   ;;  %s5778_s19 = inlined_call_operand.vmem [shape: f32[1,4], index: 19, kind: input, shape index: {}]   ;;  %s5779_s20 = inlined_call_operand.vmem [shape: f32[2,16,4], index: 20, kind: output, shape index: {0}]   ;;  %s5780_s21 = inlined_call_operand.hbm [shape: f32[4,4,16,16], index: 21, kind: output, shape index: {1}]   ;;  %s5781_s22 = inlined_call_operand.hbm [shape: f32[4,4,16,16], index: 22, kind: output, shape index: {2}]   ;;  %s5782_s23 = inlined_call_operand.vmem [shape: f32[4,16,4], index: 23, kind: output, shape index: {3}]  }
   0x1   :  { %5824 = sst [smem:[#allocation29_spill]] %s5759_s0 }
   0x2   :  { %5825 = sst [smem:[#allocation30_spill]] %s5760_s1 }
   0x3   :  { %5826 = sst [smem:[#allocation31_spill]] %s5761_s2 }
   0x4   :  { %5827 = sst [smem:[#allocation32_spill]] %s5762_s3 }
   0x5   :  { %5828 = sst [smem:[#allocation33_spill]] %s5763_s4 }
   0x6   :  { %5829 = sst [smem:[#allocation34_spill]] %s5764_s5 }
   0x7   :  { %5830 = sst [smem:[#allocation35_spill]] %s5765_s6 }
   0x8   :  { %5831 = sst [smem:[#allocation36_spill]] %s5766_s7 }
   0x9   :  { %5832 = sst [smem:[#allocation37_spill]] %s5769_s10 }
   0xa   :  { %5833 = sst [smem:[#allocation38_spill]] %s5771_s12 }
   0xb   :  { %5834 = sst [smem:[#allocation39_spill]] %s5772_s13 }
   0xc   :  { %5835 = sst [smem:[#allocation40_spill]] %s5773_s14 }
   0xd   :  { %5836 = sst [smem:[#allocation41_spill]] %s5774_s15 }
   0xe   :  { %5837 = sst [smem:[#allocation42_spill]] %s5775_s16 }
   0xf   :  { %5838 = sst [smem:[#allocation43_spill]] %s5776_s17 }
  0x10   :  { %5839 = sst [smem:[#allocation44_spill]] %s5777_s18 }
  0x11   :  { %5840 = sst [smem:[#allocation45_spill]] %s5778_s19 }
  0x12   :  { %5841 = sst [smem:[#allocation46_spill]] %s5779_s20 }
  0x13   :  { %5842 = sst [smem:[#allocation47_spill]] %s5780_s21 }
  0x14   :  { %5843 = sst [smem:[#allocation48_spill]] %s5781_s22 }
  0x15   :  { %5844 = sst [smem:[#allocation49_spill]] %s5782_s23 }
  0x16   :  { %29 = vsyncpa [#allocation4], 0 }
  0x17   :  { %30 = vsyncpa [#allocation7], 0 }
  0x18   :  { %31 = vsyncpa [#allocation5], 0 }
  0x19   :  { %33 = vsyncpa [#allocation5 + $0x1], 0 }
  0x1a   :  { %34 = vsyncpa [#allocation14], 0 }
  0x1b   :  { %36 = vsyncpa [#allocation14 + $0x1], 0  ;;  %s4744_s4 = smov 0   ;;  %s4746_s30 = smov 0  }
  0x1c   :  { %s4748_s24 = smov 0   ;;  %s4750_s25 = smov 0  }
  0x1d   :  { %s4752_s5 = smov 0   ;;  %s4754_s1 = smov 0  }
  0x1e LB: > { %5845 = sst [smem:[#allocation20_spill]] %s4568_s4  ;;  %s4775_s26 = sadd.s32 4294967295, %s4588_s1   ;;  %s4588_s1 = sphi %s4754_s1, %s42_s1   ;;  %s4584_s5 = sphi %s4752_s5, %s5921_s5   ;;  %s4580_s25 = sphi %s4750_s25, %s5920_s25   ;;  %s4576_s24 = sphi %s4748_s24, %s5919_s24   ;;  %s4572_s30 = sphi %s4746_s30, %s5918_s30   ;;  %s4568_s4 = sphi %s4744_s4, %s5917_s4  }
  0x1f   : > { %5846 = sst [smem:[#allocation21_spill]] %s4572_s30  ;;  %s3632_s2 = sadd.s32 4294967294, %s4588_s1  }
  0x20   : > { %5847 = sst [smem:[#allocation22_spill]] %s4576_s24  ;;  %p162_p0 = scmp.ne.s32.totalorder %s4576_s24, %s4572_s30 }
  0x21   : > { %5848 = sst [smem:[#allocation23_spill]] %s4584_s5  ;;  %p163_p1 = scmp.eq.s32.totalorder %s4588_s1, 0 }
  0x22   : > { %5849 = sst [smem:[#allocation24_spill]] %s4588_s1  ;;  %p168_p2 = scmp.ne.s32.totalorder %s4572_s30, %s4568_s4 }
  0x23   : > { %p5796_p3 = scmp.eq.s32.totalorder %s4775_s26, 0  ;;  %p590_p4 = scmp.eq.s32.totalorder %s4775_s26, 1 }
  0x24   : > { %p4786_p5 = por %p163_p1, %p162_p0  ;;  %p596_p6 = scmp.eq.s32.totalorder %s3632_s2, 1 }
  0x25   : > { %p4792_p7 = por %p5796_p3, %p168_p2  ;;  %p4796_p8 = por %p590_p4, %p162_p0 }
  0x26   : > { %p4800_p9 = por %p596_p6, %p168_p2  ;;  %p3633_p10 = scmp.ge.s32.totalorder %s4588_s1, 1 }
  0x27   : > { %s5851_s7 = scalar_select %p4792_p7, 1, 0 }
  0x28   : > { %s5852_s28 = scalar_select %p4796_p8, 1, 0 }
  0x29   : > { %s5854_s29 = scalar_select %p4800_p9, 1, 0 }
  0x2a   : > { %5853 = sst [smem:[#allocation25_spill]] %s5852_s28  ;;  %p659_p11 = scmp.lt.s32.totalorder %s4588_s1, 3 }
  0x2b   : > { %5855 = sst [smem:[#allocation26_spill]] %s5854_s29  ;;  %s4590_s0 = smov [#allocation3]  }
  0x2c   : > { %p4806_p12 = pnand %p3633_p10, %p659_p11  ;;  %s691_s2 = sshll.u32 %s4590_s0, 4  ;;  %s4810_s2 = int_to_ptr.vmem [resolvable:$true] %s691_s2 }
  0x2d   : > { %p3992_p1 = scmp.lt.s32.totalorder %s4588_s1, 2  ;;  %s51_s4 = sadd.s32 1, %s4584_s5 }
  0x2e   : > { %s5856_s3 = scalar_select %p4806_p12, 1, 0 }
  0x2f   : > { %p3963_p13 = pneg %p4806_p12  ;;  %p4824_p4 = pnand %p3992_p1, %p4786_p5 }
  0x30   : > { %p4829_p6 = scmp.ge.s32.totalorder %s51_s4, 2  ;;  %s5860_s28 = sld [smem:[#allocation31_spill]] }
  0x31   : > { %p4818_p2 = pnand %p3963_p13, %p5796_p3 }
  0x32   : > { %s5858_s29 = scalar_select %p4824_p4, 1, 0 }
  0x33   : > { %s5857_s6 = scalar_select %p4818_p2, 1, 0 }
  0x34   : > { %p5808_p11 = pneg %p4818_p2 }
  0x36   : > { %s4290_s20 = scalar_lea.hbm %s5860_s28, 128 }
  0x37   : > { %p4291_p10 = scmp.ne.s32.totalorder %s5860_s28, %s4290_s20  ;;  %p4297_p1 = scmp.lt.u32.totalorder %s4290_s20, %s5860_s28 }
  0x39   : > { %p4293_p5 = pnand %p5808_p11, %p4291_p10 }
  0x3b   : > { %p4294_p13 = pneg %p4293_p5 }
  0x3d   : > { %p4299_p0 = pnand %p4297_p1, %p4294_p13 }
  0x3f   : > { %4302 = shalt.err (!%p4299_p0)
}
  0x40   : > { %s4303_s21 = scalar_lea.vmem %s4810_s2, 128  ;;  %p4311_p7 = scmp.lt.s32.totalorder %s4810_s2, %s4810_s2 }
  0x41   : > { %p4304_p3 = scmp.ne.s32.totalorder %s4810_s2, %s4303_s21  ;;  %p4312_p10 = scmp.lt.s32.totalorder %s4303_s21, %s4303_s21 }
  0x43   : > { %p4306_p9 = pnand %p4304_p3, %p5808_p11  ;;  %p4313_p5 = por %p4312_p10, %p4311_p7 }
  0x45   : > { %p4307_p8 = pneg %p4306_p9 }
  0x47   : > { %p4314_p12 = pnand %p4313_p5, %p4307_p8 }
  0x49   : > { %4317 = shalt.err (!%p4314_p12)
}
  0x4a   : > { %s5801_s16 = smov 64   ;;  %s5803_s17 = smov 4  }
  0x4b   : > { %3966 = dma.hbm_to_vmem [thread:$0]  (!%p4818_p2), %s5860_s28, 128, %s4810_s2, [#allocation4], %s5801_s16, %s5801_s16, %s5803_s17  }
  0x4c   : > { %s730_s22 = sand.u32 1, %s4588_s1   ;;  %s5923_s4 = smov (%p4829_p6, %s51_s4), 0 }
  0x4d   : > { %5861 = sst [smem:[#allocation27_spill]] %s5923_s4  ;;  %s5805_s27 = sand.u32 1, %s4576_s24  }
  0x4e   : > { %s152_s21 = ssub.s32 %s4584_s5, %s5923_s4  ;;  %s4873_s18 = sshll.u32 %s5805_s27, 4 }
  0x4f   : > { %p153_p3 = scmp.eq.s32.totalorder %s152_s21, 0  ;;  %s4876_s23 = sshll.u32 %s4584_s5, 8 }
  0x50   : > { %s734_s15 = scalar_lea.vmem [#allocation8], %s4873_s18  ;;  %s5862_s19 = sadd.s32 1, %s4576_s24 }
  0x51   : > { %s741_s14 = sshll.u32 %s734_s15, 4  ;;  %s5864_s16 = sld [smem:[#allocation33_spill]]  ;;  %s4890_s14 = int_to_ptr.vmem [resolvable:$true] %s741_s14 }
  0x52   : > { %s4882_s2 = scalar_select %p153_p3, %s4576_s24, %s5862_s19  }
  0x53   : > { %s4892_s21 = scalar_lea.sflag [#allocation4], %s730_s22  ;;  %p4898_p8 = pneg %p4824_p4 }
  0x54   : > { %5863 = sst [smem:[#allocation28_spill]] %s4882_s2 }
  0x55   : > { %s5865_s15 = scalar_select %p4898_p8, 1, 0 }
  0x57   : > { %s4888_s17 = scalar_lea.hbm %s5864_s16, %s4876_s23  ;;  %s4323_s0 = scalar_lea.hbm %s5864_s16, 512 }
  0x58   : > { %s4318_s27 = scalar_lea.hbm %s4888_s17, 256  ;;  %p4324_p0 = scmp.lt.u32.totalorder %s4888_s17, %s5864_s16 }
  0x59   : > { %p4319_p7 = scmp.ne.s32.totalorder %s4888_s17, %s4318_s27  ;;  %p4325_p6 = scmp.lt.u32.totalorder %s4323_s0, %s4318_s27 }
  0x5a   : > { %p4327_p1 = scmp.lt.u32.totalorder %s4318_s27, %s4888_s17 }
  0x5b   : > { %p4321_p9 = pnand %p4898_p8, %p4319_p7  ;;  %p4326_p13 = por %p4325_p6, %p4324_p0 }
  0x5d   : > { %p4322_p12 = pneg %p4321_p9  ;;  %p4328_p10 = por %p4327_p1, %p4326_p13 }
  0x5f   : > { %p4329_p5 = pnand %p4328_p10, %p4322_p12 }
  0x61   : > { %4332 = shalt.err (!%p4329_p5)
}
  0x62   : > { %s4333_s22 = scalar_lea.vmem %s4890_s14, 256  ;;  %s4593_s19 = smov [#allocation8]  }
  0x63   : > { %p4334_p3 = scmp.ne.s32.totalorder %s4890_s14, %s4333_s22  ;;  %s4338_s20 = sshll.u32 %s4593_s19, 4  ;;  %s4339_s20 = int_to_ptr.vmem [resolvable:$false] %s4338_s20 }
  0x64   : > { %s4340_s4 = scalar_lea.vmem %s4339_s20, 512  ;;  %p4341_p11 = scmp.lt.s32.totalorder %s4890_s14, %s4339_s20 }
  0x65   : > { %p4336_p7 = pnand %p4334_p3, %p4898_p8  ;;  %p4342_p2 = scmp.lt.s32.totalorder %s4340_s4, %s4333_s22 }
  0x67   : > { %p4337_p9 = pneg %p4336_p7  ;;  %p4343_p0 = por %p4342_p2, %p4341_p11 }
  0x69   : > { %p4344_p6 = pnand %p4343_p0, %p4337_p9 }
  0x6b   : > { %4347 = shalt.err (!%p4344_p6)
}
  0x6c   : > { %s5866_s28 = smov 4   ;;  %s5867_s27 = smov 64  }
  0x6d   : > { %3973 = dma.hbm_to_vmem [thread:$0]  (!%p4824_p4), %s4888_s17, 256, %s4890_s14, %s4892_s21, %s5867_s27, %s5867_s27, %s5866_s28  }
  0x6e   : > { %s3642_s0 = sshll.u32 %s4584_s5, 4  ;;  %s5868_s20 = sld [smem:[#allocation34_spill]] }
  0x6f   : > { %s5869_s4 = sand.u32 1, %s4576_s24  }
  0x70   : > { %s754_s2 = scalar_lea.vmem [#allocation9], %s5869_s4 }
  0x71   : > { %s761_s1 = sshll.u32 %s754_s2, 4  ;;  %s762_s1 = int_to_ptr.vmem [resolvable:$true] %s761_s1 }
  0x74   : > { %s4929_s22 = scalar_lea.hbm %s5868_s20, %s3642_s0  ;;  %s4353_s5 = scalar_lea.hbm %s5868_s20, 32 }
  0x75   : > { %s4348_s13 = scalar_lea.hbm %s4929_s22, 16  ;;  %p4354_p13 = scmp.lt.u32.totalorder %s4929_s22, %s5868_s20 }
  0x76   : > { %p4349_p2 = scmp.ne.s32.totalorder %s4929_s22, %s4348_s13  ;;  %p4355_p1 = scmp.lt.u32.totalorder %s4353_s5, %s4348_s13 }
  0x77   : > { %p4357_p5 = scmp.lt.u32.totalorder %s4348_s13, %s4929_s22 }
  0x78   : > { %p4351_p11 = pnand %p4349_p2, %p4898_p8  ;;  %p4356_p10 = por %p4355_p1, %p4354_p13 }
  0x7a   : > { %p4352_p12 = pneg %p4351_p11  ;;  %p4358_p3 = por %p4357_p5, %p4356_p10 }
  0x7c   : > { %p4359_p7 = pnand %p4358_p3, %p4352_p12 }
  0x7e   : > { %4362 = shalt.err (!%p4359_p7)
}
  0x7f   : > { %s4363_s2 = scalar_lea.vmem %s762_s1, 16  ;;  %s4594_s19 = smov [#allocation9]  }
  0x80   : > { %p4364_p9 = scmp.ne.s32.totalorder %s762_s1, %s4363_s2  ;;  %s4368_s4 = sshll.u32 %s4594_s19, 4  ;;  %s4369_s4 = int_to_ptr.vmem [resolvable:$false] %s4368_s4 }
  0x81   : > { %s4370_s14 = scalar_lea.vmem %s4369_s4, 32  ;;  %p4371_p2 = scmp.lt.s32.totalorder %s762_s1, %s4369_s4 }
  0x82   : > { %p4366_p0 = pnand %p4364_p9, %p4898_p8  ;;  %p4372_p11 = scmp.lt.s32.totalorder %s4370_s14, %s4363_s2 }
  0x84   : > { %p4367_p6 = pneg %p4366_p0  ;;  %p4373_p4 = por %p4372_p11, %p4371_p2 }
  0x86   : > { %p4374_p1 = pnand %p4373_p4, %p4367_p6 }
  0x88   : > { %4377 = shalt.err (!%p4374_p1)
}
  0x89   : > { %p5870_p13 = scmp.ne.s32.totalorder %s5858_s29, 0  ;;  %s5871_s10 = sld [smem:[#allocation37_spill]] }
  0x8a   : > { %s798_s16 = scalar_lea.vmem [#allocation10], %s4873_s18 }
  0x8b   : > { %3976 = dma.hbm_to_vmem [thread:$0]  (!%p5870_p13), %s4929_s22, 16, %s762_s1, %s4892_s21  }
  0x8c   : > { %s805_s0 = sshll.u32 %s798_s16, 4  ;;  %s4958_s0 = int_to_ptr.vmem [resolvable:$true] %s805_s0 }
  0x8f   : > { %s4955_s17 = scalar_lea.hbm %s5871_s10, %s4876_s23  ;;  %s4383_s22 = scalar_lea.hbm %s5871_s10, 512 }
  0x90   : > { %s4378_s2 = scalar_lea.hbm %s4955_s17, 256  ;;  %p4384_p5 = scmp.lt.u32.totalorder %s4955_s17, %s5871_s10 }
  0x91   : > { %p4379_p4 = scmp.ne.s32.totalorder %s4955_s17, %s4378_s2  ;;  %p4385_p3 = scmp.lt.u32.totalorder %s4383_s22, %s4378_s2 }
  0x92   : > { %p4387_p9 = scmp.lt.u32.totalorder %s4378_s2, %s4955_s17 }
  0x93   : > { %p4381_p12 = pnand %p4379_p4, %p4898_p8  ;;  %p4386_p7 = por %p4385_p3, %p4384_p5 }
  0x95   : > { %p4382_p10 = pneg %p4381_p12  ;;  %p4388_p0 = por %p4387_p9, %p4386_p7 }
  0x97   : > { %p4389_p6 = pnand %p4388_p0, %p4382_p10 }
  0x99   : > { %4392 = shalt.err (!%p4389_p6)
}
  0x9a   : > { %s4393_s13 = scalar_lea.vmem %s4958_s0, 256  ;;  %s4595_s5 = smov [#allocation10]  }
  0x9b   : > { %p4394_p2 = scmp.ne.s32.totalorder %s4958_s0, %s4393_s13  ;;  %s4398_s16 = sshll.u32 %s4595_s5, 4  ;;  %s4399_s16 = int_to_ptr.vmem [resolvable:$false] %s4398_s16 }
  0x9c   : > { %s4400_s19 = scalar_lea.vmem %s4399_s16, 512  ;;  %p4401_p4 = scmp.lt.s32.totalorder %s4958_s0, %s4399_s16 }
  0x9d   : > { %p4396_p11 = pnand %p4394_p2, %p4898_p8  ;;  %p4402_p12 = scmp.lt.s32.totalorder %s4400_s19, %s4393_s13 }
  0x9f   : > { %p4397_p1 = pneg %p4396_p11  ;;  %p4403_p5 = por %p4402_p12, %p4401_p4 }
  0xa1   : > { %p4404_p3 = pnand %p4403_p5, %p4397_p1 }
  0xa3   : > { %4407 = shalt.err (!%p4404_p3)
}
  0xa4   : > { %3979 = dma.hbm_to_vmem [thread:$0]  (!%p5870_p13), %s4955_s17, 256, %s4958_s0, %s4892_s21, %s5867_s27, %s5867_s27, %s5866_s28  }
  0xa5   : > { %s4596_s2 = smov [#allocation6]   ;;  %s5872_s14 = sld [smem:[#allocation32_spill]] }
  0xa6   : > { %s704_s1 = sshll.u32 %s4596_s2, 4  ;;  %p5873_p7 = scmp.ne.s32.totalorder %s5857_s6, 0  ;;  %s705_s1 = int_to_ptr.vmem [resolvable:$true] %s704_s1 }
  0xa8   : > { %p5874_p9 = pneg %p5873_p7 }
  0xab   : > { %s4408_s13 = scalar_lea.hbm %s5872_s14, 256 }
  0xac   : > { %p4409_p10 = scmp.ne.s32.totalorder %s5872_s14, %s4408_s13  ;;  %p4415_p2 = scmp.lt.u32.totalorder %s4408_s13, %s5872_s14 }
  0xae   : > { %p4411_p0 = pnand %p4409_p10, %p5874_p9 }
  0xb0   : > { %p4412_p6 = pneg %p4411_p0 }
  0xb2   : > { %p4417_p11 = pnand %p4415_p2, %p4412_p6 }
  0xb4   : > { %4420 = shalt.err (!%p4417_p11)
}
  0xb5   : > { %s4421_s17 = scalar_lea.vmem %s705_s1, 256  ;;  %p5875_p4 = pmov %p5874_p9 }
  0xb6   : > { %p4422_p1 = scmp.ne.s32.totalorder %s705_s1, %s4421_s17  ;;  %p4429_p3 = scmp.lt.s32.totalorder %s705_s1, %s705_s1 }
  0xb7   : > { %p4430_p13 = scmp.lt.s32.totalorder %s4421_s17, %s4421_s17 }
  0xb8   : > { %p4424_p12 = pnand %p4422_p1, %p5875_p4 }
  0xb9   : > { %p4431_p8 = por %p4430_p13, %p4429_p3 }
  0xba   : > { %p4425_p5 = pneg %p4424_p12 }
  0xbc   : > { %p4432_p9 = pnand %p4431_p8, %p4425_p5 }
  0xbe   : > { %4435 = shalt.err (!%p4432_p9)
}
  0xbf   : > { %s4597_s0 = smov 128   ;;  %s4598_s10 = smov 8  }
  0xc0   : > { %3969 = dma.hbm_to_vmem [thread:$0]  (!%p5873_p7), %s5872_s14, 256, %s705_s1, [#allocation7], %s4597_s0, %s4597_s0, %s4598_s10  }
  0xc1   : > { %s5876_s12 = sld [smem:[#allocation38_spill]]  ;;  %s825_s16 = scalar_lea.vmem [#allocation11], %s4873_s18 }
  0xc2   : > { %s832_s19 = sshll.u32 %s825_s16, 4  ;;  %p5877_p13 = scmp.ne.s32.totalorder %s5865_s15, 0  ;;  %s5012_s19 = int_to_ptr.vmem [resolvable:$true] %s832_s19 }
  0xc7   : > { %s5009_s5 = scalar_lea.hbm %s5876_s12, %s4876_s23  ;;  %s4441_s0 = scalar_lea.hbm %s5876_s12, 512 }
  0xc8   : > { %s4436_s17 = scalar_lea.hbm %s5009_s5, 256  ;;  %p4442_p7 = scmp.lt.u32.totalorder %s5009_s5, %s5876_s12 }
  0xc9   : > { %p4437_p8 = scmp.ne.s32.totalorder %s5009_s5, %s4436_s17  ;;  %p4443_p6 = scmp.lt.u32.totalorder %s4441_s0, %s4436_s17 }
  0xca   : > { %p4445_p11 = scmp.lt.u32.totalorder %s4436_s17, %s5009_s5 }
  0xcb   : > { %p4439_p10 = pnand %p4437_p8, %p5877_p13  ;;  %p4444_p2 = por %p4443_p6, %p4442_p7 }
  0xcd   : > { %p4440_p0 = pneg %p4439_p10  ;;  %p4446_p1 = por %p4445_p11, %p4444_p2 }
  0xcf   : > { %p4447_p4 = pnand %p4446_p1, %p4440_p0 }
  0xd1   : > { %4450 = shalt.err (!%p4447_p4)
}
  0xd2   : > { %s4451_s18 = scalar_lea.vmem %s5012_s19, 256  ;;  %s4599_s2 = smov [#allocation11]  }
  0xd3   : > { %p4452_p12 = scmp.ne.s32.totalorder %s5012_s19, %s4451_s18  ;;  %s4456_s22 = sshll.u32 %s4599_s2, 4  ;;  %s4457_s22 = int_to_ptr.vmem [resolvable:$false] %s4456_s22 }
  0xd4   : > { %s4458_s4 = scalar_lea.vmem %s4457_s22, 512  ;;  %p4459_p9 = scmp.lt.s32.totalorder %s5012_s19, %s4457_s22 }
  0xd5   : > { %p4454_p5 = pnand %p4452_p12, %p5877_p13  ;;  %p4460_p8 = scmp.lt.s32.totalorder %s4458_s4, %s4451_s18 }
  0xd7   : > { %p4455_p3 = pneg %p4454_p5  ;;  %p4461_p10 = por %p4460_p8, %p4459_p9 }
  0xd9   : > { %p4462_p7 = pnand %p4461_p10, %p4455_p3 }
  0xdb   : > { %4465 = shalt.err (!%p4462_p7)
}
  0xdc   : > { %p5878_p0 = scmp.ne.s32.totalorder %s5858_s29, 0  ;;  %p5879_p13 = scmp.ne.s32.totalorder %s5856_s3, 0 }
  0xdd   : > { %p5880_p6 = scmp.eq.s32.totalorder (!%p5879_p13), %s4775_s26, 0 }
  0xde   : > { %3982 = dma.hbm_to_vmem [thread:$0]  (!%p5878_p0), %s5009_s5, 256, %s5012_s19, %s4892_s21, %s5867_s27, %s5867_s27, %s5866_s28  }
  0xdf   : > { %862 = sbr.rel (%p5879_p13) target bundleno = 5268 (0x1494), region = 100 }
  0xe6   : > { %4547 = dma.done.wait (%p5880_p6), [#allocation4], 128   ;;  %p5881_p2 = pmov %p5880_p6 }
  0xe8   : > { %4549 = vsyncadd (%p5881_p2), [#allocation4], 4294967168  ;;  %p5882_p11 = pmov %p5881_p2 }
  0xe9   : > { %p5883_p1 = pmov %p5881_p2 }
  0xea   : > { %4551 = dma.done.wait (%p5882_p11), [#allocation7], 256  }
  0xeb   : > { %4553 = vsyncadd (%p5883_p1), [#allocation7], 4294967040  ;;  %s872_s29 = sand.u32 1, %s4775_s26   ;;  %s5051_s21 = sand.u32 1, %s4572_s30  }
  0xec   : > { %s5054_s3 = sshll.u32 %s5051_s21, 4  ;;  %s873_s15 = scalar_lea.sflag [#allocation4], %s872_s29 }
  0xed   : > { %p5884_p4 = scmp.ne.s32.totalorder %s5851_s7, 0 }
  0xef   : > { %4555 = dma.done.wait (%p5884_p4), %s873_s15, 784  }
  0xf0   : > { %4557 = vsyncadd (%p5884_p4), %s873_s15, 4294966512  ;;  %s3655_s27 = sshll.u32 %s5051_s21, 7  ;;  %p1049_p12 = scmp.lt.s32.totalorder %s4580_s25, 1 }
  0xf1   : > { %s3659_s26 = sshll.u32 %s4580_s25, 1  ;;  %s5886_s0 = sld [smem:[#allocation35_spill]] }
  0xf2   : > { %p1088_p5 = scmp.lt.s32.totalorder %s3659_s26, 3  ;;  %s5887_s16 = sld [smem:[#allocation39_spill]] }
  0xf3   : > { %s5065_s13 = scalar_select %p1049_p12, %s4580_s25, 1 }
  0xf4   : > { %s5925_s26 = smov (!%p1088_p5, %s3659_s26), 3  ;;  %s5889_s23 = sld [smem:[#allocation41_spill]] }
  0xf5   : > { %s3739_s7 = sshll.u32 %s5065_s13, 4  ;;  %s3740_s2 = sshll.u32 %s5925_s26, 4 }
  0xf6   : > { %s5890_s4 = sld [smem:[#allocation49_spill]]  ;;  %s884_s28 = scalar_lea.vmem [#allocation9], %s5051_s21 }
  0xf7   : > { %s5075_s10 = scalar_lea.vmem %s5886_s0, %s3739_s7  ;;  %s5888_s7 = sld [smem:[#allocation40_spill]] }
  0xf8   : > { %s1068_s19 = scalar_lea.vmem %s5887_s16, %s5065_s13  ;;  %s893_s15 = scalar_lea.vmem [#allocation10], %s5054_s3 }
  0xf9   : > { %s902_s12 = scalar_lea.vmem [#allocation11], %s5054_s3  ;;  %s5109_s30 = scalar_lea.vmem [#allocation12], %s3655_s27 }
  0xfa   : > { %s1074_s18 = scalar_lea.vmem %s5889_s23, %s5065_s13  ;;  %s5111_s14 = scalar_lea.vmem [#allocation13], %s3655_s27 }
  0xfb   : > { %p3662_p3 = scmp.ne.s32.totalorder %s4580_s25, 0 }
  0xfc   : > { %s5104_s29 = scalar_lea.vmem %s5890_s4, %s3740_s2  ;;  %v4072_v0 = vld [vmem:[#allocation3] sm:$0x3f] (!%p3662_p3)   ;;  %vm1132_vm0 = vcmask (!%p3662_p3), 1045504   ;;  %s5891_s26 = sld [smem:[#allocation29_spill]] (!%p3662_p3)  ;;  %vm1125_vm1 = vcmask (!%p3662_p3), 97280   ;;  %vm1185_vm2 = vcmask (!%p3662_p3), 261120  }
  0xfd   : > { %s1071_s1 = scalar_lea.vmem %s5888_s7, %s5065_s13  ;;  %1099 = sbr.rel (%p3662_p3) target bundleno = 478 (0x1de), region = 128  ;;  %3942 = vmatprep.subr.msk.bf16.mxu0 (!%p3662_p3), %vm1132_vm0, %v4072_v0  ;;  %v1134_v2 = vsel (!%p3662_p3), %vm1132_vm0, %v4072_v0, 0 }
  0xfe   : > { %3801 = vmatpush3.bf16.msra.mxu0 (!%p3662_p3), %v1134_v2  ;;  %s5892_s16 = sld [smem:[#allocation30_spill]] (!%p3662_p3) }
 0x102   : > { %v4073_v1 = vld [vmem:[%s5891_s26] sm:$0xff] (!%p3662_p3)   ;;  %v4074_v3 = vld [vmem:[%s5891_s26 + $0x8] sm:$0xff] (!%p3662_p3)  }
 0x103   : > { %3802 = vmatprep.mubr.msk.bf16.mxu0 (!%p3662_p3), %vm1125_vm1, %v4073_v1 }
 0x104   : > { %3803 = vmatmul.mubr.msk.bf16.vlgmr.msra.gmra.mrb[0].mxu0 %vm1125_vm1, %v4074_v3  ;;  %v1108_v4 = vld [vmem:[%s5892_s16 + $0x10] sm:$0xff]  ;;  %v1106_v5 = vld [vmem:[%s5892_s16] sm:$0xff]  ;;  %v1109_v7 = vld [vmem:[%s5892_s16 + $0x18] sm:$0xff] }
 0x105   : > { %v1107_v10 = vld [vmem:[%s5892_s16 + $0x8] sm:$0xff] }
 0x1d7   : > { %v3804_v6 = vpop.f32.mrb[0].mxu0 }
 0x1d8   : > { %v1179_v8 = vadd.f32 %v3804_v6, %v1108_v4  ;;  %v1170_v9 = vpop.f32.mrb[1].mxu0 }
 0x1d9   : > { %v1171_v11 = vadd.f32 %v1170_v9, %v1106_v5  ;;  %v3805_v12 = vpop.f32.mrb[2].mxu0 }
 0x1da   : > { %1188 = vst.msk [vmem:[#allocation2 + $0x10] sm:$0xff] %vm1185_vm2, %v1179_v8  ;;  %v1182_v13 = vadd.f32 %v3805_v12, %v1109_v7  ;;  %v1173_v14 = vpop.f32.mrb[3].mxu0 }
 0x1db   : > { %1186 = vst.msk [vmem:[#allocation2] sm:$0xff] %vm1185_vm2, %v1171_v11  ;;  %v1174_v15 = vadd.f32 %v1173_v14, %v1107_v10 }
 0x1dc   : > { %1189 = vst.msk [vmem:[#allocation2 + $0x18] sm:$0xff] %vm1185_vm2, %v1182_v13 }
 0x1dd   : > { %1187 = vst.msk [vmem:[#allocation2 + $0x8] sm:$0xff] %vm1185_vm2, %v1174_v15 }
 0x1de PF: > { %s5893_s20 = scalar_lea.vmem [#allocation8], %s5054_s3  ;;  %vm1219_vm3 = vcmask 261120   ;;  %v4600_v24 = vmov 0.0   ;;  %v3668_v26 = vld [vmem:[%s884_s28] ss:$0 sm:$0xff]  ;;  %vm4601_vm4 = vmmov 0  }
 0x1df   : > { %v4116_v16 = vld [vmem:[%s5893_s20] sm:$0xff]   ;;  %s5894_s17 = smov %s5893_s20  ;;  %3814 = vmatprep.subr.bf16.mxu1 %v4600_v24  ;;  %3816 = vmatprep.mubr.msk.bf16.mxu1 %vm4601_vm4, %v4600_v24  ;;  %s4602_s28 = smov 96   ;;  %vm1351_vm5 = vcmask 64512   ;;  %vm1449_vm6 = vcmask 130048   ;;  %vm2620_vm7 = vcmask 195584   ;;  %vm1339_vm8 = vcmask 31744  }
 0x1e0   : > { %v4117_v17 = vld [vmem:[%s5894_s17 + $0x8] sm:$0xff]   ;;  %3806 = vmatprep.subr.bf16.mxu0 %v4116_v16  ;;  %s4603_s24 = smov 64   ;;  %s4604_s2 = smov 88  }
 0x1e1   : > { %v1192_v20 = vld [vmem:[#allocation2 + $0x10] sm:$0xff]  ;;  %3807 = vmatpush3.bf16.msra.mxu0 %v4116_v16  ;;  %s4605_s27 = smov 120   ;;  %s4606_s5 = smov 56  }
 0x1e2   : > { %v1190_v18 = vld [vmem:[#allocation2] sm:$0xff]  ;;  %3808 = vmatprep.subr.bf16.mxu0 %v4117_v17  ;;  %s4607_s6 = smov 80   ;;  %s4608_s7 = smov 112  }
 0x1e3   : > { %v1193_v22 = vld [vmem:[#allocation2 + $0x18] sm:$0xff]  ;;  %s4609_s0 = smov 48   ;;  %s4610_s23 = smov 72  }
 0x1e4   : > { %v1191_v19 = vld [vmem:[#allocation2 + $0x8] sm:$0xff]  ;;  %v1195_v23 = vpack.c.bf16 %v1193_v22, %v1192_v20  ;;  %s4611_s22 = smov 104   ;;  %s4612_s4 = smov 40  }
 0x1e5   : > { %v1194_v21 = vpack.c.bf16 %v1191_v19, %v1190_v18  ;;  %3809 = vmatpush3.bf16.msra.mxu0 %v4117_v17  ;;  %s4613_s20 = smov 8   ;;  %s4614_s17 = smov 16  }
 0x1e6   : > { %3820 = vmatprep.subr.bf16.mxu0 %v4600_v24  ;;  %p3716_p9 = scmp.ne.s32.totalorder %s4580_s25, 1 }
 0x1e7   : > { %3810 = vmatprep.mubr.msk.bf16.mxu0 %vm1219_vm3, %v1194_v21  ;;  %s5906_s3 = sld [smem:[#allocation45_spill]] (!%p3716_p9) }
 0x1e8   : > { %3811 = vmatmul.mubr.msk.bf16.vlgmr.msra.gmra.mrb[0].mxu0 %vm1219_vm3, %v1195_v23 }
 0x1e9   : > { %3822 = vmatprep.mubr.msk.bf16.mxu0 %vm4601_vm4, %v4600_v24 }
 0x2bb   : > { %v3812_v25 = vpop.f32.mrb[0].mxu0 }
 0x2bc   : > { %v1260_v27 = vpop.f32.mrb[1].mxu0  ;;  %v5146_v29 = vadd.f32 %v3812_v25, %v3668_v26 }
 0x2bd   : > { %v3813_v28 = vpop.f32.mrb[2].mxu0  ;;  %v5150_v32 = vadd.f32 %v3668_v26, %v1260_v27 }
 0x2be   : > { %v5148_v30 = vadd.f32 %v3813_v28, %v3668_v26  ;;  %v1263_v31 = vpop.f32.mrb[3].mxu0 }
 0x2bf   : > { %v5152_v33 = vadd.f32 %v3668_v26, %v1263_v31 }
 0x2c0   : > { %v5156_v34 = vpack.c.bf16 %v5148_v30, %v5146_v29 }
 0x2c1   : > { %v5160_v35 = vpack.c.bf16 %v5152_v33, %v5150_v32 }
 0x2c3   : > { %1349 = vrot.lane.b32.xlu0 %v5160_v35, %s4602_s28 }
 0x2c7   : > { %1400 = vrot.lane.b32.xlu0 %v5156_v34, %s4602_s28  ;;  %s4615_s28 = smov 24  }
 0x335   : > { %v1350_v36 = vpop.permute.xlu0 %1349 }
 0x336   : > { %v1356_v37 = vsel %vm1351_vm5, %v1350_v36, 0 }
 0x337   : > { %3815 = vmatpush3.bf16.xpose.msra.mxu1 %v1356_v37 }
 0x338   : > { %3826 = vmatprep.subr.bf16.mxu1 %v4600_v24 }
 0x339   : > { %v1401_v38 = vpop.permute.xlu0 %1400 }
 0x33a   : > { %v1406_v39 = vsel %vm1351_vm5, %v1401_v38, 0 }
 0x33b   : > { %3821 = vmatpush3.bf16.xpose.msra.mxu0 %v1406_v39 }
 0x33c   : > { %3832 = vmatprep.subr.bf16.mxu0 %v4600_v24 }
 0x33e   : > { %3817 = vmatmul.mubr.msk.bf16.vlgmr.msra.gmra.mrb[0].mxu1 %vm1351_vm5, %v5160_v35 }
 0x33f   : > { %3828 = vmatprep.mubr.msk.bf16.mxu1 %vm4601_vm4, %v4600_v24 }
 0x342   : > { %3823 = vmatmul.mubr.msk.bf16.vlgmr.msra.gmra.mrb[4].mxu0 %vm1351_vm5, %v5156_v34 }
 0x343   : > { %3834 = vmatprep.mubr.msk.bf16.mxu0 %vm4601_vm4, %v4600_v24 }
 0x411   : > { %v1392_v40 = vpop.f32.mrb[0].mxu1 }
 0x412   : > { %v3818_v41 = vpop.f32.mrb[1].mxu1  ;;  %v1450_v42 = vsel %vm1449_vm6, %v1392_v40, -inf }
 0x413   : > { %1451 = vmax.xlane.f32.xlu1 %v1450_v42  ;;  %v1395_v43 = vpop.f32.mrb[2].mxu1 }
 0x414   : > { %v3819_v44 = vpop.f32.mrb[3].mxu1  ;;  %v1453_v47 = vsel %vm1449_vm6, %v1395_v43, -inf }
 0x415   : > { %v1442_v45 = vpop.f32.mrb[4].mxu0 }
 0x416   : > { %v3824_v46 = vpop.f32.mrb[5].mxu0  ;;  %v1456_v48 = vsel %vm1449_vm6, %v1442_v45, -inf }
 0x417   : > { %1454 = vmax.xlane.f32.xlu1 %v1453_v47  ;;  %1457 = vmax.xlane.f32.xlu0 %v1456_v48  ;;  %v1445_v49 = vpop.f32.mrb[6].mxu0 }
 0x418   : > { %v3825_v50 = vpop.f32.mrb[7].mxu0  ;;  %v1459_v51 = vsel %vm1449_vm6, %v1445_v49, -inf }
 0x41b   : > { %1460 = vmax.xlane.f32.xlu1 %v1459_v51 }
 0x42c   : > { %1568 = vrot.lane.b32.xlu1 %v5160_v35, %s4603_s24 }
 0x42d   : > { %1615 = vrot.lane.b32.xlu0 %v5156_v34, %s4603_s24 }
 0x430   : > { %1664 = vrot.lane.b32.xlu1 %v5160_v35, %s4604_s2 }
 0x434   : > { %1715 = vrot.lane.b32.xlu1 %v5156_v34, %s4604_s2  ;;  %s5895_s2 = sld [smem:[#allocation36_spill]] }
 0x4a0   : > { %v1452_v52 = vpop.xlane.xlu1 %1451 }
 0x4a1   : > { %v1462_v53 = vsub.f32 %v1392_v40, %v1452_v52 }
 0x4a3   : > { %v1466_v58 = vmul.f32 1.442695, %v1462_v53 }
 0x4a4   : > { %v1455_v54 = vpop.xlane.xlu1 %1454  ;;  %v1458_v55 = vpop.xlane.xlu0 %1457 }
 0x4a5   : > { %v1464_v56 = vsub.f32 %v1442_v45, %v1458_v55  ;;  %v1463_v62 = vsub.f32 %v1395_v43, %v1455_v54 }
 0x4a7   : > { %v1470_v57 = vmul.f32 1.442695, %v1464_v56  ;;  %v1468_v1 = vmul.f32 1.442695, %v1463_v62 }
 0x4a8   : > { %v1616_v59 = vpop.permute.xlu0 %1615  ;;  %v1461_v60 = vpop.xlane.xlu1 %1460 }
 0x4a9   : > { %v1465_v61 = vsub.f32 %v1445_v49, %v1461_v60  ;;  %3833 = vmatpush3.bf16.msra.mxu0 %v1616_v59  ;;  %4124 = vpow2.f32 %v1470_v57 }
 0x4aa   : > { %3844 = vmatprep.subr.bf16.mxu0 %v4600_v24  ;;  %4126 = vpow2.f32 %v1466_v58 }
 0x4ab   : > { %v1472_v63 = vmul.f32 1.442695, %v1465_v61 }
 0x4ac   : > { %v1569_v0 = vpop.permute.xlu1 %1568 }
 0x4ad   : > { %3827 = vmatpush3.bf16.msra.mxu1 %v1569_v0  ;;  %4128 = vpow2.f32 %v1472_v63 }
 0x4ae   : > { %3838 = vmatprep.subr.bf16.mxu1 %v4600_v24  ;;  %4130 = vpow2.f32 %v1468_v1 }
 0x4b0   : > { %v1665_v10 = vpop.permute.xlu1 %1664 }
 0x4b1   : > { %v1670_v31 = vsel %vm1351_vm5, %v1665_v10, 0 }
 0x4b3   : > { %v4125_v2 = vpop.eup %4124 }
 0x4b4   : > { %v1480_v3 = vsel %vm1449_vm6, %v4125_v2, 0.0  ;;  %v4127_v4 = vpop.eup %4126  ;;  %v1716_v11 = vpop.permute.xlu1 %1715 }
 0x4b5   : > { %1481 = vadd.xlane.f32.xlu1 %v1480_v3  ;;  %v1474_v5 = vsel %vm1449_vm6, %v4127_v4, 0.0  ;;  %v1721_v25 = vsel %vm1351_vm5, %v1716_v11, 0 }
 0x4b7   : > { %v4129_v6 = vpop.eup %4128 }
 0x4b8   : > { %v1483_v7 = vsel %vm1449_vm6, %v4129_v6, 0.0  ;;  %v4131_v8 = vpop.eup %4130 }
 0x4b9   : > { %1475 = vadd.xlane.f32.xlu1 %v1474_v5  ;;  %v1477_v9 = vsel %vm1449_vm6, %v4131_v8, 0.0 }
 0x4bd   : > { %1484 = vadd.xlane.f32.xlu1 %v1483_v7 }
 0x4c1   : > { %1478 = vadd.xlane.f32.xlu1 %v1477_v9 }
 0x4d2   : > { %1662 = vrot.lane.b32.xlu1 %v5160_v35, %s4605_s27 }
 0x4d6   : > { %1713 = vrot.lane.b32.xlu1 %v5156_v34, %s4605_s27  ;;  %s5896_s27 = scalar_lea.vmem %s5895_s2, %s5065_s13 }
 0x542   : > { %v1482_v12 = vpop.xlane.xlu1 %1481 }
 0x543   : > { %4132 = vrcp.f32 %v1482_v12 }
 0x546   : > { %v1476_v13 = vpop.xlane.xlu1 %1475 }
 0x547   : > { %4134 = vrcp.f32 %v1476_v13 }
 0x54a   : > { %v1485_v14 = vpop.xlane.xlu1 %1484 }
 0x54b   : > { %4136 = vrcp.f32 %v1485_v14 }
 0x54d   : > { %v4133_v15 = vpop.eup %4132 }
 0x54e   : > { %v1492_v16 = vmul.f32 %v4133_v15, %v4125_v2  ;;  %v1479_v17 = vpop.xlane.xlu1 %1478 }
 0x54f   : > { %4138 = vrcp.f32 %v1479_v17 }
 0x550   : > { %2540 = vst.msk [vmem:[%s5109_s30 + $0x40] sm:$0xff] %vm1449_vm6, %v1492_v16 }
 0x551   : > { %v4135_v18 = vpop.eup %4134 }
 0x552   : > { %v1490_v19 = vmul.f32 %v4135_v18, %v4127_v4  ;;  %v1663_v27 = vpop.permute.xlu1 %1662 }
 0x554   : > { %2532 = vst.msk [vmem:[%s5109_s30] sm:$0xff] %vm1449_vm6, %v1490_v19 }
 0x555   : > { %v4137_v20 = vpop.eup %4136 }
 0x556   : > { %v1493_v21 = vmul.f32 %v4137_v20, %v4129_v6  ;;  %v1714_v36 = vpop.permute.xlu1 %1713 }
 0x558   : > { %2541 = vst.msk [vmem:[%s5109_s30 + $0x48] sm:$0xff] %vm1449_vm6, %v1493_v21  ;;  %v1567_v22 = vpack.c.bf16 %v1493_v21, %v1492_v16 }
 0x559   : > { %v4139_v23 = vpop.eup %4138 }
 0x55a   : > { %v1491_v26 = vmul.f32 %v4139_v23, %v4131_v8  ;;  %3835 = vmatmul.mubr.msk.bf16.vlgmr.msra.gmra.mrb[8].mxu0 %vm1449_vm6, %v1567_v22 }
 0x55b   : > { %3845 = vmatpush3.bf16.xpose.msra.mxu0 %v1721_v25  ;;  %3846 = vmatprep.mubr.msk.bf16.mxu0 %vm4601_vm4, %v4600_v24 }
 0x55c   : > { %2533 = vst.msk [vmem:[%s5109_s30 + $0x8] sm:$0xff] %vm1449_vm6, %v1491_v26  ;;  %v1566_v28 = vpack.c.bf16 %v1491_v26, %v1490_v19  ;;  %3856 = vmatprep.subr.bf16.mxu0 %v4600_v24 }
 0x55e   : > { %3829 = vmatmul.mubr.msk.bf16.vlgmr.msra.gmra.mrb[4].mxu1 %vm1449_vm6, %v1566_v28 }
 0x55f   : > { %3839 = vmatpush3.bf16.xpose.msra.mxu1 %v1670_v31  ;;  %3840 = vmatprep.mubr.msk.bf16.mxu1 %vm4601_vm4, %v4600_v24 }
 0x560   : > { %3850 = vmatprep.subr.bf16.mxu1 %v4600_v24 }
 0x562   : > { %3847 = vmatmul.mubr.msk.bf16.vlgmr.msra.gmra.mrb[12].mxu0 %vm1351_vm5, %v1714_v36 }
 0x563   : > { %3858 = vmatprep.mubr.msk.bf16.mxu0 %vm4601_vm4, %v4600_v24 }
 0x566   : > { %3841 = vmatmul.mubr.msk.bf16.vlgmr.msra.gmra.mrb[8].mxu1 %vm1351_vm5, %v1663_v27 }
 0x567   : > { %3852 = vmatprep.mubr.msk.bf16.mxu1 %vm4601_vm4, %v4600_v24 }
 0x62d   : > { %v5216_v37 = vpop.f32.mrb[8].mxu0 }
 0x62e   : > { %v3836_v38 = vpop.f32.mrb[9].mxu0 }
 0x62f   : > { %v5218_v39 = vpop.f32.mrb[10].mxu0 }
 0x630   : > { %v3837_v40 = vpop.f32.mrb[11].mxu0 }
 0x631   : > { %v5220_v41 = vpop.f32.mrb[4].mxu1 }
 0x632   : > { %v3830_v42 = vpop.f32.mrb[5].mxu1 }
 0x633   : > { %v5222_v43 = vpop.f32.mrb[6].mxu1 }
 0x634   : > { %v3831_v44 = vpop.f32.mrb[7].mxu1 }
 0x635   : > { %v1757_v45 = vpop.f32.mrb[12].mxu0 }
 0x636   : > { %v3848_v46 = vpop.f32.mrb[13].mxu0  ;;  %v1770_v55 = vsel %vm1449_vm6, %v1757_v45, -inf }
 0x637   : > { %v1760_v47 = vpop.f32.mrb[14].mxu0 }
 0x638   : > { %v3849_v48 = vpop.f32.mrb[15].mxu0  ;;  %v1773_v56 = vsel %vm1449_vm6, %v1760_v47, -inf }
 0x639   : > { %v1706_v49 = vpop.f32.mrb[8].mxu1 }
 0x63a   : > { %v3842_v50 = vpop.f32.mrb[9].mxu1  ;;  %v1764_v51 = vsel %vm1449_vm6, %v1706_v49, -inf }
 0x63b   : > { %1765 = vmax.xlane.f32.xlu0 %v1764_v51  ;;  %v1709_v52 = vpop.f32.mrb[10].mxu1 }
 0x63c   : > { %v3843_v53 = vpop.f32.mrb[11].mxu1  ;;  %v1767_v54 = vsel %vm1449_vm6, %v1709_v52, -inf }
 0x63d   : > { %1768 = vmax.xlane.f32.xlu1 %v1767_v54 }
 0x63f   : > { %1771 = vmax.xlane.f32.xlu0 %v1770_v55 }
 0x643   : > { %1774 = vmax.xlane.f32.xlu0 %v1773_v56 }
 0x64e   : > { %1858 = vrot.lane.b32.xlu1 %v5160_v35, %s4606_s5 }
 0x6c8   : > { %v1766_v57 = vpop.xlane.xlu0 %1765 }
 0x6c9   : > { %v1776_v59 = vsub.f32 %v1706_v49, %v1766_v57 }
 0x6ca   : > { %v1769_v58 = vpop.xlane.xlu1 %1768 }
 0x6cb   : > { %v1780_v63 = vmul.f32 1.442695, %v1776_v59  ;;  %v1777_v0 = vsub.f32 %v1709_v52, %v1769_v58 }
 0x6cc   : > { %v1772_v60 = vpop.xlane.xlu0 %1771 }
 0x6cd   : > { %v1778_v61 = vsub.f32 %v1757_v45, %v1772_v60  ;;  %v1782_v4 = vmul.f32 1.442695, %v1777_v0 }
 0x6ce   : > { %v1859_v62 = vpop.permute.xlu1 %1858 }
 0x6cf   : > { %v1784_v1 = vmul.f32 1.442695, %v1778_v61  ;;  %3851 = vmatpush3.bf16.msra.mxu1 %v1859_v62 }
 0x6d0   : > { %v1775_v2 = vpop.xlane.xlu0 %1774  ;;  %3862 = vmatprep.subr.bf16.mxu1 %v4600_v24 }
 0x6d1   : > { %4140 = vpow2.f32 %v1784_v1  ;;  %v1779_v3 = vsub.f32 %v1760_v47, %v1775_v2 }
 0x6d2   : > { %4142 = vpow2.f32 %v1780_v63 }
 0x6d3   : > { %v1786_v5 = vmul.f32 1.442695, %v1779_v3 }
 0x6d5   : > { %4144 = vpow2.f32 %v1786_v5 }
 0x6d6   : > { %4146 = vpow2.f32 %v1782_v4 }
 0x6db   : > { %v4141_v6 = vpop.eup %4140 }
 0x6dc   : > { %v1794_v7 = vsel %vm1449_vm6, %v4141_v6, 0.0  ;;  %v4143_v8 = vpop.eup %4142 }
 0x6dd   : > { %1795 = vadd.xlane.f32.xlu1 %v1794_v7  ;;  %v1788_v10 = vsel %vm1449_vm6, %v4143_v8, 0.0 }
 0x6df   : > { %v4145_v9 = vpop.eup %4144 }
 0x6e0   : > { %v1797_v11 = vsel %vm1449_vm6, %v4145_v9, 0.0  ;;  %v4147_v12 = vpop.eup %4146 }
 0x6e1   : > { %1789 = vadd.xlane.f32.xlu1 %v1788_v10  ;;  %1798 = vadd.xlane.f32.xlu0 %v1797_v11  ;;  %v1791_v13 = vsel %vm1449_vm6, %v4147_v12, 0.0 }
 0x6e5   : > { %1792 = vadd.xlane.f32.xlu0 %v1791_v13 }
 0x6f2   : > { %1954 = vrot.lane.b32.xlu1 %v5160_v35, %s4607_s6 }
 0x6f6   : > { %2005 = vrot.lane.b32.xlu1 %v5156_v34, %s4607_s6 }
 0x6fa   : > { %2003 = vrot.lane.b32.xlu1 %v5156_v34, %s4608_s7 }
 0x6fb   : > { %1905 = vrot.lane.b32.xlu0 %v5156_v34, %s4606_s5  ;;  %s4617_s5 = smov 32  }
 0x6ff   : > { %1952 = vrot.lane.b32.xlu0 %v5160_v35, %s4608_s7  ;;  %s5897_s7 = scalar_lea.vmem %s5767_s8, %s5065_s13 }
 0x76a   : > { %v1796_v14 = vpop.xlane.xlu1 %1795 }
 0x76b   : > { %4148 = vrcp.f32 %v1796_v14 }
 0x76e   : > { %v1790_v15 = vpop.xlane.xlu1 %1789  ;;  %v1799_v16 = vpop.xlane.xlu0 %1798 }
 0x76f   : > { %4150 = vrcp.f32 %v1790_v15 }
 0x770   : > { %4152 = vrcp.f32 %v1799_v16 }
 0x772   : > { %v1793_v17 = vpop.xlane.xlu0 %1792  ;;  %v1955_v20 = vpop.permute.xlu1 %1954 }
 0x773   : > { %4154 = vrcp.f32 %v1793_v17  ;;  %v1960_v42 = vsel %vm1351_vm5, %v1955_v20, 0 }
 0x775   : > { %v4149_v18 = vpop.eup %4148 }
 0x776   : > { %v1806_v19 = vmul.f32 %v4149_v18, %v4141_v6  ;;  %v1906_v21 = vpop.permute.xlu0 %1905  ;;  %v2006_v27 = vpop.permute.xlu1 %2005 }
 0x777   : > { %3857 = vmatpush3.bf16.msra.mxu0 %v1906_v21  ;;  %v2011_v38 = vsel %vm1351_vm5, %v2006_v27, 0 }
 0x778   : > { %2542 = vst.msk [vmem:[%s5109_s30 + $0x50] sm:$0xff] %vm1449_vm6, %v1806_v19  ;;  %3868 = vmatprep.subr.bf16.mxu0 %v4600_v24 }
 0x779   : > { %v4151_v22 = vpop.eup %4150 }
 0x77a   : > { %v4153_v23 = vpop.eup %4152  ;;  %v1804_v25 = vmul.f32 %v4151_v22, %v4143_v8  ;;  %v2004_v44 = vpop.permute.xlu1 %2003 }
 0x77b   : > { %v1807_v26 = vmul.f32 %v4153_v23, %v4145_v9  ;;  %v1953_v45 = vpop.permute.xlu0 %1952 }
 0x77c   : > { %2534 = vst.msk [vmem:[%s5109_s30 + $0x10] sm:$0xff] %vm1449_vm6, %v1804_v25 }
 0x77d   : > { %v4155_v28 = vpop.eup %4154  ;;  %2543 = vst.msk [vmem:[%s5109_s30 + $0x58] sm:$0xff] %vm1449_vm6, %v1807_v26  ;;  %v1857_v31 = vpack.c.bf16 %v1807_v26, %v1806_v19 }
 0x77e   : > { %v1805_v36 = vmul.f32 %v4155_v28, %v4147_v12 }
 0x77f   : > { %3859 = vmatmul.mubr.msk.bf16.vlgmr.msra.gmra.mrb[16].mxu0 %vm1449_vm6, %v1857_v31 }
 0x780   : > { %2535 = vst.msk [vmem:[%s5109_s30 + $0x18] sm:$0xff] %vm1449_vm6, %v1805_v36  ;;  %3869 = vmatpush3.bf16.xpose.msra.mxu0 %v2011_v38  ;;  %v1856_v40 = vpack.c.bf16 %v1805_v36, %v1804_v25  ;;  %3870 = vmatprep.mubr.msk.bf16.mxu0 %vm4601_vm4, %v4600_v24 }
 0x781   : > { %3880 = vmatprep.subr.bf16.mxu0 %v4600_v24 }
 0x782   : > { %3853 = vmatmul.mubr.msk.bf16.vlgmr.msra.gmra.mrb[12].mxu1 %vm1449_vm6, %v1856_v40 }
 0x783   : > { %3863 = vmatpush3.bf16.xpose.msra.mxu1 %v1960_v42  ;;  %3864 = vmatprep.mubr.msk.bf16.mxu1 %vm4601_vm4, %v4600_v24 }
 0x784   : > { %3874 = vmatprep.subr.bf16.mxu1 %v4600_v24 }
 0x787   : > { %3871 = vmatmul.mubr.msk.bf16.vlgmr.msra.gmra.mrb[20].mxu0 %vm1351_vm5, %v2004_v44 }
 0x788   : > { %3882 = vmatprep.mubr.msk.bf16.mxu0 %vm4601_vm4, %v4600_v24 }
 0x78a   : > { %3865 = vmatmul.mubr.msk.bf16.vlgmr.msra.gmra.mrb[16].mxu1 %vm1351_vm5, %v1953_v45 }
 0x78b   : > { %3876 = vmatprep.mubr.msk.bf16.mxu1 %vm4601_vm4, %v4600_v24 }
 0x852   : > { %v5266_v46 = vpop.f32.mrb[16].mxu0 }
 0x853   : > { %v3860_v47 = vpop.f32.mrb[17].mxu0 }
 0x854   : > { %v5268_v48 = vpop.f32.mrb[18].mxu0 }
 0x855   : > { %v4080_v49 = vpack.i.bf16 %v5268_v48, %v5266_v46  ;;  %v3861_v50 = vpop.f32.mrb[19].mxu0  ;;  %v5272_v51 = vpop.f32.mrb[12].mxu1 }
 0x856   : > { %v3854_v52 = vpop.f32.mrb[13].mxu1 }
 0x857   : > { %v5274_v53 = vpop.f32.mrb[14].mxu1 }
 0x858   : > { %v4075_v54 = vpack.i.bf16 %v5274_v53, %v5272_v51  ;;  %v3855_v55 = vpop.f32.mrb[15].mxu1 }
 0x85a   : > { %v2047_v56 = vpop.f32.mrb[20].mxu0 }
 0x85b   : > { %v3872_v57 = vpop.f32.mrb[21].mxu0  ;;  %v2060_v2 = vsel %vm1449_vm6, %v2047_v56, -inf }
 0x85c   : > { %v2050_v58 = vpop.f32.mrb[22].mxu0 }
 0x85d   : > { %v1996_v59 = vpop.f32.mrb[16].mxu1  ;;  %v3873_v60 = vpop.f32.mrb[23].mxu0  ;;  %v2063_v3 = vsel %vm1449_vm6, %v2050_v58, -inf }
 0x85e   : > { %v3866_v61 = vpop.f32.mrb[17].mxu1  ;;  %v2054_v62 = vsel %vm1449_vm6, %v1996_v59, -inf }
 0x85f   : > { %2055 = vmax.xlane.f32.xlu0 %v2054_v62  ;;  %v1999_v63 = vpop.f32.mrb[18].mxu1 }
 0x860   : > { %v3867_v0 = vpop.f32.mrb[19].mxu1  ;;  %v2057_v1 = vsel %vm1449_vm6, %v1999_v63, -inf }
 0x861   : > { %2058 = vmax.xlane.f32.xlu1 %v2057_v1 }
 0x863   : > { %2061 = vmax.xlane.f32.xlu0 %v2060_v2 }
 0x867   : > { %2064 = vmax.xlane.f32.xlu0 %v2063_v3 }
 0x872   : > { %2148 = vrot.lane.b32.xlu1 %v5160_v35, %s4609_s0 }
 0x8ec   : > { %v2056_v4 = vpop.xlane.xlu0 %2055 }
 0x8ed   : > { %v2066_v6 = vsub.f32 %v1996_v59, %v2056_v4 }
 0x8ee   : > { %v2059_v5 = vpop.xlane.xlu1 %2058 }
 0x8ef   : > { %v2070_v10 = vmul.f32 1.442695, %v2066_v6  ;;  %v2067_v11 = vsub.f32 %v1999_v63, %v2059_v5 }
 0x8f0   : > { %v2062_v7 = vpop.xlane.xlu0 %2061 }
 0x8f1   : > { %v2068_v8 = vsub.f32 %v2047_v56, %v2062_v7  ;;  %v2072_v15 = vmul.f32 1.442695, %v2067_v11 }
 0x8f2   : > { %v2149_v9 = vpop.permute.xlu1 %2148 }
 0x8f3   : > { %v2074_v12 = vmul.f32 1.442695, %v2068_v8  ;;  %3875 = vmatpush3.bf16.msra.mxu1 %v2149_v9 }
 0x8f4   : > { %v2065_v13 = vpop.xlane.xlu0 %2064  ;;  %3886 = vmatprep.subr.bf16.mxu1 %v4600_v24 }
 0x8f5   : > { %4156 = vpow2.f32 %v2074_v12  ;;  %v2069_v14 = vsub.f32 %v2050_v58, %v2065_v13 }
 0x8f6   : > { %4158 = vpow2.f32 %v2070_v10 }
 0x8f7   : > { %v2076_v16 = vmul.f32 1.442695, %v2069_v14 }
 0x8f9   : > { %4160 = vpow2.f32 %v2076_v16 }
 0x8fa   : > { %4162 = vpow2.f32 %v2072_v15 }
 0x8ff   : > { %v4157_v17 = vpop.eup %4156 }
 0x900   : > { %v2084_v18 = vsel %vm1449_vm6, %v4157_v17, 0.0  ;;  %v4159_v19 = vpop.eup %4158 }
 0x901   : > { %2085 = vadd.xlane.f32.xlu1 %v2084_v18  ;;  %v2078_v21 = vsel %vm1449_vm6, %v4159_v19, 0.0 }
 0x903   : > { %v4161_v20 = vpop.eup %4160 }
 0x904   : > { %v2087_v22 = vsel %vm1449_vm6, %v4161_v20, 0.0  ;;  %v4163_v23 = vpop.eup %4162 }
 0x905   : > { %2079 = vadd.xlane.f32.xlu1 %v2078_v21  ;;  %2088 = vadd.xlane.f32.xlu0 %v2087_v22  ;;  %v2081_v25 = vsel %vm1449_vm6, %v4163_v23, 0.0 }
 0x909   : > { %2082 = vadd.xlane.f32.xlu0 %v2081_v25 }
 0x916   : > { %2244 = vrot.lane.b32.xlu1 %v5160_v35, %s4610_s23 }
 0x91a   : > { %2295 = vrot.lane.b32.xlu1 %v5156_v34, %s4610_s23  ;;  %s5904_s23 = sld [smem:[#allocation42_spill]] (!%p3716_p9) }
 0x91e   : > { %2293 = vrot.lane.b32.xlu1 %v5156_v34, %s4611_s22 }
 0x91f   : > { %2195 = vrot.lane.b32.xlu0 %v5156_v34, %s4609_s0 }
 0x923   : > { %2242 = vrot.lane.b32.xlu0 %v5160_v35, %s4611_s22  ;;  %s5898_s22 = scalar_lea.vmem %s5768_s9, %s5065_s13 }
 0x98e   : > { %v2086_v26 = vpop.xlane.xlu1 %2085 }
 0x98f   : > { %4164 = vrcp.f32 %v2086_v26 }
 0x992   : > { %v2080_v27 = vpop.xlane.xlu1 %2079  ;;  %v2089_v28 = vpop.xlane.xlu0 %2088 }
 0x993   : > { %4166 = vrcp.f32 %v2080_v27 }
 0x994   : > { %4168 = vrcp.f32 %v2089_v28 }
 0x996   : > { %v2083_v31 = vpop.xlane.xlu0 %2082  ;;  %v2245_v40 = vpop.permute.xlu1 %2244 }
 0x997   : > { %4170 = vrcp.f32 %v2083_v31  ;;  %v2250_v60 = vsel %vm1351_vm5, %v2245_v40, 0 }
 0x999   : > { %v4165_v36 = vpop.eup %4164 }
 0x99a   : > { %v2096_v38 = vmul.f32 %v4165_v36, %v4157_v17  ;;  %v2196_v42 = vpop.permute.xlu0 %2195  ;;  %v2296_v52 = vpop.permute.xlu1 %2295 }
 0x99b   : > { %3881 = vmatpush3.bf16.msra.mxu0 %v2196_v42  ;;  %v2301_v58 = vsel %vm1351_vm5, %v2296_v52, 0 }
 0x99c   : > { %2544 = vst.msk [vmem:[%s5109_s30 + $0x60] sm:$0xff] %vm1449_vm6, %v2096_v38  ;;  %3892 = vmatprep.subr.bf16.mxu0 %v4600_v24 }
 0x99d   : > { %v4167_v44 = vpop.eup %4166 }
 0x99e   : > { %v4169_v45 = vpop.eup %4168  ;;  %v2094_v47 = vmul.f32 %v4167_v44, %v4159_v19  ;;  %v2294_v61 = vpop.permute.xlu1 %2293 }
 0x99f   : > { %v2097_v50 = vmul.f32 %v4169_v45, %v4161_v20  ;;  %v2243_v62 = vpop.permute.xlu0 %2242 }
 0x9a0   : > { %2536 = vst.msk [vmem:[%s5109_s30 + $0x20] sm:$0xff] %vm1449_vm6, %v2094_v47 }
 0x9a1   : > { %v4171_v55 = vpop.eup %4170  ;;  %2545 = vst.msk [vmem:[%s5109_s30 + $0x68] sm:$0xff] %vm1449_vm6, %v2097_v50  ;;  %v2147_v56 = vpack.c.bf16 %v2097_v50, %v2096_v38 }
 0x9a2   : > { %v2095_v57 = vmul.f32 %v4171_v55, %v4163_v23 }
 0x9a3   : > { %3883 = vmatmul.mubr.msk.bf16.vlgmr.msra.gmra.mrb[24].mxu0 %vm1449_vm6, %v2147_v56 }
 0x9a4   : > { %2537 = vst.msk [vmem:[%s5109_s30 + $0x28] sm:$0xff] %vm1449_vm6, %v2095_v57  ;;  %3893 = vmatpush3.bf16.xpose.msra.mxu0 %v2301_v58  ;;  %v2146_v59 = vpack.c.bf16 %v2095_v57, %v2094_v47  ;;  %3894 = vmatprep.mubr.msk.bf16.mxu0 %vm4601_vm4, %v4600_v24 }
 0x9a5   : > { %3904 = vmatprep.subr.bf16.mxu0 %v4600_v24 }
 0x9a6   : > { %3877 = vmatmul.mubr.msk.bf16.vlgmr.msra.gmra.mrb[20].mxu1 %vm1449_vm6, %v2146_v59 }
 0x9a7   : > { %3887 = vmatpush3.bf16.xpose.msra.mxu1 %v2250_v60  ;;  %3888 = vmatprep.mubr.msk.bf16.mxu1 %vm4601_vm4, %v4600_v24 }
 0x9a8   : > { %3898 = vmatprep.subr.bf16.mxu1 %v4600_v24 }
 0x9ab   : > { %3895 = vmatmul.mubr.msk.bf16.vlgmr.msra.gmra.mrb[28].mxu0 %vm1351_vm5, %v2294_v61 }
 0x9ac   : > { %3906 = vmatprep.mubr.msk.bf16.mxu0 %vm4601_vm4, %v4600_v24 }
 0x9ae   : > { %3889 = vmatmul.mubr.msk.bf16.vlgmr.msra.gmra.mrb[24].mxu1 %vm1351_vm5, %v2243_v62 }
 0x9af   : > { %3900 = vmatprep.mubr.msk.bf16.mxu1 %vm4601_vm4, %v4600_v24 }
 0xa76   : > { %v2235_v63 = vpop.f32.mrb[24].mxu0 }
 0xa77   : > { %v3884_v0 = vpop.f32.mrb[25].mxu0 }
 0xa78   : > { %v2238_v1 = vpop.f32.mrb[26].mxu0 }
 0xa79   : > { %v4090_v2 = vpack.i.bf16 %v2238_v1, %v2235_v63  ;;  %v3885_v3 = vpop.f32.mrb[27].mxu0  ;;  %v2188_v4 = vpop.f32.mrb[20].mxu1  ;;  %v4118_v1 = vld [vmem:[%s5075_s10] sm:$0xff]  }
 0xa7a   : > { %v3878_v5 = vpop.f32.mrb[21].mxu1 }
 0xa7b   : > { %v2191_v6 = vpop.f32.mrb[22].mxu1 }
 0xa7c   : > { %v4085_v7 = vpack.i.bf16 %v2191_v6, %v2188_v4  ;;  %v3879_v8 = vpop.f32.mrb[23].mxu1 }
 0xa7e   : > { %v2337_v9 = vpop.f32.mrb[28].mxu0 }
 0xa7f   : > { %v3896_v10 = vpop.f32.mrb[29].mxu0  ;;  %v2350_v18 = vsel %vm1449_vm6, %v2337_v9, -inf }
 0xa80   : > { %v2340_v11 = vpop.f32.mrb[30].mxu0 }
 0xa81   : > { %v2286_v12 = vpop.f32.mrb[24].mxu1  ;;  %v3897_v13 = vpop.f32.mrb[31].mxu0  ;;  %v2353_v19 = vsel %vm1449_vm6, %v2340_v11, -inf }
 0xa82   : > { %v3890_v14 = vpop.f32.mrb[25].mxu1  ;;  %v2344_v15 = vsel %vm1449_vm6, %v2286_v12, -inf }
 0xa83   : > { %2345 = vmax.xlane.f32.xlu0 %v2344_v15  ;;  %v2289_v24 = vpop.f32.mrb[26].mxu1 }
 0xa84   : > { %v3891_v16 = vpop.f32.mrb[27].mxu1  ;;  %v2347_v17 = vsel %vm1449_vm6, %v2289_v24, -inf }
 0xa85   : > { %2348 = vmax.xlane.f32.xlu1 %v2347_v17 }
 0xa87   : > { %2351 = vmax.xlane.f32.xlu0 %v2350_v18 }
 0xa8b   : > { %2354 = vmax.xlane.f32.xlu0 %v2353_v19 }
 0xb10   : > { %v2346_v20 = vpop.xlane.xlu0 %2345 }
 0xb11   : > { %v2356_v21 = vsub.f32 %v2286_v12, %v2346_v20 }
 0xb12   : > { %v2349_v22 = vpop.xlane.xlu1 %2348 }
 0xb13   : > { %v2360_v26 = vmul.f32 1.442695, %v2356_v21  ;;  %v2357_v27 = vsub.f32 %v2289_v24, %v2349_v22 }
 0xb14   : > { %v2352_v23 = vpop.xlane.xlu0 %2351 }
 0xb15   : > { %v2358_v25 = vsub.f32 %v2337_v9, %v2352_v23  ;;  %v2362_v38 = vmul.f32 1.442695, %v2357_v27 }
 0xb17   : > { %v2364_v28 = vmul.f32 1.442695, %v2358_v25 }
 0xb18   : > { %v2355_v31 = vpop.xlane.xlu0 %2354 }
 0xb19   : > { %4172 = vpow2.f32 %v2364_v28  ;;  %v2359_v36 = vsub.f32 %v2340_v11, %v2355_v31 }
 0xb1a   : > { %4174 = vpow2.f32 %v2360_v26 }
 0xb1b   : > { %v2366_v40 = vmul.f32 1.442695, %v2359_v36 }
 0xb1d   : > { %4176 = vpow2.f32 %v2366_v40 }
 0xb1e   : > { %4178 = vpow2.f32 %v2362_v38 }
 0xb23   : > { %v4173_v42 = vpop.eup %4172 }
 0xb24   : > { %v2374_v44 = vsel %vm1449_vm6, %v4173_v42, 0.0  ;;  %v4175_v45 = vpop.eup %4174 }
 0xb25   : > { %2375 = vadd.xlane.f32.xlu1 %v2374_v44  ;;  %v2368_v50 = vsel %vm1449_vm6, %v4175_v45, 0.0 }
 0xb27   : > { %v4177_v47 = vpop.eup %4176 }
 0xb28   : > { %v2377_v52 = vsel %vm1449_vm6, %v4177_v47, 0.0  ;;  %v4179_v55 = vpop.eup %4178 }
 0xb29   : > { %2369 = vadd.xlane.f32.xlu1 %v2368_v50  ;;  %2378 = vadd.xlane.f32.xlu0 %v2377_v52  ;;  %v2371_v56 = vsel %vm1449_vm6, %v4179_v55, 0.0 }
 0xb2d   : > { %2372 = vadd.xlane.f32.xlu0 %v2371_v56 }
 0xb3a   : > { %2438 = vrot.lane.b32.xlu1 %v5160_v35, %s4612_s4 }
 0xb3e   : > { %4076 = vrot.lane.b32.xlu1 %v4075_v54, %s4613_s20 }
 0xb42   : > { %4081 = vrot.lane.b32.xlu1 %v4080_v49, %s4613_s20 }
 0xb43   : > { %2485 = vrot.lane.b32.xlu0 %v5156_v34, %s4612_s4  ;;  %s5905_s4 = sld [smem:[#allocation43_spill]] (!%p3716_p9) }
 0xb46   : > { %4091 = vrot.lane.b32.xlu1 %v4090_v2, %s4614_s17  ;;  %v4119_v2 = vld [vmem:[%s5075_s10 + $0x8] sm:$0xff]   ;;  %s5907_s10 = sld [smem:[#allocation46_spill]] (!%p3716_p9) }
 0xb47   : > { %4086 = vrot.lane.b32.xlu0 %v4085_v7, %s4614_s17  ;;  %s5899_s17 = scalar_lea.vmem %s5770_s11, %s5065_s13 }
 0xbb2   : > { %v2376_v57 = vpop.xlane.xlu1 %2375 }
 0xbb3   : > { %4180 = vrcp.f32 %v2376_v57 }
 0xbb6   : > { %v2370_v35 = vpop.xlane.xlu1 %2369  ;;  %v2379_v58 = vpop.xlane.xlu0 %2378 }
 0xbb7   : > { %4182 = vrcp.f32 %v2370_v35 }
 0xbb8   : > { %4184 = vrcp.f32 %v2379_v58 }
 0xbba   : > { %v2439_v51 = vpop.permute.xlu1 %2438  ;;  %v2373_v53 = vpop.xlane.xlu0 %2372 }
 0xbbb   : > { %4186 = vrcp.f32 %v2373_v53  ;;  %3899 = vmatpush3.bf16.msra.mxu1 %v2439_v51 }
 0xbbc   : > { %3910 = vmatprep.subr.bf16.mxu1 %v4118_v1 }
 0xbbd   : > { %v4181_v46 = vpop.eup %4180 }
 0xbbe   : > { %v2386_v48 = vmul.f32 %v4181_v46, %v4173_v42  ;;  %v2486_v34 = vpop.permute.xlu0 %2485  ;;  %v4077_v13 = vpop.permute.xlu1 %4076 }
 0xbbf   : > { %3905 = vmatpush3.bf16.msra.mxu0 %v2486_v34  ;;  %v4079_v20 = vunpack.i.h.bf16 %v4077_v13  ;;  %v4078_v21 = vunpack.i.l.bf16 %v4077_v13  ;;  %v4276_v34 = vld [vmem:[#allocation2] sm:$0xff] }
 0xbc0   : > { %2546 = vst.msk [vmem:[%s5109_s30 + $0x70] sm:$0xff] %vm1449_vm6, %v2386_v48 }
 0xbc1   : > { %v4183_v49 = vpop.eup %4182  ;;  %v2613_v40 = vsel %vm1351_vm5, %v5222_v43, %v4079_v20 }
 0xbc2   : > { %v4185_v54 = vpop.eup %4184  ;;  %v2384_v59 = vmul.f32 %v4183_v49, %v4175_v45  ;;  %v4082_v14 = vpop.permute.xlu1 %4081 }
 0xbc3   : > { %v2387_v60 = vmul.f32 %v4185_v54, %v4177_v47  ;;  %v4084_v24 = vunpack.i.h.bf16 %v4082_v14  ;;  %v4083_v16 = vunpack.i.l.bf16 %v4082_v14  ;;  %v4087_v17 = vpop.permute.xlu0 %4086 }
 0xbc4   : > { %2538 = vst.msk [vmem:[%s5109_s30 + $0x30] sm:$0xff] %vm1449_vm6, %v2384_v59  ;;  %v4089_v22 = vunpack.i.h.bf16 %v4087_v17  ;;  %v4088_v23 = vunpack.i.l.bf16 %v4087_v17 }
 0xbc5   : > { %v4187_v61 = vpop.eup %4186  ;;  %2547 = vst.msk [vmem:[%s5109_s30 + $0x78] sm:$0xff] %vm1449_vm6, %v2387_v60  ;;  %v2437_v62 = vpack.c.bf16 %v2387_v60, %v2386_v48  ;;  %v2615_v26 = vsel %vm1351_vm5, %v5218_v39, %v4084_v24  ;;  %v2614_v27 = vsel %vm1351_vm5, %v5216_v37, %v4083_v16  ;;  %v2612_v39 = vsel %vm1351_vm5, %v5220_v41, %v4078_v21  ;;  %v3697_v41 = vld [vmem:[%s5896_s27] ss:$0 sm:$0xff] }
 0xbc6   : > { %v2385_v63 = vmul.f32 %v4187_v61, %v4179_v55  ;;  %v4092_v15 = vpop.permute.xlu1 %4091  ;;  %v2617_v52 = vsel %vm1449_vm6, %v2613_v40, %v4089_v22  ;;  %v2616_v55 = vsel %vm1449_vm6, %v2612_v39, %v4088_v23 }
 0xbc7   : > { %3907 = vmatmul.mubr.msk.bf16.vlgmr.msra.gmra.mrb[32].mxu0 %vm1449_vm6, %v2437_v62  ;;  %v4094_v18 = vunpack.i.h.bf16 %v4092_v15  ;;  %v4093_v19 = vunpack.i.l.bf16 %v4092_v15  ;;  %v4278_v62 = vld [vmem:[#allocation2 + $0x8] sm:$0xff] }
 0xbc8   : > { %2539 = vst.msk [vmem:[%s5109_s30 + $0x38] sm:$0xff] %vm1449_vm6, %v2385_v63  ;;  %v2436_v0 = vpack.c.bf16 %v2385_v63, %v2384_v59  ;;  %v4277_v59 = vld [vmem:[#allocation2 + $0x10] sm:$0xff] }
 0xbc9   : > { %v2618_v36 = vsel %vm1449_vm6, %v2614_v27, %v4093_v19  ;;  %v2619_v38 = vsel %vm1449_vm6, %v2615_v26, %v4094_v18 }
 0xbca   : > { %3901 = vmatmul.mubr.msk.bf16.vlgmr.msra.gmra.mrb[28].mxu1 %vm1449_vm6, %v2436_v0 }
 0xbcb   : > { %3911 = vmatpush3.bf16.msra.mxu1 %v4118_v1 }
 0xbcc   : > { %3912 = vmatprep.subr.bf16.mxu1 %v4119_v2 }
 0xbcf   : > { %3913 = vmatpush3.bf16.msra.mxu1 %v4119_v2  ;;  %v4279_v2 = vld [vmem:[#allocation2 + $0x18] sm:$0xff] }
 0xc9a   : > { %v2525_v3 = vpop.f32.mrb[32].mxu0 }
 0xc9b   : > { %v3908_v4 = vpop.f32.mrb[33].mxu0 }
 0xc9c   : > { %v2528_v5 = vpop.f32.mrb[34].mxu0 }
 0xc9d   : > { %v4100_v6 = vpack.i.bf16 %v2528_v5, %v2525_v3  ;;  %v3909_v7 = vpop.f32.mrb[35].mxu0  ;;  %v2478_v8 = vpop.f32.mrb[28].mxu1 }
 0xc9e   : > { %v3902_v9 = vpop.f32.mrb[29].mxu1  ;;  %v3673_v7 = vmul.f32 -5.0, %v5150_v32 }
 0xc9f   : > { %4101 = vrot.lane.b32.xlu1 %v4100_v6, %s4615_s28  ;;  %v2481_v10 = vpop.f32.mrb[30].mxu1  ;;  %v4616_v6 = vmov 96   ;;  %v3675_v9 = vmul.f32 -5.0, %v5146_v29 }
 0xca0   : > { %v4095_v11 = vpack.i.bf16 %v2481_v10, %v2478_v8  ;;  %v3903_v12 = vpop.f32.mrb[31].mxu1  ;;  %4105 = vset.pattern.permute.xlu1 %v4616_v6  ;;  %4106 = vset.pattern.permute.xlu0 %v4616_v6  ;;  %v3674_v8 = vmul.f32 -5.0, %v5152_v33  ;;  %v1283_v10 = vmul.f32 1.442695, %v3673_v7 }
 0xca1   : > { %v3676_v12 = vmul.f32 -5.0, %v5148_v30  ;;  %v1287_v13 = vmul.f32 1.442695, %v3675_v9 }
 0xca2   : > { %4096 = vrot.lane.b32.xlu0 %v4095_v11, %s4615_s28  ;;  %v1285_v11 = vmul.f32 1.442695, %v3674_v8  ;;  %4188 = vpow2.f32 %v1283_v10 }
 0xca3   : > { %v1289_v14 = vmul.f32 1.442695, %v3676_v12 }
 0xca4   : > { %4190 = vpow2.f32 %v1285_v11 }
 0xca5   : > { %4192 = vpow2.f32 %v1287_v13 }
 0xca6   : > { %4194 = vpow2.f32 %v1289_v14  ;;  %v4120_v14 = vld [vmem:[%s893_s15] sm:$0xff]  }
 0xca7   : > { %3918 = vmatprep.subr.bf16.mxu0 %v4120_v14 }
 0xca8   : > { %3919 = vmatpush3.bf16.msra.mxu0 %v4120_v14 }
 0xcac   : > { %v4189_v15 = vpop.eup %4188 }
 0xcad   : > { %v1291_v17 = vadd.f32 1.0, %v4189_v15 }
 0xcae   : > { %v4191_v24 = vpop.eup %4190 }
 0xcaf   : > { %v4193_v16 = vpop.eup %4192  ;;  %v1292_v18 = vadd.f32 1.0, %v4191_v24  ;;  %4196 = vrcp.f32 %v1291_v17  ;;  %v4618_v24 = vmov 97  }
 0xcb0   : > { %v4195_v32 = vpop.eup %4194  ;;  %v1293_v19 = vadd.f32 1.0, %v4193_v16  ;;  %v4121_v16 = vld [vmem:[%s893_s15 + $0x8] sm:$0xff]  }
 0xcb1   : > { %4198 = vrcp.f32 %v1292_v18  ;;  %v1294_v29 = vadd.f32 1.0, %v4195_v32  ;;  %3920 = vmatprep.subr.bf16.mxu0 %v4121_v16 }
 0xcb2   : > { %4200 = vrcp.f32 %v1293_v19  ;;  %3921 = vmatpush3.bf16.msra.mxu0 %v4121_v16 }
 0xcb3   : > { %4202 = vrcp.f32 %v1294_v29  ;;  %v4619_v29 = vmov 98  }
 0xcb9   : > { %v4197_v33 = vpop.eup %4196 }
 0xcba   : > { %v1303_v21 = vadd.f32 1e-05, %v4197_v33  ;;  %v4620_v33 = vmov 99  }
 0xcbb   : > { %v4199_v30 = vpop.eup %4198 }
 0xcbc   : > { %v4201_v20 = vpop.eup %4200  ;;  %v1304_v22 = vadd.f32 1e-05, %v4199_v30 }
 0xcbd   : > { %v4203_v23 = vpop.eup %4202  ;;  %v1305_v26 = vadd.f32 1e-05, %v4201_v20 }
 0xd11   : > { %v4102_v25 = vpop.permute.xlu1 %4101 }
 0xd12   : > { %v4104_v28 = vunpack.i.h.bf16 %v4102_v25  ;;  %v4103_v31 = vunpack.i.l.bf16 %v4102_v25 }
 0xd14   : > { %v2624_v42 = vsel %vm2620_vm7, %v2619_v38, %v4104_v28  ;;  %v2623_v44 = vsel %vm2620_vm7, %v2618_v36, %v4103_v31  ;;  %v4097_v45 = vpop.permute.xlu0 %4096  ;;  %v1307_v28 = vmul.f32 1.0986123, %v1303_v21  ;;  %v1308_v36 = vmul.f32 1.0986123, %v1304_v22 }
 0xd15   : > { %v2626_v47 = vpack.c.bf16 %v2624_v42, %v2623_v44  ;;  %v4099_v37 = vunpack.i.h.bf16 %v4097_v45  ;;  %v4098_v50 = vunpack.i.l.bf16 %v4097_v45  ;;  %v1306_v42 = vadd.f32 1e-05, %v4203_v23 }
 0xd16   : > { %v1309_v45 = vmul.f32 1.0986123, %v1305_v26 }
 0xd17   : > { %v2621_v56 = vsel %vm2620_vm7, %v2616_v55, %v4098_v50  ;;  %v2622_v57 = vsel %vm2620_vm7, %v2617_v52, %v4099_v37  ;;  %v1311_v50 = vmul.f32 1.442695, %v1307_v28  ;;  %v1313_v52 = vmul.f32 1.442695, %v1308_v36 }
 0xd18   : > { %v2625_v43 = vpack.c.bf16 %v2622_v57, %v2621_v56 }
 0xd19   : > { %4204 = vpow2.f32 %v1311_v50 }
 0xd1a   : > { %3914 = vmatprep.mubr.msk.bf16.mxu1 %vm1219_vm3, %v2625_v43  ;;  %v1310_v43 = vmul.f32 1.0986123, %v1306_v42  ;;  %4206 = vpow2.f32 %v1313_v52 }
 0xd1b   : > { %3915 = vmatmul.mubr.msk.bf16.vlgmr.msra.gmra.mrb[32].mxu1 %vm1219_vm3, %v2626_v47 }
 0xdee   : > { %v3916_v35 = vpop.f32.mrb[32].mxu1 }
 0xdef   : > { %v2690_v58 = vpop.f32.mrb[33].mxu1  ;;  %v2699_v51 = vadd.f32 %v3916_v35, %v3697_v41  ;;  %v1315_v35 = vmul.f32 1.442695, %v1309_v45 }
 0xdf0   : > { %v2691_v53 = vadd.f32 %v3697_v41, %v2690_v58  ;;  %v3917_v46 = vpop.f32.mrb[34].mxu1 }
 0xdf1   : > { %v2693_v48 = vpop.f32.mrb[35].mxu1  ;;  %v5375_v60 = vadd.f32 %v4277_v59, %v2699_v51  ;;  %v2702_v61 = vadd.f32 %v3917_v46, %v3697_v41  ;;  %4208 = vpow2.f32 %v1315_v35 }
 0xdf2   : > { %v5373_v49 = vadd.f32 %v4276_v34, %v2691_v53  ;;  %v2694_v54 = vadd.f32 %v3697_v41, %v2693_v48  ;;  %v1317_v34 = vmul.f32 1.442695, %v1310_v43  ;;  %v5457_v43 = vld [vmem:[#allocation6 + $0x8] sm:$0xff] }
 0xdf3   : > { %v5383_v3 = vadd.f32 %v4279_v2, %v2702_v61  ;;  %v2717_v4 = vsel %vm1219_vm3, %v5375_v60, 0.0  ;;  %v4205_v61 = vpop.eup %4204 }
 0xdf4   : > { %v5377_v63 = vadd.f32 %v4278_v62, %v2694_v54  ;;  %v2711_v0 = vsel %vm1219_vm3, %v5373_v49, 0.0  ;;  %4210 = vpow2.f32 %v1317_v34  ;;  %v4207_v62 = vpop.eup %4206 }
 0xdf5   : > { %2712 = vadd.xlane.f32.xlu0 %v2711_v0  ;;  %v2720_v5 = vsel %vm1219_vm3, %v5383_v3, 0.0  ;;  %v3677_v0 = vadd.f32 -1.0, %v4205_v61  ;;  %v3678_v2 = vadd.f32 -1.0, %v4207_v62 }
 0xdf6   : > { %v2714_v1 = vsel %vm1219_vm3, %v5377_v63, 0.0 }
 0xdf7   : > { %2715 = vadd.xlane.f32.xlu1 %v2714_v1  ;;  %4212 = vrcp.f32 %v3677_v0 }
 0xdf8   : > { %4214 = vrcp.f32 %v3678_v2 }
 0xdf9   : > { %2718 = vadd.xlane.f32.xlu0 %v2717_v4 }
 0xdfb   : > { %v4209_v1 = vpop.eup %4208 }
 0xdfd   : > { %2721 = vadd.xlane.f32.xlu0 %v2720_v5  ;;  %v3679_v5 = vadd.f32 -1.0, %v4209_v1 }
 0xdfe   : > { %v4211_v4 = vpop.eup %4210 }
 0xdff   : > { %v3680_v6 = vadd.f32 -1.0, %v4211_v4  ;;  %4216 = vrcp.f32 %v3679_v5 }
 0xe01   : > { %4218 = vrcp.f32 %v3680_v6  ;;  %v4213_v7 = vpop.eup %4212 }
 0xe02   : > { %v4215_v8 = vpop.eup %4214  ;;  %v1506_v9 = vmul.f32 %v4213_v7, %v4213_v7  ;;  %v5425_v17 = vmul.f32 0.3989423, %v4213_v7 }
 0xe03   : > { %v1507_v11 = vmul.f32 %v4215_v8, %v4215_v8  ;;  %v5428_v18 = vmul.f32 0.3989423, %v4215_v8 }
 0xe09   : > { %v4217_v10 = vpop.eup %4216 }
 0xe0a   : > { %v1508_v13 = vmul.f32 %v4217_v10, %v4217_v10  ;;  %v5431_v32 = vmul.f32 0.3989423, %v4217_v10 }
 0xe0b   : > { %v4219_v12 = vpop.eup %4218 }
 0xe0c   : > { %v5419_v15 = vmul.f32 %v4219_v12, %v4219_v12  ;;  %v5434_v19 = vmul.f32 0.3989423, %v4219_v12 }
 0xe82   : > { %v2713_v25 = vpop.xlane.xlu0 %2712 }
 0xe83   : > { %v2724_v27 = vmul.f32 0.03125, %v2713_v25 }
 0xe84   : > { %v2716_v31 = vpop.xlane.xlu1 %2715 }
 0xe85   : > { %v5394_v38 = vsub.f32 %v5373_v49, %v2724_v27  ;;  %v2725_v40 = vmul.f32 0.03125, %v2716_v31 }
 0xe86   : > { %v2719_v44 = vpop.xlane.xlu0 %2718 }
 0xe87   : > { %v5397_v39 = vsub.f32 %v5377_v63, %v2725_v40  ;;  %v2726_v47 = vmul.f32 0.03125, %v2719_v44  ;;  %v2732_v37 = vmul.f32 %v5394_v38, %v5394_v38 }
 0xe89   : > { %v5402_v55 = vsub.f32 %v5375_v60, %v2726_v47  ;;  %v2736_v56 = vsel %vm1219_vm3, %v2732_v37, 0.0  ;;  %v2733_v57 = vmul.f32 %v5397_v39, %v5397_v39  ;;  %v3702_v37 = vld [vmem:[%s5897_s7] ss:$0 sm:$0xff] }
 0xe8a   : > { %2737 = vadd.xlane.f32.xlu1 %v2736_v56  ;;  %v2722_v41 = vpop.xlane.xlu0 %2721 }
 0xe8b   : > { %v2727_v58 = vmul.f32 0.03125, %v2722_v41  ;;  %v2739_v51 = vsel %vm1219_vm3, %v2733_v57, 0.0  ;;  %v2734_v53 = vmul.f32 %v5402_v55, %v5402_v55  ;;  %v5459_v41 = vld [vmem:[#allocation6] sm:$0xff] }
 0xe8c   : > { %2740 = vadd.xlane.f32.xlu0 %v2739_v51  ;;  %v3703_v51 = vld [vmem:[%s5898_s22] ss:$0 sm:$0xff] }
 0xe8d   : > { %v5411_v46 = vsub.f32 %v5383_v3, %v2727_v58  ;;  %v2742_v48 = vsel %vm1219_vm3, %v2734_v53, 0.0 }
 0xe8e   : > { %2743 = vadd.xlane.f32.xlu1 %v2742_v48 }
 0xe8f   : > { %v2735_v54 = vmul.f32 %v5411_v46, %v5411_v46 }
 0xe91   : > { %v2745_v59 = vsel %vm1219_vm3, %v2735_v54, 0.0 }
 0xe92   : > { %2746 = vadd.xlane.f32.xlu0 %v2745_v59 }
 0xe9f   : > { %1327 = vrot.lane.b32.xlu1 %v3677_v0, %s4617_s5 }
 0xea3   : > { %1331 = vrot.lane.b32.xlu1 %v3679_v5, %s4617_s5 }
 0xea7   : > { %1333 = vrot.lane.b32.xlu1 %v3680_v6, %s4617_s5 }
 0xea8   : > { %1329 = vrot.lane.b32.xlu0 %v3678_v2, %s4617_s5 }
 0xeab   : > { %1512 = vperm.xlu1 %4105, %v1506_v9  }
 0xeac   : > { %1517 = vperm.xlu0 %4106, %v1507_v11  }
 0xeaf   : > { %1522 = vperm.xlu1 %4105, %v1508_v13  }
 0xeb0   : > { %4108 = vset.pattern.permute.xlu0 %v4618_v24 }
 0xeb1   : > { %1821 = vperm.xlu0 %4108, %v5419_v15  }
 0xeb3   : > { %1527 = vperm.xlu1 %4105, %v5419_v15  }
 0xeb7   : > { %1544 = vperm.xlu1 %4105, %v5425_v17  }
 0xebb   : > { %1549 = vperm.xlu1 %4105, %v5428_v18  }
 0xebf   : > { %1554 = vperm.xlu1 %4105, %v5431_v32  }
 0xec3   : > { %1559 = vperm.xlu1 %4105, %v5434_v19  }
 0xec7   : > { %4107 = vset.pattern.permute.xlu1 %v4618_v24 }
 0xec8   : > { %1809 = vperm.xlu1 %4107, %v1506_v9  }
 0xecc   : > { %1813 = vperm.xlu1 %4107, %v1507_v11  }
 0xed0   : > { %1817 = vperm.xlu1 %4107, %v1508_v13  }
 0xed4   : > { %4109 = vset.pattern.permute.xlu1 %v4619_v29 }
 0xed5   : > { %2099 = vperm.xlu1 %4109, %v1506_v9  }
 0xed9   : > { %2103 = vperm.xlu1 %4109, %v1507_v11  }
 0xedd   : > { %2107 = vperm.xlu1 %4109, %v1508_v13  }
 0xee1   : > { %2111 = vperm.xlu1 %4109, %v5419_v15  }
 0xee5   : > { %4110 = vset.pattern.permute.xlu1 %v4620_v33 }
 0xee6   : > { %2389 = vperm.xlu1 %4110, %v1506_v9  }
 0xeea   : > { %2393 = vperm.xlu1 %4110, %v1507_v11  }
 0xeee   : > { %2397 = vperm.xlu1 %4110, %v1508_v13  }
 0xef2   : > { %4111 = vset.pattern.permute.xlu1 %v4618_v24 }
 0xef3   : > { %1837 = vperm.xlu1 %4111, %v5425_v17  }
 0xef7   : > { %1841 = vperm.xlu1 %4111, %v5428_v18  }
 0xf17   : > { %v2738_v30 = vpop.xlane.xlu1 %2737 }
 0xf18   : > { %v2748_v20 = vmul.f32 0.03125, %v2738_v30 }
 0xf19   : > { %v2741_v21 = vpop.xlane.xlu0 %2740 }
 0xf1a   : > { %v2752_v22 = vadd.f32 1e-05, %v2748_v20  ;;  %v2749_v23 = vmul.f32 0.03125, %v2741_v21 }
 0xf1b   : > { %v2744_v25 = vpop.xlane.xlu1 %2743 }
 0xf1c   : > { %4220 = vrsqrt.f32 %v2752_v22  ;;  %v2753_v26 = vadd.f32 1e-05, %v2749_v23  ;;  %v2750_v27 = vmul.f32 0.03125, %v2744_v25 }
 0xf1e   : > { %4222 = vrsqrt.f32 %v2753_v26  ;;  %v2754_v28 = vadd.f32 1e-05, %v2750_v27 }
 0xf1f   : > { %v2747_v31 = vpop.xlane.xlu0 %2746  ;;  %v1328_v36 = vpop.permute.xlu1 %1327 }
 0xf20   : > { %4224 = vrsqrt.f32 %v2754_v28  ;;  %v2751_v40 = vmul.f32 0.03125, %v2747_v31  ;;  %1340 = vst.msk [vmem:[%s5104_s29] sm:$0xff] %vm1339_vm8, %v1328_v36 }
 0xf22   : > { %v2755_v42 = vadd.f32 1e-05, %v2751_v40 }
 0xf23   : > { %v1330_v44 = vpop.permute.xlu0 %1329  ;;  %v1332_v45 = vpop.permute.xlu1 %1331 }
 0xf24   : > { %4226 = vrsqrt.f32 %v2755_v42  ;;  %1341 = vst.msk [vmem:[%s5104_s29 + $0x8] sm:$0xff] %vm1339_vm8, %v1330_v44  ;;  %1342 = vst.msk [vmem:[%s5104_s29 + $0x10] sm:$0xff] %vm1339_vm8, %v1332_v45 }
 0xf26   : > { %v4221_v47 = vpop.eup %4220 }
 0xf27   : > { %v2760_v50 = vmul.f32 %v4221_v47, %v5394_v38  ;;  %v1334_v52 = vpop.permute.xlu1 %1333 }
 0xf28   : > { %v4223_v56 = vpop.eup %4222  ;;  %1343 = vst.msk [vmem:[%s5104_s29 + $0x18] sm:$0xff] %vm1339_vm8, %v1334_v52 }
 0xf29   : > { %v2761_v57 = vmul.f32 %v4223_v56, %v5397_v39  ;;  %v2770_v35 = vmul.f32 %v3702_v37, %v2760_v50 }
 0xf2a   : > { %v4225_v58 = vpop.eup %4224 }
 0xf2b   : > { %v2762_v53 = vmul.f32 %v4225_v58, %v5402_v55  ;;  %v1518_v38 = vpop.permute.xlu0 %1517  ;;  %v1513_v48 = vpop.permute.xlu1 %1512  ;;  %v2771_v34 = vmul.f32 %v3702_v37, %v2761_v57  ;;  %v2780_v59 = vadd.f32 %v3703_v51, %v2770_v35 }
 0xf2c   : > { %v1531_v54 = vmul.f32 %v1518_v38, %v5457_v43  ;;  %v1530_v39 = vmul.f32 %v1513_v48, %v5459_v41 }
 0xf2d   : > { %v2781_v61 = vadd.f32 %v3703_v51, %v2771_v34  ;;  %v2772_v2 = vmul.f32 %v3702_v37, %v2762_v53 }
 0xf2e   : > { %v4227_v62 = vpop.eup %4226  ;;  %v1536_v0 = vmul.f32 1.442695, %v1531_v54  ;;  %v1534_v1 = vmul.f32 1.442695, %v1530_v39  ;;  %v4122_v39 = vld [vmem:[%s902_s12] sm:$0xff]  }
 0xf2f   : > { %v2763_v4 = vmul.f32 %v4227_v62, %v5411_v46  ;;  %v1523_v5 = vpop.permute.xlu1 %1522  ;;  %v2784_v6 = vpack.c.bf16 %v2781_v61, %v2780_v59  ;;  %v2782_v10 = vadd.f32 %v3703_v51, %v2772_v2  ;;  %3926 = vmatprep.subr.bf16.mxu1 %v4122_v39  ;;  %v4123_v59 = vld [vmem:[%s902_s12 + $0x8] sm:$0xff]   ;;  %v3704_v61 = vld [vmem:[%s5899_s17] ss:$0 sm:$0xff] }
 0xf30   : > { %4228 = vpow2.f32 %v1536_v0  ;;  %v1532_v55 = vmul.f32 %v1523_v5, %v5459_v41  ;;  %3927 = vmatpush3.bf16.msra.mxu1 %v4122_v39 }
 0xf31   : > { %v2773_v7 = vmul.f32 %v3702_v37, %v2763_v4  ;;  %4230 = vpow2.f32 %v1534_v1  ;;  %3922 = vmatprep.mubr.msk.bf16.mxu0 %vm1219_vm3, %v2784_v6  ;;  %3928 = vmatprep.subr.bf16.mxu1 %v4123_v59 }
 0xf32   : > { %v1538_v8 = vmul.f32 1.442695, %v1532_v55 }
 0xf33   : > { %v1528_v9 = vpop.permute.xlu1 %1527  ;;  %v2783_v11 = vadd.f32 %v3703_v51, %v2773_v7 }
 0xf34   : > { %4232 = vpow2.f32 %v1538_v8  ;;  %v1533_v12 = vmul.f32 %v1528_v9, %v5457_v43  ;;  %3929 = vmatpush3.bf16.msra.mxu1 %v4123_v59 }
 0xf35   : > { %v2785_v13 = vpack.c.bf16 %v2783_v11, %v2782_v10 }
 0xf36   : > { %v1540_v46 = vmul.f32 1.442695, %v1533_v12 }
 0xf37   : > { %3923 = vmatmul.mubr.msk.bf16.vlgmr.msra.gmra.mrb[36].mxu0 %vm1219_vm3, %v2785_v13  ;;  %v1545_v14 = vpop.permute.xlu1 %1544 }
 0xf38   : > { %4234 = vpow2.f32 %v1540_v46 }
 0xf3a   : > { %v4229_v24 = vpop.eup %4228 }
 0xf3b   : > { %v4231_v16 = vpop.eup %4230  ;;  %v1550_v30 = vpop.permute.xlu1 %1549 }
 0xf3c   : > { %v1562_v20 = vmul.f32 %v4231_v16, %v1545_v14  ;;  %v1563_v21 = vmul.f32 %v4229_v24, %v1550_v30 }
 0xf3e   : > { %v4233_v22 = vpop.eup %4232  ;;  %2548 = vst.msk [vmem:[%s5111_s14] sm:$0xff] %vm1449_vm6, %v1562_v20  ;;  %2549 = vst.msk [vmem:[%s5111_s14 + $0x8] sm:$0xff] %vm1449_vm6, %v1563_v21 }
 0xf3f   : > { %v1555_v23 = vpop.permute.xlu1 %1554 }
 0xf40   : > { %v1564_v25 = vmul.f32 %v4233_v22, %v1555_v23 }
 0xf42   : > { %v4235_v26 = vpop.eup %4234  ;;  %2556 = vst.msk [vmem:[%s5111_s14 + $0x40] sm:$0xff] %vm1449_vm6, %v1564_v25 }
 0xf43   : > { %v1560_v27 = vpop.permute.xlu1 %1559 }
 0xf44   : > { %v1565_v28 = vmul.f32 %v4235_v26, %v1560_v27 }
 0xf46   : > { %2557 = vst.msk [vmem:[%s5111_s14 + $0x48] sm:$0xff] %vm1449_vm6, %v1565_v28 }
 0xf47   : > { %v1810_v31 = vpop.permute.xlu1 %1809 }
 0xf48   : > { %v1824_v47 = vmul.f32 %v1810_v31, %v5459_v41 }
 0xf4a   : > { %v1828_v50 = vmul.f32 1.442695, %v1824_v47 }
 0xf4b   : > { %v1814_v36 = vpop.permute.xlu1 %1813 }
 0xf4c   : > { %v1825_v52 = vmul.f32 %v1814_v36, %v5457_v43  ;;  %4236 = vpow2.f32 %v1828_v50 }
 0xf4e   : > { %v1830_v57 = vmul.f32 1.442695, %v1825_v52 }
 0xf4f   : > { %v5482_v40 = vpop.permute.xlu1 %1817 }
 0xf50   : > { %4238 = vpow2.f32 %v1830_v57 }
 0xf54   : > { %v5484_v42 = vpop.permute.xlu1 %2099 }
 0xf56   : > { %v4237_v51 = vpop.eup %4236 }
 0xf58   : > { %v5486_v44 = vpop.permute.xlu1 %2103 }
 0xf5a   : > { %v4239_v48 = vpop.eup %4238 }
 0xf5c   : > { %v5488_v45 = vpop.permute.xlu1 %2107 }
 0xf60   : > { %v5491_v37 = vpop.permute.xlu1 %2111 }
 0xf65   : > { %v5494_v56 = vpop.permute.xlu1 %2389 }
 0xf69   : > { %v5496_v35 = vpop.permute.xlu1 %2393 }
 0xf6d   : > { %v5498_v58 = vpop.permute.xlu1 %2397 }
 0xf72   : > { %v1838_v53 = vpop.permute.xlu1 %1837 }
 0xf73   : > { %v1852_v38 = vmul.f32 %v4237_v51, %v1838_v53 }
 0xf75   : > { %2550 = vst.msk [vmem:[%s5111_s14 + $0x10] sm:$0xff] %vm1449_vm6, %v1852_v38 }
 0xf76   : > { %v1842_v34 = vpop.permute.xlu1 %1841 }
 0xf77   : > { %v1853_v54 = vmul.f32 %v4239_v48, %v1842_v34 }
 0xf79   : > { %2551 = vst.msk [vmem:[%s5111_s14 + $0x18] sm:$0xff] %vm1449_vm6, %v1853_v54 }
0x100a   : > { %v3924_v62 = vpop.f32.mrb[36].mxu0 }
0x100b   : > { %v2858_v0 = vadd.f32 %v3924_v62, %v3704_v61  ;;  %v2849_v1 = vpop.f32.mrb[37].mxu0 }
0x100c   : > { %v2850_v2 = vadd.f32 %v3704_v61, %v2849_v1  ;;  %v3925_v4 = vpop.f32.mrb[38].mxu0 }
0x100d   : > { %v2866_v5 = vmul.f32 %v2858_v0, %v2858_v0  ;;  %v2861_v6 = vadd.f32 %v3925_v4, %v3704_v61  ;;  %v2852_v55 = vpop.f32.mrb[39].mxu0 }
0x100e   : > { %v2864_v7 = vmul.f32 %v2850_v2, %v2850_v2  ;;  %v2853_v8 = vadd.f32 %v3704_v61, %v2852_v55 }
0x100f   : > { %v2870_v9 = vmul.f32 %v2866_v5, %v2858_v0  ;;  %v2867_v10 = vmul.f32 %v2861_v6, %v2861_v6  ;;  %v3709_v5 = vld [vmem:[%s1068_s19] ss:$0 sm:$0xff] }
0x1010   : > { %v2868_v11 = vmul.f32 %v2864_v7, %v2850_v2  ;;  %v2865_v12 = vmul.f32 %v2853_v8, %v2853_v8 }
0x1011   : > { %v2874_v13 = vmul.f32 0.044715, %v2870_v9  ;;  %v2871_v46 = vmul.f32 %v2867_v10, %v2861_v6 }
0x1012   : > { %v2872_v14 = vmul.f32 0.044715, %v2868_v11  ;;  %v2869_v24 = vmul.f32 %v2865_v12, %v2853_v8 }
0x1013   : > { %v2878_v16 = vadd.f32 %v2874_v13, %v2858_v0  ;;  %v2875_v30 = vmul.f32 0.044715, %v2871_v46 }
0x1014   : > { %v2876_v20 = vadd.f32 %v2872_v14, %v2850_v2  ;;  %v2873_v21 = vmul.f32 0.044715, %v2869_v24 }
0x1015   : > { %v2882_v22 = vmul.f32 0.7978846, %v2878_v16  ;;  %v2879_v23 = vadd.f32 %v2875_v30, %v2861_v6 }
0x1016   : > { %v2880_v25 = vmul.f32 0.7978846, %v2876_v20  ;;  %v2877_v26 = vadd.f32 %v2873_v21, %v2853_v8  ;;  %v2116_v20 = vmul.f32 %v5488_v45, %v5459_v41 }
0x1017   : > { %4240 = vtanh.f32 %v2882_v22  ;;  %v2883_v27 = vmul.f32 0.7978846, %v2879_v23  ;;  %v2115_v23 = vmul.f32 %v5486_v44, %v5457_v43 }
0x1018   : > { %4242 = vtanh.f32 %v2880_v25  ;;  %v2881_v28 = vmul.f32 0.7978846, %v2877_v26 }
0x1019   : > { %4244 = vtanh.f32 %v2883_v27  ;;  %v2120_v44 = vmul.f32 1.442695, %v2115_v23 }
0x101a   : > { %4246 = vtanh.f32 %v2881_v28 }
0x1021   : > { %v4241_v31 = vpop.eup %4240 }
0x1022   : > { %v4243_v36 = vpop.eup %4242  ;;  %v2890_v47 = vadd.f32 1.0, %v4241_v31 }
0x1023   : > { %v4245_v50 = vpop.eup %4244  ;;  %v2888_v52 = vadd.f32 1.0, %v4243_v36 }
0x1024   : > { %v4247_v57 = vpop.eup %4246  ;;  %v2894_v51 = vmul.f32 0.5, %v2890_v47  ;;  %v2891_v53 = vadd.f32 1.0, %v4245_v50 }
0x1025   : > { %v2892_v38 = vmul.f32 0.5, %v2888_v52  ;;  %v2889_v48 = vadd.f32 1.0, %v4247_v57 }
0x1026   : > { %v2895_v34 = vmul.f32 0.5, %v2891_v53  ;;  %v2898_v39 = vmul.f32 %v2894_v51, %v2858_v0 }
0x1027   : > { %v2893_v54 = vmul.f32 0.5, %v2889_v48  ;;  %v2896_v61 = vmul.f32 %v2892_v38, %v2850_v2 }
0x1028   : > { %v2899_v59 = vmul.f32 %v2895_v34, %v2861_v6 }
0x1029   : > { %v2897_v62 = vmul.f32 %v2893_v54, %v2853_v8 }
0x102a   : > { %v2901_v1 = vpack.c.bf16 %v2899_v59, %v2898_v39 }
0x102b   : > { %v2900_v4 = vpack.c.bf16 %v2897_v62, %v2896_v61  ;;  %v2404_v62 = vmul.f32 %v5494_v56, %v5459_v41 }
0x102d   : > { %3930 = vmatprep.mubr.msk.bf16.mxu1 %vm1219_vm3, %v2900_v4 }
0x102e   : > { %3931 = vmatmul.mubr.msk.bf16.vlgmr.msra.gmra.mrb[36].mxu1 %vm1219_vm3, %v2901_v1 }
0x1101   : > { %v3932_v55 = vpop.f32.mrb[36].mxu1 }
0x1102   : > { %v2974_v7 = vadd.f32 %v3932_v55, %v3709_v5  ;;  %v2965_v9 = vpop.f32.mrb[37].mxu1 }
0x1103   : > { %v2966_v10 = vadd.f32 %v3709_v5, %v2965_v9  ;;  %v3933_v11 = vpop.f32.mrb[38].mxu1 }
0x1104   : > { %v2968_v0 = vpop.f32.mrb[39].mxu1  ;;  %v2982_v2 = vadd.f32 %v2974_v7, %v5375_v60  ;;  %v2977_v8 = vadd.f32 %v3933_v11, %v3709_v5 }
0x1105   : > { %v2969_v6 = vadd.f32 %v3709_v5, %v2968_v0  ;;  %v2980_v13 = vadd.f32 %v2966_v10, %v5373_v49  ;;  %v1822_v49 = vpop.permute.xlu0 %1821  ;;  %v2408_v10 = vmul.f32 1.442695, %v2404_v62 }
0x1106   : > { %v2992_v12 = vsel %vm1219_vm3, %v2982_v2, 0.0  ;;  %v2983_v16 = vadd.f32 %v2977_v8, %v5383_v3  ;;  %v1827_v60 = vmul.f32 %v1822_v49, %v5457_v43  ;;  %v2114_v3 = vmul.f32 %v5484_v42, %v5459_v41 }
0x1107   : > { %v2981_v46 = vadd.f32 %v2969_v6, %v5377_v63  ;;  %2993 = vadd.xlane.f32.xlu0 %v2992_v12  ;;  %v2986_v24 = vsel %vm1219_vm3, %v2980_v13, 0.0 }
0x1108   : > { %v2995_v30 = vsel %vm1219_vm3, %v2983_v16, 0.0  ;;  %v1834_v63 = vmul.f32 1.442695, %v1827_v60 }
0x1109   : > { %v2989_v14 = vsel %vm1219_vm3, %v2981_v46, 0.0 }
0x110a   : > { %2990 = vadd.xlane.f32.xlu1 %v2989_v14  ;;  %4248 = vpow2.f32 %v1834_v63 }
0x110b   : > { %2987 = vadd.xlane.f32.xlu0 %v2986_v24 }
0x110f   : > { %2996 = vadd.xlane.f32.xlu0 %v2995_v30 }
0x1114   : > { %v4249_v36 = vpop.eup %4248 }
0x111b   : > { %1849 = vperm.xlu1 %4111, %v5434_v19  }
0x111f   : > { %4112 = vset.pattern.permute.xlu1 %v4619_v29 }
0x1120   : > { %2127 = vperm.xlu1 %4112, %v5425_v17  }
0x1124   : > { %2135 = vperm.xlu1 %4112, %v5431_v32  }
0x1125   : > { %1845 = vperm.xlu0 %4108, %v5431_v32  }
0x1128   : > { %2139 = vperm.xlu1 %4112, %v5434_v19  }
0x1129   : > { %4113 = vset.pattern.permute.xlu0 %v4619_v29  ;;  %v2118_v29 = vmul.f32 1.442695, %v2114_v3  ;;  %v2406_v3 = vmul.f32 %v5498_v58, %v5459_v41 }
0x112a   : > { %2131 = vperm.xlu0 %4113, %v5428_v18  }
0x112b   : > { %4250 = vpow2.f32 %v2118_v29  ;;  %v2412_v29 = vmul.f32 1.442695, %v2406_v3 }
0x112c   : > { %4115 = vset.pattern.permute.xlu1 %v4620_v33 }
0x112d   : > { %2421 = vperm.xlu1 %4115, %v5428_v18   ;;  %v1826_v18 = vmul.f32 %v5482_v40, %v5459_v41 }
0x112e   : > { %4114 = vset.pattern.permute.xlu0 %v4620_v33 }
0x112f   : > { %2401 = vperm.xlu0 %4114, %v5419_v15   ;;  %v2122_v15 = vmul.f32 1.442695, %v2116_v20  ;;  %v1832_v22 = vmul.f32 1.442695, %v1826_v18 }
0x1131   : > { %4252 = vpow2.f32 %v2122_v15 }
0x1132   : > { %4254 = vpow2.f32 %v1832_v22 }
0x1133   : > { %2417 = vperm.xlu0 %4114, %v5425_v17   ;;  %v2117_v17 = vmul.f32 %v5491_v37, %v5457_v43  ;;  %v2405_v37 = vmul.f32 %v5496_v35, %v5457_v43 }
0x1135   : > { %v2124_v45 = vmul.f32 1.442695, %v2117_v17  ;;  %v2410_v48 = vmul.f32 1.442695, %v2405_v37  ;;  %v4251_v54 = vpop.eup %4250 }
0x1137   : > { %4256 = vpow2.f32 %v2124_v45 }
0x1138   : > { %4258 = vpow2.f32 %v2120_v44 }
0x1139   : > { %4260 = vpow2.f32 %v2410_v48 }
0x113a   : > { %4262 = vpow2.f32 %v2408_v10 }
0x113b   : > { %v4253_v5 = vpop.eup %4252  ;;  %4264 = vpow2.f32 %v2412_v29 }
0x113c   : > { %v4255_v9 = vpop.eup %4254 }
0x1194   : > { %v2994_v33 = vpop.xlane.xlu0 %2993 }
0x1195   : > { %v3000_v21 = vmul.f32 0.03125, %v2994_v33 }
0x1197   : > { %v5552_v42 = vsub.f32 %v2982_v2, %v3000_v21  ;;  %v2991_v25 = vpop.xlane.xlu1 %2990  ;;  %v4257_v2 = vpop.eup %4256 }
0x1198   : > { %v2999_v26 = vmul.f32 0.03125, %v2991_v25  ;;  %v2988_v27 = vpop.xlane.xlu0 %2987  ;;  %v4259_v12 = vpop.eup %4258 }
0x1199   : > { %v2998_v28 = vmul.f32 0.03125, %v2988_v27  ;;  %v3008_v40 = vmul.f32 %v5552_v42, %v5552_v42  ;;  %v4261_v14 = vpop.eup %4260 }
0x119a   : > { %v5558_v31 = vsub.f32 %v2981_v46, %v2999_v26  ;;  %v4263_v49 = vpop.eup %4262 }
0x119b   : > { %v5560_v47 = vsub.f32 %v2980_v13, %v2998_v28  ;;  %v1850_v50 = vpop.permute.xlu1 %1849  ;;  %v3016_v52 = vsel %vm1219_vm3, %v3008_v40, 0.0  ;;  %v4265_v25 = vpop.eup %4264  ;;  %v3714_v40 = vld [vmem:[%s1071_s1] ss:$0 sm:$0xff] }
0x119c   : > { %v1855_v57 = vmul.f32 %v4249_v36, %v1850_v50  ;;  %v2997_v51 = vpop.xlane.xlu0 %2996  ;;  %3017 = vadd.xlane.f32.xlu0 %v3016_v52  ;;  %v3007_v53 = vmul.f32 %v5558_v31, %v5558_v31  ;;  %v3715_v50 = vld [vmem:[%s1074_s18] ss:$0 sm:$0xff]  ;;  %s5903_s18 = sld [smem:[#allocation44_spill]] (!%p3716_p9) }
0x119d   : > { %v3001_v38 = vmul.f32 0.03125, %v2997_v51  ;;  %v3006_v35 = vmul.f32 %v5560_v47, %v5560_v47 }
0x119e   : > { %2559 = vst.msk [vmem:[%s5111_s14 + $0x58] sm:$0xff] %vm1449_vm6, %v1855_v57  ;;  %v3013_v34 = vsel %vm1219_vm3, %v3007_v53, 0.0 }
0x119f   : > { %v5570_v39 = vsub.f32 %v2983_v16, %v3001_v38  ;;  %3014 = vadd.xlane.f32.xlu1 %v3013_v34  ;;  %v2128_v59 = vpop.permute.xlu1 %2127  ;;  %v3010_v61 = vsel %vm1219_vm3, %v3006_v35, 0.0 }
0x11a0   : > { %v2142_v1 = vmul.f32 %v4251_v54, %v2128_v59  ;;  %3011 = vadd.xlane.f32.xlu0 %v3010_v61 }
0x11a1   : > { %v3009_v4 = vmul.f32 %v5570_v39, %v5570_v39 }
0x11a2   : > { %2552 = vst.msk [vmem:[%s5111_s14 + $0x20] sm:$0xff] %vm1449_vm6, %v2142_v1  ;;  %v4280_v3 = vld [vmem:[%s5903_s18] sm:$0xff] (!%p3716_p9)   ;;  %v4281_v29 = vld [vmem:[%s5903_s18 + $0x8] sm:$0xff] (!%p3716_p9)  }
0x11a3   : > { %v2136_v55 = vpop.permute.xlu1 %2135  ;;  %v3019_v7 = vsel %vm1219_vm3, %v3009_v4, 0.0  ;;  %3934 = vmatprep.subr.bf16.mxu0 (!%p3716_p9), %v4280_v3 }
0x11a4   : > { %v2144_v11 = vmul.f32 %v4253_v5, %v2136_v55  ;;  %v1846_v0 = vpop.permute.xlu0 %1845  ;;  %3020 = vadd.xlane.f32.xlu0 %v3019_v7  ;;  %3935 = vmatpush3.bf16.msra.mxu0 (!%p3716_p9), %v4280_v3 }
0x11a5   : > { %v1854_v56 = vmul.f32 %v4255_v9, %v1846_v0  ;;  %3936 = vmatprep.subr.bf16.mxu0 (!%p3716_p9), %v4281_v29 }
0x11a6   : > { %2560 = vst.msk [vmem:[%s5111_s14 + $0x60] sm:$0xff] %vm1449_vm6, %v2144_v11 }
0x11a7   : > { %2558 = vst.msk [vmem:[%s5111_s14 + $0x50] sm:$0xff] %vm1449_vm6, %v1854_v56  ;;  %v2140_v6 = vpop.permute.xlu1 %2139 }
0x11a8   : > { %v2145_v8 = vmul.f32 %v4257_v2, %v2140_v6  ;;  %3937 = vmatpush3.bf16.msra.mxu0 (!%p3716_p9), %v4281_v29 }
0x11a9   : > { %v2132_v13 = vpop.permute.xlu0 %2131 }
0x11aa   : > { %2561 = vst.msk [vmem:[%s5111_s14 + $0x68] sm:$0xff] %vm1449_vm6, %v2145_v8  ;;  %v2143_v46 = vmul.f32 %v4259_v12, %v2132_v13 }
0x11ac   : > { %2553 = vst.msk [vmem:[%s5111_s14 + $0x28] sm:$0xff] %vm1449_vm6, %v2143_v46  ;;  %v2422_v24 = vpop.permute.xlu1 %2421 }
0x11ad   : > { %v2433_v16 = vmul.f32 %v4261_v14, %v2422_v24 }
0x11ae   : > { %v2402_v30 = vpop.permute.xlu0 %2401 }
0x11af   : > { %2555 = vst.msk [vmem:[%s5111_s14 + $0x38] sm:$0xff] %vm1449_vm6, %v2433_v16  ;;  %v2407_v20 = vmul.f32 %v2402_v30, %v5457_v43 }
0x11b0   : > { %2425 = vperm.xlu1 %4115, %v5431_v32  }
0x11b1   : > { %v2414_v15 = vmul.f32 1.442695, %v2407_v20 }
0x11b2   : > { %v2418_v60 = vpop.permute.xlu0 %2417 }
0x11b3   : > { %v2432_v63 = vmul.f32 %v4263_v49, %v2418_v60 }
0x11b5   : > { %2554 = vst.msk [vmem:[%s5111_s14 + $0x30] sm:$0xff] %vm1449_vm6, %v2432_v63 }
0x11ba   : > { %2429 = vperm.xlu0 %4114, %v5434_v19  }
0x1229   : > { %v3018_v18 = vpop.xlane.xlu0 %3017 }
0x122a   : > { %v3024_v33 = vmul.f32 0.03125, %v3018_v18 }
0x122c   : > { %v3028_v17 = vadd.f32 1e-05, %v3024_v33  ;;  %v3015_v32 = vpop.xlane.xlu1 %3014 }
0x122d   : > { %v3023_v21 = vmul.f32 0.03125, %v3015_v32  ;;  %v3012_v22 = vpop.xlane.xlu0 %3011 }
0x122e   : > { %4266 = vrsqrt.f32 %v3028_v17  ;;  %v3022_v23 = vmul.f32 0.03125, %v3012_v22 }
0x122f   : > { %4268 = vpow2.f32 %v2414_v15  ;;  %v3027_v19 = vadd.f32 1e-05, %v3023_v21 }
0x1230   : > { %v3026_v41 = vadd.f32 1e-05, %v3022_v23  ;;  %v2426_v58 = vpop.permute.xlu1 %2425 }
0x1231   : > { %4270 = vrsqrt.f32 %v3027_v19  ;;  %v2434_v26 = vmul.f32 %v4265_v25, %v2426_v58  ;;  %v3021_v43 = vpop.xlane.xlu0 %3020 }
0x1232   : > { %4272 = vrsqrt.f32 %v3026_v41  ;;  %v3025_v27 = vmul.f32 0.03125, %v3021_v43  ;;  %v3717_v43 = vld [vmem:[%s5904_s23] ss:$0 sm:$0xff] (!%p3716_p9) }
0x1233   : > { %2562 = vst.msk [vmem:[%s5111_s14 + $0x70] sm:$0xff] %vm1449_vm6, %v2434_v26 }
0x1234   : > { %v3029_v45 = vadd.f32 1e-05, %v3025_v27 }
0x1236   : > { %4274 = vrsqrt.f32 %v3029_v45 }
0x1238   : > { %v4267_v28 = vpop.eup %4266 }
0x1239   : > { %v4269_v37 = vpop.eup %4268  ;;  %v3036_v36 = vmul.f32 %v4267_v28, %v5552_v42  ;;  %v2430_v44 = vpop.permute.xlu0 %2429 }
0x123a   : > { %v2435_v52 = vmul.f32 %v4269_v37, %v2430_v44  ;;  %v3718_v37 = vld [vmem:[%s5905_s4] ss:$0 sm:$0xff] (!%p3716_p9) }
0x123b   : > { %v4271_v57 = vpop.eup %4270  ;;  %v3046_v51 = vmul.f32 %v3714_v40, %v3036_v36 }
0x123c   : > { %v4273_v53 = vpop.eup %4272  ;;  %v3035_v38 = vmul.f32 %v4271_v57, %v5558_v31  ;;  %2563 = vst.msk [vmem:[%s5111_s14 + $0x78] sm:$0xff] %vm1449_vm6, %v2435_v52 }
0x123d   : > { %v3056_v35 = vadd.f32 %v3715_v50, %v3046_v51  ;;  %v3034_v48 = vmul.f32 %v4273_v53, %v5560_v47 }
0x123e   : > { %v3045_v34 = vmul.f32 %v3714_v40, %v3035_v38 }
0x123f   : > { %3060 = vst.msk [vmem:[#allocation2 + $0x10] sm:$0xff] %vm1219_vm3, %v3056_v35  ;;  %v3044_v42 = vmul.f32 %v3714_v40, %v3034_v48  ;;  %v3074_v4 = vsel (!%p3716_p9), %vm1219_vm3, %v3056_v35, 0.0 }
0x1240   : > { %v4275_v54 = vpop.eup %4274  ;;  %v3055_v59 = vadd.f32 %v3715_v50, %v3045_v34  ;;  %3075 = vadd.xlane.f32.xlu1 (!%p3716_p9), %v3074_v4 }
0x1241   : > { %v3054_v61 = vadd.f32 %v3715_v50, %v3044_v42  ;;  %v3037_v62 = vmul.f32 %v4275_v54, %v5570_v39  ;;  %3065 = sbr.rel (%p3716_p9) target bundleno = 5216 (0x1460), region = 132  ;;  %v3719_v54 = vld [vmem:[%s5906_s3] ss:$0 sm:$0xff] (!%p3716_p9) }
0x1242   : > { %3059 = vst.msk [vmem:[#allocation2 + $0x8] sm:$0xff] %vm1219_vm3, %v3055_v59  ;;  %v3071_v5 = vsel (!%p3716_p9), %vm1219_vm3, %v3055_v59, 0.0 }
0x1243   : > { %3058 = vst.msk [vmem:[#allocation2] sm:$0xff] %vm1219_vm3, %v3054_v61  ;;  %v3047_v1 = vmul.f32 %v3714_v40, %v3037_v62  ;;  %v3068_v47 = vsel (!%p3716_p9), %vm1219_vm3, %v3054_v61, 0.0 }
0x1244   : > { %3069 = vadd.xlane.f32.xlu0 (!%p3716_p9), %v3068_v47 }
0x1245   : > { %v3057_v31 = vadd.f32 %v3715_v50, %v3047_v1 }
0x1247   : > { %3061 = vst.msk [vmem:[#allocation2 + $0x18] sm:$0xff] %vm1219_vm3, %v3057_v31  ;;  %v3077_v39 = vsel (!%p3716_p9), %vm1219_vm3, %v3057_v31, 0.0 }
0x1248   : > { %3072 = vadd.xlane.f32.xlu0 %v3071_v5  ;;  %3078 = vadd.xlane.f32.xlu1 %v3077_v39 }
0x12cd   : > { %v3076_v7 = vpop.xlane.xlu1 %3075 }
0x12ce   : > { %v3082_v10 = vmul.f32 0.03125, %v3076_v7 }
0x12d0   : > { %v3086_v0 = vsub.f32 %v3056_v35, %v3082_v10 }
0x12d1   : > { %v3070_v55 = vpop.xlane.xlu0 %3069 }
0x12d2   : > { %v3080_v9 = vmul.f32 0.03125, %v3070_v55  ;;  %v3090_v13 = vmul.f32 %v3086_v0, %v3086_v0 }
0x12d4   : > { %v3084_v11 = vsub.f32 %v3054_v61, %v3080_v9  ;;  %v3098_v16 = vsel %vm1219_vm3, %v3090_v13, 0.0 }
0x12d5   : > { %v3073_v56 = vpop.xlane.xlu0 %3072  ;;  %v3079_v2 = vpop.xlane.xlu1 %3078 }
0x12d6   : > { %v3081_v6 = vmul.f32 0.03125, %v3073_v56  ;;  %v3083_v8 = vmul.f32 0.03125, %v3079_v2  ;;  %v3088_v12 = vmul.f32 %v3084_v11, %v3084_v11 }
0x12d8   : > { %v3085_v46 = vsub.f32 %v3055_v59, %v3081_v6  ;;  %v3087_v14 = vsub.f32 %v3057_v31, %v3083_v8  ;;  %v3092_v24 = vsel %vm1219_vm3, %v3088_v12, 0.0 }
0x12d9   : > { %3093 = vadd.xlane.f32.xlu0 %v3092_v24 }
0x12da   : > { %v3089_v30 = vmul.f32 %v3085_v46, %v3085_v46  ;;  %v3091_v49 = vmul.f32 %v3087_v14, %v3087_v14 }
0x12dc   : > { %v3095_v60 = vsel %vm1219_vm3, %v3089_v30, 0.0  ;;  %v3101_v63 = vsel %vm1219_vm3, %v3091_v49, 0.0 }
0x12dd   : > { %3099 = vadd.xlane.f32.xlu0 %v3098_v16  ;;  %3096 = vadd.xlane.f32.xlu1 %v3095_v60 }
0x12e1   : > { %3102 = vadd.xlane.f32.xlu1 %v3101_v63 }
0x1366   : > { %v3094_v20 = vpop.xlane.xlu0 %3093 }
0x1367   : > { %v3104_v18 = vmul.f32 0.03125, %v3094_v20 }
0x1369   : > { %v3108_v33 = vadd.f32 1e-05, %v3104_v18 }
0x136a   : > { %v3097_v15 = vpop.xlane.xlu1 %3096  ;;  %v3100_v17 = vpop.xlane.xlu0 %3099 }
0x136b   : > { %4282 = vrsqrt.f32 %v3108_v33  ;;  %v3105_v32 = vmul.f32 0.03125, %v3097_v15  ;;  %v3106_v21 = vmul.f32 0.03125, %v3100_v17 }
0x136d   : > { %v3109_v22 = vadd.f32 1e-05, %v3105_v32  ;;  %v3110_v23 = vadd.f32 1e-05, %v3106_v21 }
0x136e   : > { %v3103_v19 = vpop.xlane.xlu1 %3102 }
0x136f   : > { %4284 = vrsqrt.f32 %v3109_v22  ;;  %v3107_v25 = vmul.f32 0.03125, %v3103_v19 }
0x1370   : > { %4286 = vrsqrt.f32 %v3110_v23 }
0x1371   : > { %v3111_v41 = vadd.f32 1e-05, %v3107_v25 }
0x1373   : > { %4288 = vrsqrt.f32 %v3111_v41 }
0x1375   : > { %v4283_v58 = vpop.eup %4282 }
0x1376   : > { %v3116_v26 = vmul.f32 %v4283_v58, %v3084_v11 }
0x1378   : > { %v3126_v40 = vmul.f32 %v3717_v43, %v3116_v26 }
0x1379   : > { %v4285_v27 = vpop.eup %4284 }
0x137a   : > { %v4287_v45 = vpop.eup %4286  ;;  %v3117_v28 = vmul.f32 %v4285_v27, %v3085_v46  ;;  %v3136_v52 = vadd.f32 %v3718_v37, %v3126_v40 }
0x137b   : > { %v3118_v36 = vmul.f32 %v4287_v45, %v3086_v0 }
0x137c   : > { %v3127_v44 = vmul.f32 %v3717_v43, %v3117_v28 }
0x137d   : > { %v4289_v50 = vpop.eup %4288  ;;  %v3128_v53 = vmul.f32 %v3717_v43, %v3118_v36 }
0x137e   : > { %v3137_v57 = vadd.f32 %v3718_v37, %v3127_v44  ;;  %v3119_v51 = vmul.f32 %v4289_v50, %v3087_v14 }
0x137f   : > { %v3138_v48 = vadd.f32 %v3718_v37, %v3128_v53 }
0x1380   : > { %v3140_v38 = vpack.c.bf16 %v3137_v57, %v3136_v52  ;;  %v3129_v35 = vmul.f32 %v3717_v43, %v3119_v51 }
0x1382   : > { %3938 = vmatprep.mubr.msk.bf16.mxu0 %vm1219_vm3, %v3140_v38  ;;  %v3139_v34 = vadd.f32 %v3718_v37, %v3129_v35 }
0x1384   : > { %v3141_v42 = vpack.c.bf16 %v3139_v34, %v3138_v48 }
0x1386   : > { %3939 = vmatmul.mubr.msk.bf16.vlgmr.msra.gmra.mrb[0].mxu0 %vm1219_vm3, %v3141_v42 }
0x1459   : > { %v3940_v59 = vpop.f32.mrb[0].mxu0 }
0x145a   : > { %v3214_v61 = vadd.f32 %v3940_v59, %v3719_v54  ;;  %v3205_v62 = vpop.f32.mrb[1].mxu0 }
0x145b   : > { %v3206_v1 = vadd.f32 %v3719_v54, %v3205_v62  ;;  %v3941_v31 = vpop.f32.mrb[2].mxu0 }
0x145c   : > { %3222 = vst.msk [vmem:[%s5907_s10 + $0x10] sm:$0xff] %vm1339_vm8, %v3214_v61  ;;  %v3217_v47 = vadd.f32 %v3941_v31, %v3719_v54  ;;  %v3208_v4 = vpop.f32.mrb[3].mxu0 }
0x145d   : > { %3220 = vst.msk [vmem:[%s5907_s10] sm:$0xff] %vm1339_vm8, %v3206_v1  ;;  %v3209_v5 = vadd.f32 %v3719_v54, %v3208_v4 }
0x145e   : > { %3223 = vst.msk [vmem:[%s5907_s10 + $0x18] sm:$0xff] %vm1339_vm8, %v3217_v47 }
0x145f   : > { %3221 = vst.msk [vmem:[%s5907_s10 + $0x8] sm:$0xff] %vm1339_vm8, %v3209_v5 }
0x1460 PF: > { %s5908_s15 = sld [smem:[#allocation25_spill]]  ;;  %s3742_s6 = sshll.u32 %s4580_s25, 11 }
0x1461   : > { %s5909_s23 = sld [smem:[#allocation47_spill]]  ;;  %s3262_s29 = sshll.u32 %s5109_s30, 4  ;;  %s5670_s29 = int_to_ptr.vmem [resolvable:$true] %s3262_s29 }
0x1462   : > { %s3231_s4 = scalar_lea.sflag [#allocation5], %s5051_s21  ;;  %s4466_s17 = scalar_lea.vmem %s5670_s29, 2048 }
0x1463   : > { %p4467_p8 = scmp.ne.s32.totalorder %s5670_s29, %s4466_s17  ;;  %s4621_s12 = smov [#allocation12]  }
0x1464   : > { %s4470_s3 = sshll.u32 %s4621_s12, 4  ;;  %s4471_s3 = int_to_ptr.vmem [resolvable:$false] %s4470_s3 }
0x1465   : > { %s4472_s28 = scalar_lea.vmem %s4471_s3, 4096  ;;  %p4473_p13 = scmp.lt.s32.totalorder %s5670_s29, %s4471_s3 }
0x1466   : > { %p5910_p10 = scmp.ne.s32.totalorder %s5908_s15, 0  ;;  %p4474_p6 = scmp.lt.s32.totalorder %s4472_s28, %s4466_s17 }
0x1467   : > { %s5667_s22 = scalar_lea.hbm %s5909_s23, %s3742_s6 }
0x1468   : > { %p4468_p7 = pnand %p4467_p8, %p5910_p10  ;;  %p4475_p2 = por %p4474_p6, %p4473_p13 }
0x146a   : > { %p4469_p0 = pneg %p4468_p7 }
0x146c   : > { %p4476_p11 = pnand %p4475_p2, %p4469_p0 }
0x146e   : > { %4479 = shalt.err (!%p4476_p11)
}
0x146f   : > { %s4480_s30 = scalar_lea.hbm %s5667_s22, 2048  ;;  %s4484_s2 = scalar_lea.hbm %s5909_s23, 4096 }
0x1470   : > { %p4481_p1 = scmp.ne.s32.totalorder %s5667_s22, %s4480_s30  ;;  %p4485_p5 = scmp.lt.u32.totalorder %s5667_s22, %s5909_s23 }
0x1471   : > { %p4486_p3 = scmp.lt.u32.totalorder %s4484_s2, %s4480_s30  ;;  %p4488_p8 = scmp.lt.u32.totalorder %s4480_s30, %s5667_s22 }
0x1472   : > { %p4482_p4 = pnand %p4481_p1, %p5910_p10 }
0x1473   : > { %p4487_p9 = por %p4486_p3, %p4485_p5 }
0x1474   : > { %p4483_p12 = pneg %p4482_p4 }
0x1475   : > { %p4489_p7 = por %p4488_p8, %p4487_p9 }
0x1477   : > { %p4490_p0 = pnand %p4489_p7, %p4483_p12 }
0x1479   : > { %4493 = shalt.err (!%p4490_p0)
}
0x147a   : > { %s4622_s13 = smov 128   ;;  %s5911_s0 = sld [smem:[#allocation48_spill]] }
0x147b   : > { %3959 = dma.vmem_to_hbm [thread:$0]  (%p5910_p10), %s5670_s29, 2048, %s5667_s22, %s3231_s4, %s4622_s13, %s4622_s13, %s4613_s20  }
0x147c   : > { %s3280_s12 = sshll.u32 %s5111_s14, 4  ;;  %s3236_s3 = scalar_lea.sflag [#allocation14], %s5051_s21  ;;  %s5707_s12 = int_to_ptr.vmem [resolvable:$true] %s3280_s12 }
0x147d   : > { %s4494_s28 = scalar_lea.vmem %s5707_s12, 2048  ;;  %s4623_s30 = smov [#allocation13]  }
0x147e   : > { %p4495_p13 = scmp.ne.s32.totalorder %s5707_s12, %s4494_s28  ;;  %s4498_s22 = sshll.u32 %s4623_s30, 4  ;;  %s4499_s22 = int_to_ptr.vmem [resolvable:$false] %s4498_s22 }
0x147f   : > { %s4500_s25 = scalar_lea.vmem %s4499_s22, 4096  ;;  %p4501_p11 = scmp.lt.s32.totalorder %s5707_s12, %s4499_s22 }
0x1480   : > { %s5704_s17 = scalar_lea.hbm %s5911_s0, %s3742_s6  ;;  %p4496_p6 = pnand %p4495_p13, %p5910_p10 }
0x1481   : > { %p4502_p1 = scmp.lt.s32.totalorder %s4500_s25, %s4494_s28 }
0x1482   : > { %p4497_p2 = pneg %p4496_p6 }
0x1483   : > { %p4503_p4 = por %p4502_p1, %p4501_p11 }
0x1485   : > { %p4504_p12 = pnand %p4503_p4, %p4497_p2 }
0x1487   : > { %4507 = shalt.err (!%p4504_p12)
}
0x1488   : > { %s4508_s14 = scalar_lea.hbm %s5704_s17, 2048  ;;  %s4512_s4 = scalar_lea.hbm %s5911_s0, 4096 }
0x1489   : > { %p4509_p5 = scmp.ne.s32.totalorder %s5704_s17, %s4508_s14  ;;  %p4513_p8 = scmp.lt.u32.totalorder %s5704_s17, %s5911_s0 }
0x148a   : > { %p4514_p7 = scmp.lt.u32.totalorder %s4512_s4, %s4508_s14  ;;  %p4516_p13 = scmp.lt.u32.totalorder %s4508_s14, %s5704_s17 }
0x148b   : > { %p4510_p3 = pnand %p4509_p5, %p5910_p10 }
0x148c   : > { %p4515_p0 = por %p4514_p7, %p4513_p8 }
0x148d   : > { %p4511_p9 = pneg %p4510_p3 }
0x148e   : > { %p4517_p6 = por %p4516_p13, %p4515_p0 }
0x1490   : > { %p4518_p2 = pnand %p4517_p6, %p4511_p9 }
0x1492   : > { %4521 = shalt.err (!%p4518_p2)
}
0x1493   : > { %3960 = dma.vmem_to_hbm [thread:$0]  (%p5910_p10), %s5707_s12, 2048, %s5704_s17, %s3236_s3, %s4622_s13, %s4622_s13, %s4613_s20  }
0x1494 PF: > { %s5912_s2 = sld [smem:[#allocation20_spill]]  ;;  %s5913_s27 = sld [smem:[#allocation26_spill]] }
0x1495   : > { %s5914_s5 = sld [smem:[#allocation24_spill]] }
0x149a   : > { %s3309_s1 = sand.u32 1, %s5912_s2   ;;  %p5915_p11 = scmp.ne.s32.totalorder %s5913_s27, 0 }
0x149b   : > { %p5916_p1 = scmp.ge.s32.totalorder %s5914_s5, 2  ;;  %s3310_s7 = scalar_lea.sflag [#allocation5], %s3309_s1 }
0x149d   : > { %p3984_p4 = pnand %p5916_p1, %p5915_p11 }
0x149f   : > { %4559 = dma.done.wait (!%p3984_p4), %s3310_s7, 2048  }
0x14a0   : > { %4561 = vsyncadd (!%p3984_p4), %s3310_s7, 4294965248  ;;  %s3319_s15 = scalar_lea.sflag [#allocation14], %s3309_s1 }
0x14a1   : > { %4563 = dma.done.wait (!%p3984_p4), %s3319_s15, 2048  }
0x14a2   : > { %4565 = vsyncadd (!%p3984_p4), %s3319_s15, 4294965248  ;;  %s42_s1 = sadd.s32 1, %s5914_s5   ;;  %s5917_s4 = sld [smem:[#allocation21_spill]] }
0x14a3   : > { %p39_p12 = scmp.ge.s32.totalorder %s42_s1, 4   ;;  %s5918_s30 = sld [smem:[#allocation22_spill]] }
0x14a4   : > { %s5919_s24 = sld [smem:[#allocation28_spill]]  ;;  %s5920_s25 = sld [smem:[#allocation23_spill]] }
0x14a5   : > { %s5921_s5 = sld [smem:[#allocation27_spill]]  ;;  %41 = sbr.rel (!%p39_p12) target bundleno = 30 (0x1e), region = 264 }
0x14ac   :  { %3334 = vsyncpa [#allocation4], 1 }
0x14ad   :  { %3336 = vsyncpa [#allocation4 + $0x1], 1 }
0x14ae   :  { %3337 = vsyncpa [#allocation7], 1 }
0x14af   :  { %3338 = vsyncpa [#allocation5], 1 }
0x14b0   :  { %3340 = vsyncpa [#allocation5 + $0x1], 1 }
0x14b1   :  { %3341 = vsyncpa [#allocation14], 1 }
0x14b2   :  { %3343 = vsyncpa [#allocation14 + $0x1], 1 }

</bundles_post_ra>
